<compile_context>
chip_gen: v5e
topology: v5e:2x2
jax: 0.10.0
libtpu: 0.0.40
codegen_flags: <defaults>
</compile_context>

<pallas_src>
import functools

import jax
import jax.numpy as jnp
import numpy as np
from jax.experimental import pallas as pl
from jax.experimental.pallas import tpu as pltpu

GN_EPS = 1e-5
LANE = 128


def _round_up(v, m):
    return (v + m - 1) // m * m


def _group_norm_relu(x, gamma, beta, groups):
    """Fused GroupNorm (eps=1e-5, biased variance) + ReLU on an (HW, C) f32 tile.

    One sublane reduction to per-channel (1, C) sums / sum-of-squares, then a
    segmented group reduction done as two tiny one-hot f32 matmuls (MXU) --
    no serial per-group lane reductions.
    """
    HW, C = x.shape
    cs = C // groups
    cnt = jnp.float32(HW * cs)

    s = jnp.sum(x, axis=0, keepdims=True)          # (1, C)
    ss = jnp.sum(x * x, axis=0, keepdims=True)     # (1, C)
    stats = jnp.concatenate([s, ss], axis=0)       # (2, C)

    if groups == 1:
        per = jnp.sum(stats, axis=1, keepdims=True)              # (2, 1)
    else:
        ch = jax.lax.broadcasted_iota(jnp.int32, (C, groups), 0) // cs
        gi = jax.lax.broadcasted_iota(jnp.int32, (C, groups), 1)
        onehot_cg = (ch == gi).astype(jnp.float32)                # (C, G)
        gi_t = jax.lax.broadcasted_iota(jnp.int32, (groups, C), 0)
        ch_t = jax.lax.broadcasted_iota(jnp.int32, (groups, C), 1) // cs
        onehot_gc = (gi_t == ch_t).astype(jnp.float32)            # (G, C)
        per_group = jnp.dot(stats, onehot_cg,
                            preferred_element_type=jnp.float32)   # (2, G)
        per = jnp.dot(per_group, onehot_gc,
                      preferred_element_type=jnp.float32)         # (2, C)

    mean = per[0:1] / cnt
    ex2 = per[1:2] / cnt
    var = jnp.maximum(ex2 - mean * mean, 0.0)
    scale = jax.lax.rsqrt(var + GN_EPS) * gamma    # (1, C)
    shift = beta - mean * scale                    # (1, C)
    return jnp.maximum(x * scale + shift, 0.0)


def _make_col_masks(HW, W):
    """(HW, 1) column-validity masks for dx = -1 / +1 (shared by both convs)."""
    j = jax.lax.broadcasted_iota(jnp.int32, (HW, 1), 0) % W
    return j >= 1, j < W - 1


def _conv3x3_im2col(h, w_ref, xpad_ref, im2col_ref, col_masks, W):
    """'same' 3x3 conv, stride 1, no bias, as a single K = 9*C im2col MXU matmul.

    h        : (HW, C) f32 activation.
    w_ref    : (9*C, Cout) bf16, rows tap-major (t = 3*ky + kx).
    xpad_ref : (HW + 2*W, >= 3*C) bf16 scratch; top/bottom W rows are zero and
               the body rows hold the dx = -1/0/+1 column-shifted copies of h.
    im2col_ref: (HW, >= 9*C) bf16 scratch (only used when C % 128 == 0).
    Returns (HW, Cout) f32.
    """
    HW, C = h.shape
    c3 = 3 * C

    # dx = -1 / +1 shifts: mask in f32 (v5e-friendly), cast to bf16 at the store.
    h_m1 = jnp.where(col_masks[0], pltpu.roll(h, shift=1, axis=0), 0.0)
    h_p1 = jnp.where(col_masks[1], pltpu.roll(h, shift=HW - 1, axis=0), 0.0)

    aligned = (C % LANE == 0) and (im2col_ref is not None)
    if aligned:
        # Production path (Cin >= 128): every lane offset below is a multiple
        # of 128, so each tap slab is a plain aligned store / load.
        xpad_ref[W:W + HW, 0:C] = h_m1.astype(jnp.bfloat16)        # kx = 0
        xpad_ref[W:W + HW, C:2 * C] = h.astype(jnp.bfloat16)       # kx = 1
        xpad_ref[W:W + HW, 2 * C:c3] = h_p1.astype(jnp.bfloat16)   # kx = 2
        # Each ky contributes 3 consecutive taps = one contiguous 3*C lane
        # band; the dy shift is just a row-offset read of the padded scratch.
        for ky in range(3):
            im2col_ref[:, ky * c3:(ky + 1) * c3] = (
                xpad_ref[ky * W:ky * W + HW, 0:c3])
        lhs = (im2col_ref[...] if im2col_ref.shape[1] == 9 * C
               else im2col_ref[:, 0:9 * C])
    else:
        # Small-channel (toy-shape) path, Cin < 128: per-slab lane offsets
        # would be unaligned, so stage the dx triple with one aligned
        # full-width store and let the compiler place the 3 row-shifted bands
        # (bf16 value concat) as the matmul operand.
        xpad_ref[W:W + HW, 0:c3] = jnp.concatenate(
            [h_m1, h, h_p1], axis=1).astype(jnp.bfloat16)
        lhs = jnp.concatenate(
            [xpad_ref[ky * W:ky * W + HW, 0:c3] for ky in range(3)], axis=1)

    return jnp.dot(lhs, w_ref[...], preferred_element_type=jnp.float32)


def _resnet_block_kernel(*refs, W, groups0, groups1, fout, fout_pad,
                         learned_shortcut, use_im2col_scratch):
    n_in = 8 if learned_shortcut else 7
    in_refs = refs[:n_in]
    o_ref = refs[n_in]
    xpad_ref = refs[n_in + 1]
    im2col_ref = refs[n_in + 2] if use_im2col_scratch else None
    if learned_shortcut:
        x_ref, g0_ref, b0_ref, w0_ref, g1_ref, b1_ref, w1_ref, ws_ref = in_refs
    else:
        x_ref, g0_ref, b0_ref, w0_ref, g1_ref, b1_ref, w1_ref = in_refs
        ws_ref = None

    x_bf = x_ref[0]                                  # (HW, fin) bf16
    x = x_bf.astype(jnp.float32)                     # f32 for GN / identity path
    HW = x.shape[0]

    # Zero the top/bottom halo rows of the row-padded scratch once; both conv
    # calls only ever rewrite rows [W, W + HW).
    zero_band = jnp.zeros((W, xpad_ref.shape[1]), jnp.bfloat16)
    xpad_ref[0:W, :] = zero_band
    xpad_ref[W + HW:W + HW + W, :] = zero_band

    col_masks = _make_col_masks(HW, W)               # shared by both convs

    if learned_shortcut:
        x_s = jnp.dot(x_bf, ws_ref[...],
                      preferred_element_type=jnp.float32)          # (HW, fout_pad)
    else:
        pad = fout_pad - fout
        if pad:
            x_s = jnp.concatenate(
                [x, jnp.zeros((HW, pad), jnp.float32)], axis=1)    # lane-pad identity
        else:
            x_s = x

    h = _group_norm_relu(x, g0_ref[...], b0_ref[...], groups0)
    h = _conv3x3_im2col(h, w0_ref, xpad_ref, im2col_ref, col_masks, W)
    h = _group_norm_relu(h, g1_ref[...], b1_ref[...], groups1)
    dxp = _conv3x3_im2col(h, w1_ref, xpad_ref, im2col_ref, col_masks, W)

    o_ref[0] = (x_s + dxp).astype(o_ref.dtype)       # lane-dense bf16 store


def _vmem_limit_bytes():
    # Generation-aware VMEM budget: ~3/4 of physical (48 MiB on v7x's 64 MiB,
    # 96 MiB on v5e/v6e's 128 MiB).
    try:
        cap = pltpu.get_tpu_info().vmem_capacity_bytes
    except Exception:
        cap = 128 * 1024 * 1024
    return int(min(96 * 1024 * 1024, cap * 3 // 4))


def resnet_block_forward_nhwc(x_nhwc, params, fin, fout, fhidden=None):
    """ResnetBlock forward.  x: (N, H, W, fin) float -> (N, H, W, fout) bf16."""
    if fhidden is None:
        fhidden = min(fin, fout)
    N, H, W, C = x_nhwc.shape
    assert C == fin
    assert fin % 32 == 0 and fhidden % 32 == 0, \
        "GroupNorm(C // 32, C) requires channel counts that are multiples of 32"
    learned = fin != fout
    groups0 = fin // 32
    groups1 = fhidden // 32
    HW = H * W
    fout_pad = _round_up(fout, LANE)                 # lane-dense output store
    cmax = max(fin, fhidden)
    use_im2col = (fin % LANE == 0) or (fhidden % LANE == 0)

    # Activations travel bf16; GN stats / matmul accumulation stay f32 in-kernel.
    x_flat = x_nhwc.reshape(N, HW, fin).astype(jnp.bfloat16)
    g0 = params["gn0_gamma"].reshape(1, fin).astype(jnp.float32)
    b0 = params["gn0_beta"].reshape(1, fin).astype(jnp.float32)
    g1 = params["gn1_gamma"].reshape(1, fhidden).astype(jnp.float32)
    b1 = params["gn1_beta"].reshape(1, fhidden).astype(jnp.float32)

    # OIHW -> (ky, kx, Cin, Cout) -> (9*Cin, Cout), bf16 MXU operands.
    w0 = jnp.transpose(params["conv0_w"], (2, 3, 1, 0)).reshape(
        9 * fin, fhidden).astype(jnp.bfloat16)
    w1 = jnp.transpose(params["conv1_w"], (2, 3, 1, 0)).reshape(
        9 * fhidden, fout).astype(jnp.bfloat16)
    if fout_pad > fout:
        w1 = jnp.pad(w1, ((0, 0), (0, fout_pad - fout)))   # zero cols -> out pad

    # TODO(synk): mark the constant-index specs below (weights, gammas/betas)
    # with pipeline_mode=pl.Buffered(1) to drop their second pipeline buffer
    # (~10 MB VMEM headroom at C=512, most valuable on v7x).
    inputs = [x_flat, g0, b0, w0, g1, b1, w1]
    in_specs = [
        pl.BlockSpec((1, HW, fin), lambda n: (n, 0, 0)),
        pl.BlockSpec((1, fin), lambda n: (0, 0)),
        pl.BlockSpec((1, fin), lambda n: (0, 0)),
        pl.BlockSpec((9 * fin, fhidden), lambda n: (0, 0)),
        pl.BlockSpec((1, fhidden), lambda n: (0, 0)),
        pl.BlockSpec((1, fhidden), lambda n: (0, 0)),
        pl.BlockSpec((9 * fhidden, fout_pad), lambda n: (0, 0)),
    ]
    if learned:
        ws = jnp.transpose(params["convs_w"][:, :, 0, 0], (1, 0)).astype(
            jnp.bfloat16)                                    # (fin, fout)
        if fout_pad > fout:
            ws = jnp.pad(ws, ((0, 0), (0, fout_pad - fout)))
        inputs.append(ws)
        in_specs.append(pl.BlockSpec((fin, fout_pad), lambda n: (0, 0)))

    scratch_shapes = [
        pltpu.VMEM((HW + 2 * W, 3 * cmax), jnp.bfloat16),    # row-padded dx copies
    ]
    if use_im2col:
        scratch_shapes.append(pltpu.VMEM((HW, 9 * cmax), jnp.bfloat16))

    kernel = functools.partial(
        _resnet_block_kernel, W=W, groups0=groups0, groups1=groups1,
        fout=fout, fout_pad=fout_pad, learned_shortcut=learned,
        use_im2col_scratch=use_im2col)

    # TODO(synk): for production shapes (HW=64^2, C=256..512) this one-block-
    # per-image layout exceeds v7x's 64 MiB VMEM; tile H*W into ~256-512-row
    # blocks with a 1-row halo (pl.ANY + make_async_copy) plus a GroupNorm
    # stats pre-pass so the main kernel only applies scale/shift per tile,
    # sizing the tile off pltpu.get_tpu_info().vmem_capacity_bytes.
    out_flat = pl.pallas_call(
        kernel,
        out_shape=jax.ShapeDtypeStruct((N, HW, fout_pad), jnp.bfloat16),
        grid=(N,),
        in_specs=in_specs,
        out_specs=pl.BlockSpec((1, HW, fout_pad), lambda n: (n, 0, 0)),
        scratch_shapes=scratch_shapes,
        compiler_params=pltpu.CompilerParams(
            dimension_semantics=("parallel",),
            vmem_limit_bytes=_vmem_limit_bytes()),
    )(*inputs)

    if fout_pad != fout:
        out_flat = out_flat[:, :, :fout]
    return out_flat.reshape(N, H, W, fout)


def resnet_block_forward(x_nchw, params, fin, fout, fhidden=None):
    """NCHW adapter (PyTorch-module parity).  Prefer the NHWC entry in NHWC nets
    so the two transposes (and their HBM round trips) disappear."""
    x_nhwc = jnp.transpose(x_nchw, (0, 2, 3, 1))
    out = resnet_block_forward_nhwc(x_nhwc, params, fin, fout, fhidden)
    return jnp.transpose(out, (0, 3, 1, 2))


def _reference_forward(x, params, fin, fout, fhidden):
    """Pure-JAX NCHW f32 reference matching the PyTorch module semantics."""
    def gn(x, groups, gamma, beta):
        N, C, H, W = x.shape
        xg = x.reshape(N, groups, C // groups, H, W)
        mu = xg.mean(axis=(2, 3, 4), keepdims=True)
        var = ((xg - mu) ** 2).mean(axis=(2, 3, 4), keepdims=True)
        xn = ((xg - mu) / jnp.sqrt(var + GN_EPS)).reshape(N, C, H, W)
        return xn * gamma[None, :, None, None] + beta[None, :, None, None]

    def conv(x, w, pad):
        return jax.lax.conv_general_dilated(
            x, w, window_strides=(1, 1), padding=pad,
            dimension_numbers=("NCHW", "OIHW", "NCHW"),
            precision=jax.lax.Precision.HIGHEST)

    learned = fin != fout
    groups0, groups1 = fin // 32, fhidden // 32
    x_s = conv(x, params["convs_w"], [(0, 0), (0, 0)]) if learned else x
    d = conv(jax.nn.relu(gn(x, groups0, params["gn0_gamma"], params["gn0_beta"])),
             params["conv0_w"], [(1, 1), (1, 1)])
    d = conv(jax.nn.relu(gn(d, groups1, params["gn1_gamma"], params["gn1_beta"])),
             params["conv1_w"], [(1, 1), (1, 1)])
    return x_s + d


def _make_params(key, fin, fout, fhidden):
    k = jax.random.split(key, 8)
    params = {
        "gn0_gamma": 1.0 + 0.1 * jax.random.normal(k[1], (fin,), jnp.float32),
        "gn0_beta": 0.1 * jax.random.normal(k[2], (fin,), jnp.float32),
        "conv0_w": 0.1 * jax.random.normal(k[3], (fhidden, fin, 3, 3), jnp.float32),
        "gn1_gamma": 1.0 + 0.1 * jax.random.normal(k[4], (fhidden,), jnp.float32),
        "gn1_beta": 0.1 * jax.random.normal(k[5], (fhidden,), jnp.float32),
        "conv1_w": 0.1 * jax.random.normal(k[6], (fout, fhidden, 3, 3), jnp.float32),
    }
    if fin != fout:
        params["convs_w"] = 0.1 * jax.random.normal(
            k[7], (fout, fin, 1, 1), jnp.float32)
    return params


def _run_case(key, fin, fout, N=2, H=16, W=16):
    fhidden = min(fin, fout)            # fhidden=None path of the module
    kx, kp = jax.random.split(key)
    x = jax.random.normal(kx, (N, fin, H, W), jnp.float32)
    params = _make_params(kp, fin, fout, fhidden)

    out = jax.jit(
        lambda xx: resnet_block_forward(xx, params, fin, fout, fhidden))(x)
    out = jax.block_until_ready(out)

    ref = _reference_forward(x, params, fin, fout, fhidden)
    np.testing.assert_allclose(np.asarray(out.astype(jnp.float32)),
                               np.asarray(ref), rtol=3e-2, atol=3e-2)


if __name__ == "__main__":
    # GroupNorm(fin // 32, fin) requires fin, fhidden to be multiples of 32.
    key = jax.random.PRNGKey(0)
    k0, k1, k2 = jax.random.split(key, 3)
    _run_case(k0, fin=32, fout=64)   # learned 1x1 shortcut, groups = 1
    _run_case(k1, fin=32, fout=32)   # identity shortcut,    groups = 1
    _run_case(k2, fin=64, fout=64)   # identity shortcut,    groups = 2 (one-hot GN path)
    print("KERNEL_OK")
</pallas_src>

<mosaic_0001>
module attributes {stable_mosaic.version = 11 : i64} {
  func.func @_resnet_block_kernel(%arg0: i32, %arg1: memref<1x256x32xbf16, #tpu.memory_space<vmem>>, %arg2: memref<1x32xf32, #tpu.memory_space<vmem>>, %arg3: memref<1x32xf32, #tpu.memory_space<vmem>>, %arg4: memref<288x32xbf16, #tpu.memory_space<vmem>>, %arg5: memref<1x32xf32, #tpu.memory_space<vmem>>, %arg6: memref<1x32xf32, #tpu.memory_space<vmem>>, %arg7: memref<288x128xbf16, #tpu.memory_space<vmem>>, %arg8: memref<32x128xbf16, #tpu.memory_space<vmem>>, %arg9: memref<1x256x128xbf16, #tpu.memory_space<vmem>>, %arg10: memref<288x96xbf16, #tpu.memory_space<vmem>>) attributes {dimension_semantics = [#tpu.dimension_semantics<parallel>], iteration_bounds = array<i64: 2>, scalar_prefetch = 0 : i64, scratch_operands = 1 : i64, tpu.core_type = #tpu.core_type<tc>, window_params = [{transform_indices = @transform_0, window_bounds = array<i64: 1, 256, 32>}, {pipeline_mode = #tpu.pipeline_mode<synchronous>, transform_indices = @transform_1, window_bounds = array<i64: 1, 32>}, {pipeline_mode = #tpu.pipeline_mode<synchronous>, transform_indices = @transform_2, window_bounds = array<i64: 1, 32>}, {pipeline_mode = #tpu.pipeline_mode<synchronous>, transform_indices = @transform_3, window_bounds = array<i64: 288, 32>}, {pipeline_mode = #tpu.pipeline_mode<synchronous>, transform_indices = @transform_4, window_bounds = array<i64: 1, 32>}, {pipeline_mode = #tpu.pipeline_mode<synchronous>, transform_indices = @transform_5, window_bounds = array<i64: 1, 32>}, {pipeline_mode = #tpu.pipeline_mode<synchronous>, transform_indices = @transform_6, window_bounds = array<i64: 288, 128>}, {pipeline_mode = #tpu.pipeline_mode<synchronous>, transform_indices = @transform_7, window_bounds = array<i64: 32, 128>}, {transform_indices = @transform_8, window_bounds = array<i64: 1, 256, 128>}]} {
    %c0 = arith.constant 0 : index
    %c0_0 = arith.constant 0 : index
    %c0_1 = arith.constant 0 : index
    %0 = vector.load %arg1[%c0, %c0_0, %c0_1] : memref<1x256x32xbf16, #tpu.memory_space<vmem>>, vector<1x256x32xbf16>
    %1 = vector.shape_cast %0 : vector<1x256x32xbf16> to vector<256x32xbf16>
    %2 = arith.extf %1 : vector<256x32xbf16> to vector<256x32xf32>
    %cst = arith.constant 0.000000e+00 : bf16
    %3 = vector.broadcast %cst : bf16 to vector<16x96xbf16>
    %c0_2 = arith.constant 0 : index
    %c0_3 = arith.constant 0 : index
    %4 = vector.load %arg10[%c0_2, %c0_3] : memref<288x96xbf16, #tpu.memory_space<vmem>>, vector<16x96xbf16>
    tpu.vector_store %arg10[%c0_2, %c0_3], %3 {strides = array<i32>} : memref<288x96xbf16, #tpu.memory_space<vmem>>, vector<16x96xbf16>,
    %c272 = arith.constant 272 : index
    %c0_4 = arith.constant 0 : index
    %5 = vector.load %arg10[%c272, %c0_4] : memref<288x96xbf16, #tpu.memory_space<vmem>>, vector<16x96xbf16>
    tpu.vector_store %arg10[%c272, %c0_4], %3 {strides = array<i32>} : memref<288x96xbf16, #tpu.memory_space<vmem>>, vector<16x96xbf16>,
    %6 = tpu.iota {dimensions = array<i32: 0>} : vector<256x1xi32>
    %c16_i32 = arith.constant 16 : i32
    %c0_i32 = arith.constant 0 : i32
    %7 = arith.cmpi eq, %c16_i32, %c0_i32 : i32
    %c1_i32 = arith.constant 1 : i32
    %8 = arith.select %7, %c1_i32, %c16_i32 : i32
    %9 = vector.broadcast %8 : i32 to vector<256x1xi32>
    %10 = arith.remsi %6, %9 : vector<256x1xi32>
    %c0_i32_5 = arith.constant 0 : i32
    %11 = vector.broadcast %c0_i32_5 : i32 to vector<256x1xi32>
    %12 = arith.cmpi ne, %10, %11 : vector<256x1xi32>
    %c0_i32_6 = arith.constant 0 : i32
    %13 = vector.broadcast %c0_i32_6 : i32 to vector<256x1xi32>
    %14 = arith.cmpi slt, %10, %13 : vector<256x1xi32>
    %c0_i32_7 = arith.constant 0 : i32
    %15 = arith.cmpi slt, %8, %c0_i32_7 : i32
    %16 = vector.broadcast %15 : i1 to vector<256x1xi1>
    %17 = vector.broadcast %16 : vector<256x1xi1> to vector<256x1xi1>
    %18 = arith.xori %14, %17 : vector<256x1xi1>
    %19 = arith.andi %18, %12 : vector<256x1xi1>
    %20 = vector.broadcast %8 : i32 to vector<256x1xi32>
    %21 = arith.addi %10, %20 : vector<256x1xi32>
    %22 = arith.select %19, %21, %10 : vector<256x1xi1>, vector<256x1xi32>
    %c1_i32_8 = arith.constant 1 : i32
    %23 = vector.broadcast %c1_i32_8 : i32 to vector<256x1xi32>
    %24 = arith.cmpi sge, %22, %23 : vector<256x1xi32>
    %c15_i32 = arith.constant 15 : i32
    %25 = vector.broadcast %c15_i32 : i32 to vector<256x1xi32>
    %26 = arith.cmpi slt, %22, %25 : vector<256x1xi32>
    %c0_9 = arith.constant 0 : index
    %c0_10 = arith.constant 0 : index
    %27 = vector.load %arg8[%c0_9, %c0_10] : memref<32x128xbf16, #tpu.memory_space<vmem>>, vector<32x128xbf16>
    %cst_11 = arith.constant dense<0.000000e+00> : vector<256x128xf32>
    %28 = tpu.matmul %1, %27, %cst_11 {dimension_numbers = #tpu.dot_dimension_numbers<[1], [0], [0], [1], [0, 0, 1, 1], [], []>} : vector<256x32xbf16>, vector<32x128xbf16>, vector<256x128xf32> -> vector<256x128xf32>
    %c0_12 = arith.constant 0 : index
    %c0_13 = arith.constant 0 : index
    %29 = vector.load %arg2[%c0_12, %c0_13] : memref<1x32xf32, #tpu.memory_space<vmem>>, vector<1x32xf32>
    %c0_14 = arith.constant 0 : index
    %c0_15 = arith.constant 0 : index
    %30 = vector.load %arg3[%c0_14, %c0_15] : memref<1x32xf32, #tpu.memory_space<vmem>>, vector<1x32xf32>
    %cst_16 = arith.constant dense<0.000000e+00> : vector<32xf32>
    %31 = vector.multi_reduction <add>, %2, %cst_16 [0] : vector<256x32xf32> to vector<32xf32>
    %32 = vector.shape_cast %31 : vector<32xf32> to vector<1x32xf32>
    %33 = arith.mulf %2, %2 : vector<256x32xf32>
    %cst_17 = arith.constant dense<0.000000e+00> : vector<32xf32>
    %34 = vector.multi_reduction <add>, %33, %cst_17 [0] : vector<256x32xf32> to vector<32xf32>
    %35 = vector.shape_cast %34 : vector<32xf32> to vector<1x32xf32>
    %36 = tpu.concatenate %32, %35 in 0 : vector<1x32xf32>, vector<1x32xf32> -> vector<2x32xf32>
    %cst_18 = arith.constant dense<0.000000e+00> : vector<2xf32>
    %37 = vector.multi_reduction <add>, %36, %cst_18 [1] : vector<2x32xf32> to vector<2xf32>
    %38 = vector.shape_cast %37 : vector<2xf32> to vector<2x1xf32>
    %39 = vector.extract_strided_slice %38 {offsets = [0, 0], sizes = [1, 1], strides = [1, 1]} : vector<2x1xf32> to vector<1x1xf32>
    %cst_19 = arith.constant 8.192000e+03 : f32
    %40 = vector.broadcast %cst_19 : f32 to vector<1x1xf32>
    %41 = arith.divf %39, %40 : vector<1x1xf32>
    %42 = vector.extract_strided_slice %38 {offsets = [1, 0], sizes = [1, 1], strides = [1, 1]} : vector<2x1xf32> to vector<1x1xf32>
    %cst_20 = arith.constant 8.192000e+03 : f32
    %43 = vector.broadcast %cst_20 : f32 to vector<1x1xf32>
    %44 = arith.divf %42, %43 : vector<1x1xf32>
    %45 = arith.mulf %41, %41 : vector<1x1xf32>
    %46 = arith.subf %44, %45 : vector<1x1xf32>
    %cst_21 = arith.constant 0.000000e+00 : f32
    %47 = vector.broadcast %cst_21 : f32 to vector<1x1xf32>
    %48 = arith.maximumf %46, %47 : vector<1x1xf32>
    %cst_22 = arith.constant 9.99999974E-6 : f32
    %49 = vector.broadcast %cst_22 : f32 to vector<1x1xf32>
    %50 = arith.addf %48, %49 : vector<1x1xf32>
    %51 = math.rsqrt %50 : vector<1x1xf32>
    %52 = vector.broadcast %51 : vector<1x1xf32> to vector<1x32xf32>
    %53 = arith.mulf %52, %29 : vector<1x32xf32>
    %54 = vector.broadcast %41 : vector<1x1xf32> to vector<1x32xf32>
    %55 = arith.mulf %54, %53 : vector<1x32xf32>
    %56 = arith.subf %30, %55 : vector<1x32xf32>
    %57 = vector.broadcast %53 : vector<1x32xf32> to vector<256x32xf32>
    %58 = arith.mulf %2, %57 : vector<256x32xf32>
    %59 = vector.broadcast %56 : vector<1x32xf32> to vector<256x32xf32>
    %60 = arith.addf %58, %59 : vector<256x32xf32>
    %cst_23 = arith.constant 0.000000e+00 : f32
    %61 = vector.broadcast %cst_23 : f32 to vector<256x32xf32>
    %62 = arith.maximumf %60, %61 : vector<256x32xf32>
    %c1_i32_24 = arith.constant 1 : i32
    %63 = tpu.dynamic_rotate %62 by %c1_i32_24 dim 0 : vector<256x32xf32>, i32 -> vector<256x32xf32>
    %cst_25 = arith.constant 0.000000e+00 : f32
    %64 = vector.shape_cast %24 : vector<256x1xi1> to vector<256x1xi1>
    %65 = vector.broadcast %64 : vector<256x1xi1> to vector<256x32xi1>
    %66 = vector.broadcast %cst_25 : f32 to vector<256x32xf32>
    %67 = arith.select %65, %63, %66 : vector<256x32xi1>, vector<256x32xf32>
    %c255_i32 = arith.constant 255 : i32
    %68 = tpu.dynamic_rotate %62 by %c255_i32 dim 0 : vector<256x32xf32>, i32 -> vector<256x32xf32>
    %cst_26 = arith.constant 0.000000e+00 : f32
    %69 = vector.shape_cast %26 : vector<256x1xi1> to vector<256x1xi1>
    %70 = vector.broadcast %69 : vector<256x1xi1> to vector<256x32xi1>
    %71 = vector.broadcast %cst_26 : f32 to vector<256x32xf32>
    %72 = arith.select %70, %68, %71 : vector<256x32xi1>, vector<256x32xf32>
    %73 = tpu.concatenate %67, %62, %72 in 1 : vector<256x32xf32>, vector<256x32xf32>, vector<256x32xf32> -> vector<256x96xf32>
    %74 = arith.truncf %73 : vector<256x96xf32> to vector<256x96xbf16>
    %c16 = arith.constant 16 : index
    %c0_27 = arith.constant 0 : index
    %75 = vector.load %arg10[%c16, %c0_27] : memref<288x96xbf16, #tpu.memory_space<vmem>>, vector<256x96xbf16>
    tpu.vector_store %arg10[%c16, %c0_27], %74 {strides = array<i32>} : memref<288x96xbf16, #tpu.memory_space<vmem>>, vector<256x96xbf16>,
    %c0_28 = arith.constant 0 : index
    %c0_29 = arith.constant 0 : index
    %76 = vector.load %arg10[%c0_28, %c0_29] : memref<288x96xbf16, #tpu.memory_space<vmem>>, vector<256x96xbf16>
    %c16_30 = arith.constant 16 : index
    %c0_31 = arith.constant 0 : index
    %77 = vector.load %arg10[%c16_30, %c0_31] : memref<288x96xbf16, #tpu.memory_space<vmem>>, vector<256x96xbf16>
    %c32 = arith.constant 32 : index
    %c0_32 = arith.constant 0 : index
    %78 = vector.load %arg10[%c32, %c0_32] : memref<288x96xbf16, #tpu.memory_space<vmem>>, vector<256x96xbf16>
    %79 = tpu.concatenate %76, %77, %78 in 1 : vector<256x96xbf16>, vector<256x96xbf16>, vector<256x96xbf16> -> vector<256x288xbf16>
    %c0_33 = arith.constant 0 : index
    %c0_34 = arith.constant 0 : index
    %80 = vector.load %arg4[%c0_33, %c0_34] : memref<288x32xbf16, #tpu.memory_space<vmem>>, vector<288x32xbf16>
    %cst_35 = arith.constant dense<0.000000e+00> : vector<256x32xf32>
    %81 = tpu.matmul %79, %80, %cst_35 {dimension_numbers = #tpu.dot_dimension_numbers<[1], [0], [0], [1], [0, 0, 1, 1], [], []>} : vector<256x288xbf16>, vector<288x32xbf16>, vector<256x32xf32> -> vector<256x32xf32>
    %c0_36 = arith.constant 0 : index
    %c0_37 = arith.constant 0 : index
    %82 = vector.load %arg5[%c0_36, %c0_37] : memref<1x32xf32, #tpu.memory_space<vmem>>, vector<1x32xf32>
    %c0_38 = arith.constant 0 : index
    %c0_39 = arith.constant 0 : index
    %83 = vector.load %arg6[%c0_38, %c0_39] : memref<1x32xf32, #tpu.memory_space<vmem>>, vector<1x32xf32>
    %cst_40 = arith.constant dense<0.000000e+00> : vector<32xf32>
    %84 = vector.multi_reduction <add>, %81, %cst_40 [0] : vector<256x32xf32> to vector<32xf32>
    %85 = vector.shape_cast %84 : vector<32xf32> to vector<1x32xf32>
    %86 = arith.mulf %81, %81 : vector<256x32xf32>
    %cst_41 = arith.constant dense<0.000000e+00> : vector<32xf32>
    %87 = vector.multi_reduction <add>, %86, %cst_41 [0] : vector<256x32xf32> to vector<32xf32>
    %88 = vector.shape_cast %87 : vector<32xf32> to vector<1x32xf32>
    %89 = tpu.concatenate %85, %88 in 0 : vector<1x32xf32>, vector<1x32xf32> -> vector<2x32xf32>
    %cst_42 = arith.constant dense<0.000000e+00> : vector<2xf32>
    %90 = vector.multi_reduction <add>, %89, %cst_42 [1] : vector<2x32xf32> to vector<2xf32>
    %91 = vector.shape_cast %90 : vector<2xf32> to vector<2x1xf32>
    %92 = vector.extract_strided_slice %91 {offsets = [0, 0], sizes = [1, 1], strides = [1, 1]} : vector<2x1xf32> to vector<1x1xf32>
    %cst_43 = arith.constant 8.192000e+03 : f32
    %93 = vector.broadcast %cst_43 : f32 to vector<1x1xf32>
    %94 = arith.divf %92, %93 : vector<1x1xf32>
    %95 = vector.extract_strided_slice %91 {offsets = [1, 0], sizes = [1, 1], strides = [1, 1]} : vector<2x1xf32> to vector<1x1xf32>
    %cst_44 = arith.constant 8.192000e+03 : f32
    %96 = vector.broadcast %cst_44 : f32 to vector<1x1xf32>
    %97 = arith.divf %95, %96 : vector<1x1xf32>
    %98 = arith.mulf %94, %94 : vector<1x1xf32>
    %99 = arith.subf %97, %98 : vector<1x1xf32>
    %cst_45 = arith.constant 0.000000e+00 : f32
    %100 = vector.broadcast %cst_45 : f32 to vector<1x1xf32>
    %101 = arith.maximumf %99, %100 : vector<1x1xf32>
    %cst_46 = arith.constant 9.99999974E-6 : f32
    %102 = vector.broadcast %cst_46 : f32 to vector<1x1xf32>
    %103 = arith.addf %101, %102 : vector<1x1xf32>
    %104 = math.rsqrt %103 : vector<1x1xf32>
    %105 = vector.broadcast %104 : vector<1x1xf32> to vector<1x32xf32>
    %106 = arith.mulf %105, %82 : vector<1x32xf32>
    %107 = vector.broadcast %94 : vector<1x1xf32> to vector<1x32xf32>
    %108 = arith.mulf %107, %106 : vector<1x32xf32>
    %109 = arith.subf %83, %108 : vector<1x32xf32>
    %110 = vector.broadcast %106 : vector<1x32xf32> to vector<256x32xf32>
    %111 = arith.mulf %81, %110 : vector<256x32xf32>
    %112 = vector.broadcast %109 : vector<1x32xf32> to vector<256x32xf32>
    %113 = arith.addf %111, %112 : vector<256x32xf32>
    %cst_47 = arith.constant 0.000000e+00 : f32
    %114 = vector.broadcast %cst_47 : f32 to vector<256x32xf32>
    %115 = arith.maximumf %113, %114 : vector<256x32xf32>
    %c1_i32_48 = arith.constant 1 : i32
    %116 = tpu.dynamic_rotate %115 by %c1_i32_48 dim 0 : vector<256x32xf32>, i32 -> vector<256x32xf32>
    %cst_49 = arith.constant 0.000000e+00 : f32
    %117 = vector.shape_cast %24 : vector<256x1xi1> to vector<256x1xi1>
    %118 = vector.broadcast %117 : vector<256x1xi1> to vector<256x32xi1>
    %119 = vector.broadcast %cst_49 : f32 to vector<256x32xf32>
    %120 = arith.select %118, %116, %119 : vector<256x32xi1>, vector<256x32xf32>
    %c255_i32_50 = arith.constant 255 : i32
    %121 = tpu.dynamic_rotate %115 by %c255_i32_50 dim 0 : vector<256x32xf32>, i32 -> vector<256x32xf32>
    %cst_51 = arith.constant 0.000000e+00 : f32
    %122 = vector.shape_cast %26 : vector<256x1xi1> to vector<256x1xi1>
    %123 = vector.broadcast %122 : vector<256x1xi1> to vector<256x32xi1>
    %124 = vector.broadcast %cst_51 : f32 to vector<256x32xf32>
    %125 = arith.select %123, %121, %124 : vector<256x32xi1>, vector<256x32xf32>
    %126 = tpu.concatenate %120, %115, %125 in 1 : vector<256x32xf32>, vector<256x32xf32>, vector<256x32xf32> -> vector<256x96xf32>
    %127 = arith.truncf %126 : vector<256x96xf32> to vector<256x96xbf16>
    %c16_52 = arith.constant 16 : index
    %c0_53 = arith.constant 0 : index
    %128 = vector.load %arg10[%c16_52, %c0_53] : memref<288x96xbf16, #tpu.memory_space<vmem>>, vector<256x96xbf16>
    tpu.vector_store %arg10[%c16_52, %c0_53], %127 {strides = array<i32>} : memref<288x96xbf16, #tpu.memory_space<vmem>>, vector<256x96xbf16>,
    %c0_54 = arith.constant 0 : index
    %c0_55 = arith.constant 0 : index
    %129 = vector.load %arg10[%c0_54, %c0_55] : memref<288x96xbf16, #tpu.memory_space<vmem>>, vector<256x96xbf16>
    %c16_56 = arith.constant 16 : index
    %c0_57 = arith.constant 0 : index
    %130 = vector.load %arg10[%c16_56, %c0_57] : memref<288x96xbf16, #tpu.memory_space<vmem>>, vector<256x96xbf16>
    %c32_58 = arith.constant 32 : index
    %c0_59 = arith.constant 0 : index
    %131 = vector.load %arg10[%c32_58, %c0_59] : memref<288x96xbf16, #tpu.memory_space<vmem>>, vector<256x96xbf16>
    %132 = tpu.concatenate %129, %130, %131 in 1 : vector<256x96xbf16>, vector<256x96xbf16>, vector<256x96xbf16> -> vector<256x288xbf16>
    %c0_60 = arith.constant 0 : index
    %c0_61 = arith.constant 0 : index
    %133 = vector.load %arg7[%c0_60, %c0_61] : memref<288x128xbf16, #tpu.memory_space<vmem>>, vector<288x128xbf16>
    %cst_62 = arith.constant dense<0.000000e+00> : vector<256x128xf32>
    %134 = tpu.matmul %132, %133, %cst_62 {dimension_numbers = #tpu.dot_dimension_numbers<[1], [0], [0], [1], [0, 0, 1, 1], [], []>} : vector<256x288xbf16>, vector<288x128xbf16>, vector<256x128xf32> -> vector<256x128xf32>
    %135 = arith.addf %28, %134 : vector<256x128xf32>
    %136 = arith.truncf %135 : vector<256x128xf32> to vector<256x128xbf16>
    %c0_63 = arith.constant 0 : index
    %c0_64 = arith.constant 0 : index
    %c0_65 = arith.constant 0 : index
    %137 = vector.load %arg9[%c0_63, %c0_64, %c0_65] : memref<1x256x128xbf16, #tpu.memory_space<vmem>>, vector<1x256x128xbf16>
    %138 = vector.shape_cast %137 : vector<1x256x128xbf16> to vector<256x128xbf16>
    %139 = vector.shape_cast %136 : vector<256x128xbf16> to vector<1x256x128xbf16>
    tpu.vector_store %arg9[%c0_63, %c0_64, %c0_65], %139 {strides = array<i32>} : memref<1x256x128xbf16, #tpu.memory_space<vmem>>, vector<1x256x128xbf16>,
    return
  }
  func.func @transform_0(%arg0: i32) -> (i32, i32, i32) {
    %c0_i32 = arith.constant 0 : i32
    %c0_i32_0 = arith.constant 0 : i32
    %c0_i32_1 = arith.constant 0 : i32
    return %arg0, %c0_i32, %c0_i32_0 : i32, i32, i32
  }
  func.func @transform_1(%arg0: i32) -> (i32, i32) {
    %c0_i32 = arith.constant 0 : i32
    %c0_i32_0 = arith.constant 0 : i32
    %c0_i32_1 = arith.constant 0 : i32
    return %c0_i32, %c0_i32_0 : i32, i32
  }
  func.func @transform_2(%arg0: i32) -> (i32, i32) {
    %c0_i32 = arith.constant 0 : i32
    %c0_i32_0 = arith.constant 0 : i32
    %c0_i32_1 = arith.constant 0 : i32
    return %c0_i32, %c0_i32_0 : i32, i32
  }
  func.func @transform_3(%arg0: i32) -> (i32, i32) {
    %c0_i32 = arith.constant 0 : i32
    %c0_i32_0 = arith.constant 0 : i32
    %c0_i32_1 = arith.constant 0 : i32
    return %c0_i32, %c0_i32_0 : i32, i32
  }
  func.func @transform_4(%arg0: i32) -> (i32, i32) {
    %c0_i32 = arith.constant 0 : i32
    %c0_i32_0 = arith.constant 0 : i32
    %c0_i32_1 = arith.constant 0 : i32
    return %c0_i32, %c0_i32_0 : i32, i32
  }
  func.func @transform_5(%arg0: i32) -> (i32, i32) {
    %c0_i32 = arith.constant 0 : i32
    %c0_i32_0 = arith.constant 0 : i32
    %c0_i32_1 = arith.constant 0 : i32
    return %c0_i32, %c0_i32_0 : i32, i32
  }
  func.func @transform_6(%arg0: i32) -> (i32, i32) {
    %c0_i32 = arith.constant 0 : i32
    %c0_i32_0 = arith.constant 0 : i32
    %c0_i32_1 = arith.constant 0 : i32
    return %c0_i32, %c0_i32_0 : i32, i32
  }
  func.func @transform_7(%arg0: i32) -> (i32, i32) {
    %c0_i32 = arith.constant 0 : i32
    %c0_i32_0 = arith.constant 0 : i32
    %c0_i32_1 = arith.constant 0 : i32
    return %c0_i32, %c0_i32_0 : i32, i32
  }
  func.func @transform_8(%arg0: i32) -> (i32, i32, i32) {
    %c0_i32 = arith.constant 0 : i32
    %c0_i32_0 = arith.constant 0 : i32
    %c0_i32_1 = arith.constant 0 : i32
    return %arg0, %c0_i32, %c0_i32_0 : i32, i32, i32
  }
}

</mosaic_0001>

<bundles_post_ra>
// kernel: _lambda_.1
= control target key start
LH: loop header
LB: loop body
LE: loop exit
PB: predicated region body
PF: predicated region fallthrough
CT: control target
= control target key end

     0   :  { %13 = vsyncpa [#allocation4], 0  ;;  %s8823_s0 = inlined_call_operand.vmem [shape: bf16[2,256,32], index: 0, kind: input, shape index: {}]   ;;  %s8824_s1 = inlined_call_operand.vmem [shape: f32[1,32], index: 1, kind: input, shape index: {}]   ;;  %s8825_s2 = inlined_call_operand.vmem [shape: f32[1,32], index: 2, kind: input, shape index: {}]   ;;  %s8826_s3 = inlined_call_operand.vmem [shape: bf16[288,32], index: 3, kind: input, shape index: {}]   ;;  %s8827_s4 = inlined_call_operand.vmem [shape: f32[1,32], index: 4, kind: input, shape index: {}]   ;;  %s8828_s5 = inlined_call_operand.vmem [shape: f32[1,32], index: 5, kind: input, shape index: {}]   ;;  %s8829_s6 = inlined_call_operand.vmem [shape: bf16[288,128], index: 6, kind: input, shape index: {}]   ;;  %s8830_s7 = inlined_call_operand.vmem [shape: bf16[32,128], index: 7, kind: input, shape index: {}]   ;;  %s8831_s8 = inlined_call_operand.hbm [shape: bf16[2,256,128], index: 8, kind: output, shape index: {}]  }
   0x1   :  { %15 = vsyncpa [#allocation4 + $0x1], 0  ;;  %s5745_s27 = smov 0   ;;  %s5747_s28 = smov 0  }
   0x2   :  { %s5749_s29 = smov 0   ;;  %s5751_s30 = smov 0  }
   0x3 LB: > { %s5766_s9 = sadd.s32 4294967295, %s5692_s30   ;;  %s4630_s10 = sadd.s32 4294967294, %s5692_s30   ;;  %s5692_s30 = sphi %s5751_s30, %s9580_s30   ;;  %s5688_s29 = sphi %s5749_s29, %s9579_s29   ;;  %s5684_s28 = sphi %s5747_s28, %s9578_s28   ;;  %s5680_s27 = sphi %s5745_s27, %s9577_s27  }
   0x4   : > { %s5770_s11 = sadd.s32 1, %s5692_s30   ;;  %s201_s12 = sadd.s32 1, %s5688_s29 }
   0x5   : > { %s198_s13 = ssub.s32 %s5692_s30, %s5770_s11  ;;  %p211_p0 = scmp.ne.s32.totalorder %s5688_s29, %s5684_s28 }
   0x6   : > { %p199_p1 = scmp.eq.s32.totalorder %s198_s13, 0  ;;  %p212_p2 = scmp.eq.s32.totalorder %s5766_s9, 1 }
   0x7   : > { %p217_p3 = scmp.ne.s32.totalorder %s5684_s28, %s5680_s27  ;;  %p218_p4 = scmp.eq.s32.totalorder %s4630_s10, 1 }
   0x8   : > { %s5781_s14 = scalar_select %p199_p1, %s5688_s29, %s201_s12  }
   0x9   : > { %p5783_p5 = por %p212_p2, %p211_p0  ;;  %p5787_p6 = por %p218_p4, %p217_p3 }
   0xa   : > { %p4633_p7 = scmp.ge.s32.totalorder %s5692_s30, 1  ;;  %p265_p8 = scmp.lt.s32.totalorder %s5692_s30, 3 }
   0xc   : > { %p266_p9 = pnand %p4633_p7, %p265_p8 }
   0xe   : > { %269 = sbr.rel (%p266_p9) target bundleno = 2155 (0x86b), region = 52 }
  0x13   : > { %p299_p10 = scmp.lt.s32.totalorder %s5766_s9, 1  ;;  %vm8851_vm0 = vcmask 261120   ;;  %vm8843_vm1 = vcmask 1040384   ;;  %vm8836_vm2 = vcmask 254976   ;;  %vm8848_vm3 = vcmask 781312   ;;  %s5696_s26 = smov 32  }
  0x14   : > { %s5697_s10 = smov 64   ;;  %s8916_s12 = smov 96  }
  0x15   : > { %s300_s17 = scalar_select %p299_p10, %s5766_s9, 1 }
  0x16   : > { %s9427_s20 = smov 96  }
  0x17   : > { %s5050_s18 = sshll.u32 %s300_s17, 7 }
  0x18   : > { %s5798_s21 = scalar_lea.vmem %s8823_s0, %s5050_s18 }
  0x19   : > { %v305_v0 = vld [vmem:[%s5798_s21] sm:$0xff]   ;;  %v307_v1 = vld [vmem:[%s5798_s21 + $0x8] sm:$0xff]   ;;  %v309_v5 = vld [vmem:[%s5798_s21 + $0x10] sm:$0xff]  }
  0x1a   : > { %v5802_v2 = vunpack.c.l.bf16 %v305_v0  ;;  %v5804_v3 = vunpack.c.h.bf16 %v305_v0  ;;  %v5806_v4 = vunpack.c.l.bf16 %v307_v1  ;;  %v5809_v6 = vunpack.c.h.bf16 %v307_v1  ;;  %v311_v13 = vld [vmem:[%s5798_s21 + $0x18] sm:$0xff]   ;;  %v313_v20 = vld [vmem:[%s5798_s21 + $0x20] sm:$0xff]   ;;  %v315_v30 = vld [vmem:[%s5798_s21 + $0x28] sm:$0xff]  }
  0x1b   : > { %v5817_v11 = vunpack.c.l.bf16 %v309_v5  ;;  %v5822_v15 = vunpack.c.h.bf16 %v309_v5  ;;  %v5826_v18 = vunpack.c.l.bf16 %v311_v13  ;;  %v5831_v22 = vunpack.c.h.bf16 %v311_v13  ;;  %v317_v43 = vld [vmem:[%s5798_s21 + $0x30] sm:$0xff]   ;;  %v319_v56 = vld [vmem:[%s5798_s21 + $0x38] sm:$0xff]  }
  0x1c   : > { %v862_v7 = vsel %vm8851_vm0, %v5802_v2, 0.0  ;;  %v863_v8 = vsel %vm8851_vm0, %v5804_v3, 0.0  ;;  %v865_v9 = vsel %vm8851_vm0, %v5806_v4, 0.0  ;;  %v867_v12 = vsel %vm8851_vm0, %v5809_v6, 0.0 }
  0x1d   : > { %v864_v10 = vadd.f32 %v863_v8, %v862_v7  ;;  %v869_v16 = vsel %vm8851_vm0, %v5817_v11, 0.0  ;;  %v871_v19 = vsel %vm8851_vm0, %v5822_v15, 0.0  ;;  %v873_v23 = vsel %vm8851_vm0, %v5826_v18, 0.0 }
  0x1e   : > { %v931_v24 = vmul.f32 %v5802_v2, %v5802_v2  ;;  %v932_v26 = vmul.f32 %v5804_v3, %v5804_v3  ;;  %v933_v27 = vmul.f32 %v5806_v4, %v5806_v4  ;;  %v5841_v28 = vunpack.c.l.bf16 %v313_v20 }
  0x1f   : > { %v866_v14 = vadd.f32 %v865_v9, %v864_v10  ;;  %v875_v29 = vsel %vm8851_vm0, %v5831_v22, 0.0  ;;  %v934_v32 = vmul.f32 %v5809_v6, %v5809_v6  ;;  %v5848_v33 = vunpack.c.h.bf16 %v313_v20  ;;  %v321_v9 = vld [vmem:[%s5798_s21 + $0x40] sm:$0xff]  }
  0x20   : > { %v877_v34 = vsel %vm8851_vm0, %v5841_v28, 0.0  ;;  %v963_v35 = vsel %vm8851_vm0, %v931_v24, 0.0  ;;  %v935_v37 = vmul.f32 %v5817_v11, %v5817_v11  ;;  %v964_v38 = vsel %vm8851_vm0, %v932_v26, 0.0  ;;  %v323_v26 = vld [vmem:[%s5798_s21 + $0x48] sm:$0xff]  }
  0x21   : > { %v868_v17 = vadd.f32 %v867_v12, %v866_v14  ;;  %v966_v39 = vsel %vm8851_vm0, %v933_v27, 0.0  ;;  %v5857_v40 = vunpack.c.l.bf16 %v315_v30  ;;  %v879_v41 = vsel %vm8851_vm0, %v5848_v33, 0.0 }
  0x22   : > { %v965_v42 = vadd.f32 %v964_v38, %v963_v35  ;;  %v936_v45 = vmul.f32 %v5822_v15, %v5822_v15  ;;  %v968_v46 = vsel %vm8851_vm0, %v934_v32, 0.0  ;;  %v5865_v47 = vunpack.c.h.bf16 %v315_v30 }
  0x23   : > { %v870_v21 = vadd.f32 %v869_v16, %v868_v17  ;;  %v881_v48 = vsel %vm8851_vm0, %v5857_v40, 0.0  ;;  %v937_v51 = vmul.f32 %v5826_v18, %v5826_v18  ;;  %v970_v52 = vsel %vm8851_vm0, %v935_v37, 0.0 }
  0x24   : > { %v967_v49 = vadd.f32 %v966_v39, %v965_v42  ;;  %v5872_v53 = vunpack.c.l.bf16 %v317_v43  ;;  %v883_v54 = vsel %vm8851_vm0, %v5865_v47, 0.0  ;;  %v938_v58 = vmul.f32 %v5831_v22, %v5831_v22  ;;  %v325_v42 = vld [vmem:[%s5798_s21 + $0x50] sm:$0xff]  }
  0x25   : > { %v872_v25 = vadd.f32 %v871_v19, %v870_v21  ;;  %v972_v59 = vsel %vm8851_vm0, %v936_v45, 0.0  ;;  %v5880_v60 = vunpack.c.h.bf16 %v317_v43  ;;  %v939_v0 = vmul.f32 %v5841_v28, %v5841_v28 }
  0x26   : > { %v969_v55 = vadd.f32 %v968_v46, %v967_v49  ;;  %v885_v61 = vsel %vm8851_vm0, %v5872_v53, 0.0  ;;  %v974_v1 = vsel %vm8851_vm0, %v937_v51, 0.0  ;;  %v5887_v5 = vunpack.c.l.bf16 %v319_v56 }
  0x27   : > { %v874_v31 = vadd.f32 %v873_v23, %v872_v25  ;;  %v887_v7 = vsel %vm8851_vm0, %v5880_v60, 0.0  ;;  %v940_v12 = vmul.f32 %v5848_v33, %v5848_v33  ;;  %v976_v13 = vsel %vm8851_vm0, %v938_v58, 0.0 }
  0x28   : > { %v971_v62 = vadd.f32 %v970_v52, %v969_v55  ;;  %v5895_v14 = vunpack.c.h.bf16 %v319_v56  ;;  %v889_v16 = vsel %vm8851_vm0, %v5887_v5, 0.0  ;;  %v941_v20 = vmul.f32 %v5857_v40, %v5857_v40 }
  0x29   : > { %v876_v36 = vadd.f32 %v875_v29, %v874_v31  ;;  %v978_v21 = vsel %vm8851_vm0, %v939_v0, 0.0  ;;  %v5902_v23 = vunpack.c.l.bf16 %v321_v9  ;;  %v942_v29 = vmul.f32 %v5865_v47, %v5865_v47 }
  0x2a   : > { %v973_v8 = vadd.f32 %v972_v59, %v971_v62  ;;  %v891_v24 = vsel %vm8851_vm0, %v5895_v14, 0.0  ;;  %v980_v30 = vsel %vm8851_vm0, %v940_v12, 0.0  ;;  %v5910_v31 = vunpack.c.h.bf16 %v321_v9 }
  0x2b   : > { %v878_v44 = vadd.f32 %v877_v34, %v876_v36  ;;  %v893_v32 = vsel %vm8851_vm0, %v5902_v23, 0.0  ;;  %v943_v36 = vmul.f32 %v5872_v53, %v5872_v53  ;;  %v982_v37 = vsel %vm8851_vm0, %v941_v20, 0.0 }
  0x2c   : > { %v975_v17 = vadd.f32 %v974_v1, %v973_v8  ;;  %v5917_v38 = vunpack.c.l.bf16 %v323_v26  ;;  %v895_v39 = vsel %vm8851_vm0, %v5910_v31, 0.0  ;;  %v984_v45 = vsel %vm8851_vm0, %v942_v29, 0.0 }
  0x2d   : > { %v880_v50 = vadd.f32 %v879_v41, %v878_v44  ;;  %v944_v44 = vmul.f32 %v5880_v60, %v5880_v60  ;;  %v5925_v46 = vunpack.c.h.bf16 %v323_v26  ;;  %v945_v51 = vmul.f32 %v5887_v5, %v5887_v5 }
  0x2e   : > { %v977_v25 = vadd.f32 %v976_v13, %v975_v17  ;;  %v986_v52 = vsel %vm8851_vm0, %v943_v36, 0.0  ;;  %v946_v59 = vmul.f32 %v5895_v14, %v5895_v14  ;;  %v5940_v62 = vunpack.c.h.bf16 %v325_v42  ;;  %v329_v13 = vld [vmem:[%s5798_s21 + $0x60] sm:$0xff]  }
  0x2f   : > { %v882_v57 = vadd.f32 %v881_v48, %v880_v50  ;;  %v897_v48 = vsel %vm8851_vm0, %v5917_v38, 0.0  ;;  %v899_v55 = vsel %vm8851_vm0, %v5925_v46, 0.0  ;;  %v990_v8 = vsel %vm8851_vm0, %v945_v51, 0.0  ;;  %v333_v51 = vld [vmem:[%s5798_s21 + $0x70] sm:$0xff]  }
  0x30   : > { %v979_v34 = vadd.f32 %v978_v21, %v977_v25  ;;  %v948_v17 = vmul.f32 %v5910_v31, %v5910_v31  ;;  %v949_v26 = vmul.f32 %v5917_v38, %v5917_v38  ;;  %v5962_v29 = vunpack.c.l.bf16 %v329_v13 }
  0x31   : > { %v884_v63 = vadd.f32 %v883_v54, %v882_v57  ;;  %v5932_v54 = vunpack.c.l.bf16 %v325_v42  ;;  %v327_v57 = vld [vmem:[%s5798_s21 + $0x58] sm:$0xff]   ;;  %v950_v36 = vmul.f32 %v5925_v46, %v5925_v46 }
  0x32   : > { %v981_v41 = vadd.f32 %v980_v30, %v979_v34  ;;  %v5947_v9 = vunpack.c.l.bf16 %v327_v57  ;;  %v5955_v20 = vunpack.c.h.bf16 %v327_v57  ;;  %v331_v34 = vld [vmem:[%s5798_s21 + $0x68] sm:$0xff]  }
  0x33   : > { %v886_v10 = vadd.f32 %v885_v61, %v884_v63  ;;  %v988_v61 = vsel %vm8851_vm0, %v944_v44, 0.0  ;;  %v901_v63 = vsel %vm8851_vm0, %v5932_v54, 0.0  ;;  %v951_v44 = vmul.f32 %v5932_v54, %v5932_v54 }
  0x34   : > { %v983_v49 = vadd.f32 %v982_v37, %v981_v41  ;;  %v905_v21 = vsel %vm8851_vm0, %v5947_v9, 0.0  ;;  %v907_v30 = vsel %vm8851_vm0, %v5955_v20, 0.0  ;;  %v996_v37 = vsel %vm8851_vm0, %v948_v17, 0.0 }
  0x35   : > { %v888_v19 = vadd.f32 %v887_v7, %v886_v10  ;;  %v947_v7 = vmul.f32 %v5902_v23, %v5902_v23  ;;  %v903_v10 = vsel %vm8851_vm0, %v5940_v62, 0.0  ;;  %v909_v41 = vsel %vm8851_vm0, %v5962_v29, 0.0 }
  0x36   : > { %v985_v56 = vadd.f32 %v984_v45, %v983_v49  ;;  %v998_v45 = vsel %vm8851_vm0, %v949_v26, 0.0  ;;  %v5985_v57 = vunpack.c.h.bf16 %v331_v34  ;;  %v6000_v17 = vunpack.c.h.bf16 %v333_v51 }
  0x37   : > { %v890_v27 = vadd.f32 %v889_v16, %v888_v19  ;;  %v992_v19 = vsel %vm8851_vm0, %v946_v59, 0.0 }
  0x38   : > { %v987_v0 = vadd.f32 %v986_v52, %v985_v56  ;;  %v1000_v56 = vsel %vm8851_vm0, %v950_v36, 0.0 }
  0x39   : > { %v892_v35 = vadd.f32 %v891_v24, %v890_v27  ;;  %v994_v27 = vsel %vm8851_vm0, %v947_v7, 0.0  ;;  %v915_v7 = vsel %vm8851_vm0, %v5985_v57, 0.0 }
  0x3a   : > { %v989_v12 = vadd.f32 %v988_v61, %v987_v0  ;;  %v1002_v0 = vsel %vm8851_vm0, %v951_v44, 0.0 }
  0x3b   : > { %v894_v43 = vadd.f32 %v893_v32, %v892_v35 }
  0x3c   : > { %v991_v24 = vadd.f32 %v990_v8, %v989_v12 }
  0x3d   : > { %v896_v50 = vadd.f32 %v895_v39, %v894_v43  ;;  %v5970_v39 = vunpack.c.h.bf16 %v329_v13  ;;  %v954_v13 = vmul.f32 %v5955_v20, %v5955_v20 }
  0x3e   : > { %v993_v32 = vadd.f32 %v992_v19, %v991_v24 }
  0x3f   : > { %v898_v58 = vadd.f32 %v897_v48, %v896_v50  ;;  %v5977_v48 = vunpack.c.l.bf16 %v331_v34  ;;  %v911_v49 = vsel %vm8851_vm0, %v5970_v39, 0.0  ;;  %v1008_v36 = vsel %vm8851_vm0, %v954_v13, 0.0 }
  0x40   : > { %v995_v42 = vadd.f32 %v994_v27, %v993_v32 }
  0x41   : > { %v900_v1 = vadd.f32 %v899_v55, %v898_v58  ;;  %v952_v55 = vmul.f32 %v5940_v62, %v5940_v62  ;;  %v913_v58 = vsel %vm8851_vm0, %v5977_v48, 0.0  ;;  %v957_v44 = vmul.f32 %v5977_v48, %v5977_v48 }
  0x42   : > { %v997_v50 = vadd.f32 %v996_v37, %v995_v42 }
  0x43   : > { %v902_v16 = vadd.f32 %v901_v63, %v900_v1  ;;  %v953_v63 = vmul.f32 %v5947_v9, %v5947_v9  ;;  %v5992_v1 = vunpack.c.l.bf16 %v333_v51 }
  0x44   : > { %v999_v59 = vadd.f32 %v998_v45, %v997_v50 }
  0x45   : > { %v904_v25 = vadd.f32 %v903_v10, %v902_v16  ;;  %v335_v10 = vld [vmem:[%s5798_s21 + $0x78] sm:$0xff]   ;;  %v1004_v16 = vsel %vm8851_vm0, %v952_v55, 0.0  ;;  %v917_v19 = vsel %vm8851_vm0, %v5992_v1, 0.0  ;;  %v1006_v26 = vsel %vm8851_vm0, %v953_v63, 0.0 }
  0x46   : > { %v1001_v8 = vadd.f32 %v1000_v56, %v999_v59  ;;  %v6007_v27 = vunpack.c.l.bf16 %v335_v10  ;;  %v6014_v37 = vunpack.c.h.bf16 %v335_v10  ;;  %v959_v59 = vmul.f32 %v5992_v1, %v5992_v1 }
  0x47   : > { %v906_v35 = vadd.f32 %v905_v21, %v904_v25  ;;  %v955_v25 = vmul.f32 %v5962_v29, %v5962_v29 }
  0x48   : > { %v1003_v21 = vadd.f32 %v1002_v0, %v1001_v8  ;;  %v960_v0 = vmul.f32 %v6000_v17, %v6000_v17  ;;  %v1018_v13 = vsel %vm8851_vm0, %v959_v59, 0.0 }
  0x49   : > { %v908_v43 = vadd.f32 %v907_v30, %v906_v35  ;;  %v919_v30 = vsel %vm8851_vm0, %v6000_v17, 0.0  ;;  %v956_v35 = vmul.f32 %v5970_v39, %v5970_v39  ;;  %v1010_v45 = vsel %vm8851_vm0, %v955_v25, 0.0 }
  0x4a   : > { %v1005_v32 = vadd.f32 %v1004_v16, %v1003_v21  ;;  %v1020_v21 = vsel %vm8851_vm0, %v960_v0, 0.0  ;;  %v5695_v0 = vmov 0  }
  0x4b   : > { %v910_v52 = vadd.f32 %v909_v41, %v908_v43  ;;  %v921_v41 = vsel %vm8851_vm0, %v6007_v27, 0.0  ;;  %v1012_v55 = vsel %vm8851_vm0, %v956_v35, 0.0  ;;  %5300 = vset.pattern.permute.xlu0 %v5695_v0  ;;  %370 = vst.msk [vmem:[#allocation2] sm:$0xf] %vm8848_vm3, %v5695_v0  ;;  %5461 = vset.pattern.permute.xlu2 %v5695_v0 }
  0x4c   : > { %v1007_v42 = vadd.f32 %v1006_v26, %v1005_v32  ;;  %371 = vst.msk [vmem:[#allocation2 + $0x4] sm:$0xf] %vm8848_vm3, %v5695_v0 }
  0x4d   : > { %v912_v61 = vadd.f32 %v911_v49, %v910_v52  ;;  %v923_v49 = vsel %vm8851_vm0, %v6014_v37, 0.0  ;;  %v958_v52 = vmul.f32 %v5985_v57, %v5985_v57  ;;  %372 = vst.msk [vmem:[#allocation2 + $0x88] sm:$0xf] %vm8848_vm3, %v5695_v0 }
  0x4e   : > { %v1009_v50 = vadd.f32 %v1008_v36, %v1007_v42  ;;  %373 = vst.msk [vmem:[#allocation2 + $0x8c] sm:$0xf] %vm8848_vm3, %v5695_v0  ;;  %v860_v0 = vld [vmem:[%s8825_s2] sm:$0x1] }
  0x4f   : > { %v914_v12 = vadd.f32 %v913_v58, %v912_v61  ;;  %v1014_v61 = vsel %vm8851_vm0, %v957_v44, 0.0 }
  0x50   : > { %v1011_v56 = vadd.f32 %v1010_v45, %v1009_v50 }
  0x51   : > { %v916_v24 = vadd.f32 %v915_v7, %v914_v12  ;;  %v1016_v7 = vsel %vm8851_vm0, %v958_v52, 0.0  ;;  %v961_v12 = vmul.f32 %v6007_v27, %v6007_v27 }
  0x52   : > { %v1013_v63 = vadd.f32 %v1012_v55, %v1011_v56 }
  0x53   : > { %v918_v34 = vadd.f32 %v917_v19, %v916_v24  ;;  %v962_v19 = vmul.f32 %v6014_v37, %v6014_v37  ;;  %v1022_v26 = vsel %vm8851_vm0, %v961_v12, 0.0 }
  0x54   : > { %v1015_v10 = vadd.f32 %v1014_v61, %v1013_v63 }
  0x55   : > { %v920_v43 = vadd.f32 %v919_v30, %v918_v34  ;;  %v1024_v32 = vsel %vm8851_vm0, %v962_v19, 0.0 }
  0x56   : > { %v1017_v16 = vadd.f32 %v1016_v7, %v1015_v10 }
  0x57   : > { %v922_v51 = vadd.f32 %v921_v41, %v920_v43 }
  0x58   : > { %v1019_v25 = vadd.f32 %v1018_v13, %v1017_v16 }
  0x59   : > { %v924_v58 = vadd.f32 %v923_v49, %v922_v51 }
  0x5a   : > { %v1021_v30 = vadd.f32 %v1020_v21, %v1019_v25 }
  0x5b   : > { %v925_v8 = vrot.slane %v924_v58, 4 }
  0x5c   : > { %v1023_v35 = vadd.f32 %v1022_v26, %v1021_v30 }
  0x5d   : > { %v926_v24 = vadd.f32 %v925_v8, %v924_v58  ;;  %v5694_v58 = vmov 8192.0  }
  0x5e   : > { %v1025_v36 = vadd.f32 %v1024_v32, %v1023_v35  ;;  %5624 = vrcp.f32 %v5694_v58 }
  0x5f   : > { %v927_v34 = vrot.slane %v926_v24, 2 }
  0x60   : > { %v1026_v42 = vrot.slane %v1025_v36, 4 }
  0x61   : > { %v928_v41 = vadd.f32 %v927_v34, %v926_v24 }
  0x62   : > { %v1027_v43 = vadd.f32 %v1026_v42, %v1025_v36  ;;  %v374_v42 = vlaneseq }
  0x63   : > { %v929_v44 = vrot.slane %v928_v41, 1 }
  0x64   : > { %v1028_v45 = vrot.slane %v1027_v43, 2  ;;  %v5625_v59 = vpop.eup %5624 }
  0x65   : > { %v930_v50 = vadd.f32 %v929_v44, %v928_v41  ;;  %v1039_v61 = vmul.f32 8192.0, %v5625_v59  ;;  %vm1043_vm4 = vweird.f32 %v5625_v59  ;;  %v6052_v44 = vshrl.u32 %v374_v42, 7 }
  0x66   : > { %v1029_v49 = vadd.f32 %v1028_v45, %v1027_v43  ;;  %v5622_v43 = vld [vmem:[%s8824_s1] ss:$0 sm:$0xff] }
  0x67   : > { %v1040_v63 = vsub.f32 1.0, %v1039_v61  ;;  %8921 = vst [vmem:[#allocation7_spill] sm:$0xff] %v6052_v44  ;;  %v6064_v58 = vadd.s32 104, %v6052_v44  ;;  %vm8857_vm8 = vcmp.lt.s32.totalorder %v6052_v44, 7 }
  0x68   : > { %v1030_v51 = vrot.slane %v1029_v49, 1 }
  0x69   : > { %v1041_v7 = vmul.f32 %v5625_v59, %v1040_v63 }
  0x6a   : > { %v1031_v52 = vadd.f32 %v1030_v51, %v1029_v49  ;;  %v380_v51 = vadd.s32 40, %v6052_v44 }
  0x6b   : > { %v1042_v8 = vadd.f32 %v5625_v59, %v1041_v7 }
  0x6c   : > { %v1033_v55 = vsel %vm8843_vm1, %v930_v50, %v1031_v52  ;;  %v386_v50 = vadd.s32 88, %v6052_v44  ;;  %v378_v52 = vadd.s32 24, %v6052_v44 }
  0x6d   : > { %v1035_v56 = vsel %vm8836_vm2, %v1033_v55, 0.0  ;;  %v6046_v10 = vsel %vm1043_vm4, %v5625_v59, %v1042_v8  ;;  %v6058_v55 = vadd.s32 200, %v6052_v44  ;;  %v6067_v59 = vadd.s32 56, %v6052_v44 }
  0x6e   : > { %1036 = vadd.xlane.f32.xlu0 %v1035_v56  ;;  %8920 = vst [vmem:[#allocation6_spill] sm:$0xff] %v6046_v10  ;;  %v6061_v56 = vadd.s32 8, %v6052_v44  ;;  %v488_v8 = vand.u32 15, %v386_v50 }
  0x70   : > { %vm6096_vm9 = vcmp.lt.s32.totalorder %v488_v8, 15 }
  0xe1   : > { %v1037_v12 = vpop.xlane.xlu0 %1036 }
  0xe2   : > { %v1045_v13 = vmul.f32 %v6046_v10, %v1037_v12  ;;  %v446_v12 = vand.u32 15, %v380_v51 }
  0xe4   : > { %v1046_v16 = vmul.f32 %v1045_v13, %v1045_v13  ;;  %vm6102_vm10 = vcmp.lt.s32.totalorder %v446_v12, 15 }
  0xe6   : > { %v1048_v19 = vrot.slane %v1046_v16, 7  ;;  %v432_v16 = vand.u32 15, %v378_v52 }
  0xe8   : > { %v1050_v21 = vsub.f32 %v1045_v13, %v1048_v19  ;;  %v586_v19 = vand.u32 15, %v6058_v55  ;;  %vm6110_vm11 = vcmp.lt.s32.totalorder %v432_v16, 15 }
  0xea   : > { %v1051_v24 = vmax.f32 %v1050_v21, 0.0  ;;  %v418_v21 = vand.u32 15, %v6061_v56  ;;  %vm6165_vm12 = vcmp.lt.s32.totalorder %v586_v19, 15 }
  0xec   : > { %v1052_v25 = vadd.f32 1e-05, %v1051_v24  ;;  %v502_v24 = vand.u32 15, %v6064_v58  ;;  %vm6190_vm13 = vcmp.lt.s32.totalorder %v418_v21, 15 }
  0xee   : > { %5626 = vrsqrt.f32 %v1052_v25  ;;  %vm1059_vm6 = vweird.f32 %v1052_v25  ;;  %vm6216_vm14 = vcmp.lt.s32.totalorder %v502_v24, 15 }
  0xf4   : > { %v5627_v26 = vpop.eup %5626 }
  0xf5   : > { %v1054_v30 = vmul.f32 %v5627_v26, %v1052_v25  ;;  %vm1060_vm5 = vweird.f32 %v5627_v26  ;;  %v460_v25 = vand.u32 15, %v6067_v59 }
  0xf6   : > { %vm1061_vm7 = vmor %vm1059_vm6, %vm1060_vm5  ;;  %vm8853_vm6 = vcmp.lt.s32.totalorder %v6052_v44, 1 }
  0xf7   : > { %v1055_v32 = vmul.f32 %v5627_v26, %v1054_v30  ;;  %vm6237_vm15 = vcmp.lt.s32.totalorder %v460_v25, 15 }
  0xf9   : > { %v1056_v34 = vmul.f32 0.5, %v1055_v32 }
  0xfb   : > { %v1057_v35 = vsub.f32 1.5, %v1056_v34 }
  0xfd   : > { %v1058_v36 = vmul.f32 %v5627_v26, %v1057_v35 }
  0xff   : > { %v1062_v41 = vsel %vm1061_vm7, %v5627_v26, %v1058_v36 }
 0x100   : > { %1065 = vperm.xlu0 %5300, %v1062_v41  }
 0x172   : > { %v1066_v45 = vpop.permute.xlu0 %1065 }
 0x173   : > { %v1071_v49 = vmul.f32 %v5622_v43, %v1066_v45 }
 0x175   : > { %v1073_v61 = vrot.slane %v1071_v49, 1  ;;  %v6069_v63 = vperm.slane %v1071_v49, 1 }
 0x177   : > { %v1075_v7 = vmul.f32 %v1073_v61, %v1045_v13  ;;  %v1082_v30 = vmul.f32 %v6069_v63, %v5817_v11  ;;  %v1083_v32 = vmul.f32 %v6069_v63, %v5822_v15  ;;  %v6084_v13 = vadd.s32 216, %v6052_v44 }
 0x178   : > { %v1080_v34 = vmul.f32 %v6069_v63, %v5806_v4  ;;  %v1081_v35 = vmul.f32 %v6069_v63, %v5809_v6  ;;  %v1088_v36 = vmul.f32 %v6069_v63, %v5857_v40  ;;  %v1089_v11 = vmul.f32 %v6069_v63, %v5865_v47 }
 0x179   : > { %v1076_v26 = vsub.f32 %v860_v0, %v1075_v7  ;;  %v8922_v15 = vmov 0  ;;  %v1090_v42 = vmul.f32 %v6069_v63, %v5872_v53  ;;  %v8925_v4 = vmov 0 }
 0x17a   : > { %v8923_v15 = vsel %vm6096_vm9, 4294967295, %v8922_v15  ;;  %v8926_v4 = vsel %vm6102_vm10, 4294967295, %v8925_v4  ;;  %v1084_v6 = vmul.f32 %v6069_v63, %v5826_v18  ;;  %v1102_v40 = vmul.f32 %v6069_v63, %v5962_v29 }
 0x17b   : > { %v6094_v41 = vperm.slane %v1076_v26, 0  ;;  %8924 = vst [vmem:[#allocation8_spill] sm:$0xff] %v8923_v15  ;;  %v8928_v47 = vmov 0  ;;  %v1103_v43 = vmul.f32 %v6069_v63, %v5970_v39  ;;  %v1104_v53 = vmul.f32 %v6069_v63, %v5977_v48 }
 0x17c   : > { %8927 = vst [vmem:[#allocation9_spill] sm:$0xff] %v8926_v4  ;;  %v8929_v47 = vsel %vm6110_vm11, 4294967295, %v8928_v47  ;;  %v1078_v45 = vmul.f32 %v6069_v63, %v5802_v2  ;;  %v1079_v49 = vmul.f32 %v6069_v63, %v5804_v3 }
 0x17d   : > { %8930 = vst [vmem:[#allocation10_spill] sm:$0xff] %v8929_v47  ;;  %v1117_v18 = vadd.f32 %v6094_v41, %v1082_v30  ;;  %v1118_v29 = vadd.f32 %v6094_v41, %v1083_v32  ;;  %v1115_v50 = vadd.f32 %v6094_v41, %v1080_v34  ;;  %v1116_v51 = vadd.f32 %v6094_v41, %v1081_v35 }
 0x17e   : > { %v1123_v52 = vadd.f32 %v6094_v41, %v1088_v36  ;;  %v1124_v39 = vadd.f32 %v6094_v41, %v1089_v11  ;;  %v1125_v48 = vadd.f32 %v6094_v41, %v1090_v42  ;;  %v1119_v55 = vadd.f32 %v6094_v41, %v1084_v6 }
 0x17f   : > { %v6130_v2 = vmax.f32 %v1117_v18, 0.0  ;;  %v6132_v61 = vmax.f32 %v1118_v29, 0.0  ;;  %v6134_v3 = vmax.f32 %v1115_v50, 0.0  ;;  %v6136_v0 = vmax.f32 %v1116_v51, 0.0 }
 0x180   : > { %v6138_v7 = vmax.f32 %v1123_v52, 0.0  ;;  %v6140_v8 = vmax.f32 %v1124_v39, 0.0  ;;  %v6142_v12 = vmax.f32 %v1125_v48, 0.0  ;;  %v6144_v16 = vmax.f32 %v1119_v55, 0.0 }
 0x181   : > { %v5311_v26 = vpack.i.bf16 %v6132_v61, %v6130_v2  ;;  %v1091_v30 = vmul.f32 %v6069_v63, %v5880_v60  ;;  %v1092_v32 = vmul.f32 %v6069_v63, %v5887_v5  ;;  %v1085_v34 = vmul.f32 %v6069_v63, %v5831_v22 }
 0x182   : > { %v5301_v35 = vpack.i.bf16 %v6136_v0, %v6134_v3  ;;  %v8832_v36 = vrot.slane %v6138_v7, 1  ;;  %v1349_v11 = vrot.slane %v6140_v8, 1  ;;  %v1086_v42 = vmul.f32 %v6069_v63, %v5841_v28 }
 0x183   : > { %5312 = vrot.lane.b32.xlu2 %v5311_v26, %s5696_s26  ;;  %v1350_v60 = vrot.slane %v6142_v12, 1  ;;  %v1342_v5 = vrot.slane %v6130_v2, 1  ;;  %v1343_v6 = vrot.slane %v6132_v61, 1  ;;  %v8833_v22 = vrot.slane %v6144_v16, 1 }
 0x184   : > { %v8931_v18 = vmov 0  ;;  %5302 = vrot.lane.b32.xlu1 %v5301_v35, %s5696_s26  ;;  %v1391_v28 = vsel %vm8857_vm8, %v8832_v36, %v1349_v11  ;;  %v1340_v29 = vrot.slane %v6134_v3, 1  ;;  %v1341_v50 = vrot.slane %v6136_v0, 1 }
 0x185   : > { %v8932_v18 = vsel %vm6165_vm12, 4294967295, %v8931_v18  ;;  %v1137_v51 = vadd.f32 %v6094_v41, %v1102_v40  ;;  %v1390_v19 = vsel %vm8857_vm8, %v1349_v11, %v1350_v60  ;;  %v1396_v52 = vsel %vm8857_vm8, %v1343_v6, %v8833_v22 }
 0x186   : > { %8933 = vst [vmem:[#allocation11_spill] sm:$0xff] %v8932_v18  ;;  %v1397_v39 = vsel %vm8857_vm8, %v1342_v5, %v1343_v6  ;;  %v1138_v48 = vadd.f32 %v6094_v41, %v1103_v43  ;;  %v8934_v55 = vmov 0  ;;  %v1478_v40 = vsel %vm6096_vm9, %v1390_v19, 0.0 }
 0x187   : > { %v8935_v55 = vsel %vm6190_vm13, 4294967295, %v8934_v55  ;;  %v1472_v26 = vsel %vm6102_vm10, %v1396_v52, 0.0  ;;  %v1398_v35 = vsel %vm8857_vm8, %v1341_v50, %v1342_v5  ;;  %v1399_v11 = vsel %vm8857_vm8, %v1340_v29, %v1341_v50 }
 0x188   : > { %8936 = vst [vmem:[#allocation12_spill] sm:$0xff] %v8935_v55  ;;  %v5361_v6 = vpack.i.bf16 %v1478_v40, %v1391_v28  ;;  %v5326_v43 = vpack.i.bf16 %v1472_v26, %v1397_v39  ;;  %v1470_v56 = vsel %vm6110_vm11, %v1398_v35, 0.0  ;;  %v1139_v21 = vadd.f32 %v6094_v41, %v1104_v53 }
 0x189   : > { %v5306_v36 = vpack.i.bf16 %v1470_v56, %v1399_v11  ;;  %v6205_v22 = vmax.f32 %v1137_v51, 0.0  ;;  %v6207_v19 = vmax.f32 %v1138_v48, 0.0  ;;  %v1113_v52 = vadd.f32 %v6094_v41, %v1078_v45 }
 0x18a   : > { %5362 = vrot.lane.b32.xlu0 %v5361_v6, %s5697_s10  ;;  %v6211_v5 = vmax.f32 %v1139_v21, 0.0  ;;  %v1114_v28 = vadd.f32 %v6094_v41, %v1079_v49  ;;  %v8937_v50 = vmov 0  ;;  %v1126_v53 = vadd.f32 %v6094_v41, %v1091_v30 }
 0x18b   : > { %v8938_v50 = vsel %vm6216_vm14, 4294967295, %v8937_v50  ;;  %v1127_v51 = vadd.f32 %v6094_v41, %v1092_v32  ;;  %v8835_v39 = vrot.slane %v6205_v22, 1  ;;  %v1363_v45 = vrot.slane %v6207_v19, 1  ;;  %5327 = vrot.lane.b32.xlu2 %v5326_v43, %s5697_s10 }
 0x18c   : > { %8939 = vst [vmem:[#allocation13_spill] sm:$0xff] %v8938_v50  ;;  %v6224_v48 = vmax.f32 %v1113_v52, 0.0  ;;  %v1120_v40 = vadd.f32 %v6094_v41, %v1085_v34  ;;  %v1364_v58 = vrot.slane %v6211_v5, 1  ;;  %v6229_v24 = vmax.f32 %v1114_v28, 0.0  ;;  %5307 = vrot.lane.b32.xlu1 %v5306_v36, %s5697_s10 }
 0x18d   : > { %v6231_v49 = vmax.f32 %v1126_v53, 0.0  ;;  %v6233_v26 = vmax.f32 %v1127_v51, 0.0  ;;  %v8940_v30 = vmov 0  ;;  %v1377_v32 = vsel %vm8857_vm8, %v8835_v39, %v1363_v45 }
 0x18e   : > { %v8941_v30 = vsel %vm6237_vm15, 4294967295, %v8940_v30  ;;  %v8834_v34 = vrot.slane %v6224_v48, 1  ;;  %v6247_v35 = vmax.f32 %v1120_v40, 0.0  ;;  %v1121_v11 = vadd.f32 %v6094_v41, %v1086_v42 }
 0x18f   : > { %8942 = vst [vmem:[#allocation14_spill] sm:$0xff] %v8941_v30  ;;  %v1376_v59 = vsel %vm8857_vm8, %v1363_v45, %v1364_v58  ;;  %v1339_v25 = vrot.slane %v6229_v24, 1  ;;  %v600_v36 = vand.u32 15, %v6084_v13  ;;  %v384_v6 = vadd.s32 72, %v6052_v44 }
 0x190   : > { %v1492_v43 = vsel %vm6165_vm12, %v1376_v59, 0.0  ;;  %v1351_v56 = vrot.slane %v6231_v49, 1  ;;  %v1352_v21 = vrot.slane %v6233_v26, 1  ;;  %v1105_v42 = vmul.f32 %v6069_v63, %v5985_v57 }
 0x191   : > { %v5366_v52 = vpack.i.bf16 %v1492_v43, %v1377_v32  ;;  %v1400_v28 = vsel %vm8857_vm8, %v1339_v25, %v1340_v29  ;;  %v1401_v13 = vsel %vm8857_vm8, %v8834_v34, %v1339_v25  ;;  %v6269_v53 = vmax.f32 %v1121_v11, 0.0 }
 0x192   : > { %v1468_v51 = vsel %vm6190_vm13, %v1400_v28, 0.0  ;;  %v1345_v45 = vrot.slane %v6247_v35, 1  ;;  %v1106_v40 = vmul.f32 %v6069_v63, %v5992_v1  ;;  %v1087_v57 = vmul.f32 %v6069_v63, %v5848_v33 }
 0x193   : > { %5367 = vrot.lane.b32.xlu0 %v5366_v52, %s5697_s10  ;;  %v5331_v29 = vpack.i.bf16 %v1468_v51, %v1401_v13  ;;  %v1388_v32 = vsel %vm8857_vm8, %v1351_v56, %v1352_v21  ;;  %v1346_v11 = vrot.slane %v6269_v53, 1  ;;  %v1140_v59 = vadd.f32 %v6094_v41, %v1105_v42 }
 0x194   : > { %v5316_v25 = vpack.i.bf16 %v6229_v24, %v6224_v48  ;;  %v1141_v1 = vadd.f32 %v6094_v41, %v1106_v40  ;;  %v1122_v43 = vadd.f32 %v6094_v41, %v1087_v57  ;;  %v390_v33 = vadd.s32 120, %v6052_v44 }
 0x195   : > { %5332 = vrot.lane.b32.xlu2 %v5331_v29, %s5697_s10  ;;  %v1394_v52 = vsel %vm8857_vm8, %v1345_v45, %v1346_v11  ;;  %v6293_v28 = vmax.f32 %v1140_v59, 0.0  ;;  %v474_v13 = vand.u32 15, %v384_v6  ;;  %v1093_v42 = vmul.f32 %v6069_v63, %v5895_v14 }
 0x196   : > { %5317 = vrot.lane.b32.xlu1 %v5316_v25, %s5696_s26  ;;  %v1389_v51 = vsel %vm8857_vm8, %v1350_v60, %v1351_v56  ;;  %v1480_v40 = vsel %vm6216_vm14, %v1388_v32, 0.0  ;;  %v6304_v57 = vmax.f32 %v1141_v1, 0.0  ;;  %v6306_v29 = vmax.f32 %v1122_v43, 0.0 }
 0x197   : > { %v1365_v59 = vrot.slane %v6293_v28, 1  ;;  %v1094_v6 = vmul.f32 %v6069_v63, %v5902_v23  ;;  %v1128_v14 = vadd.f32 %v6094_v41, %v1093_v42  ;;  %v8943_v25 = vrot.slane %v6144_v16, 1 }
 0x198   : > { %v1474_v60 = vsel %vm6237_vm15, %v1394_v52, 0.0  ;;  %v1366_v56 = vrot.slane %v6304_v57, 1  ;;  %v5376_v32 = vpack.i.bf16 %v1480_v40, %v1389_v51  ;;  %v1347_v1 = vrot.slane %v6306_v29, 1 }
 0x199   : > { %v1395_v34 = vsel %vm8857_vm8, %v8943_v25, %v1345_v45  ;;  %v1129_v43 = vadd.f32 %v6094_v41, %v1094_v6  ;;  %vm6321_vm4 = vcmp.lt.s32.totalorder %v600_v36, 15  ;;  %v8944_v39 = vmov 0 }
 0x19a   : > { %v8945_v39 = vsel %vm6321_vm4, 4294967295, %v8944_v39  ;;  %vm6325_vm5 = vcmp.lt.s32.totalorder %v474_v13, 15  ;;  %v8947_v23 = vmov 0  ;;  %v516_v42 = vand.u32 15, %v390_v33 }
 0x19b   : > { %8946 = vst [vmem:[#allocation15_spill] sm:$0xff] %v8945_v39  ;;  %v8948_v23 = vsel %vm6325_vm5, 4294967295, %v8947_v23  ;;  %5377 = vrot.lane.b32.xlu0 %v5376_v32, %s5697_s10  ;;  %v5336_v45 = vpack.i.bf16 %v1474_v60, %v1395_v34  ;;  %v1374_v52 = vsel %vm8857_vm8, %v1365_v59, %v1366_v56  ;;  %v6334_v51 = vmax.f32 %v1128_v14, 0.0 }
 0x19c   : > { %8949 = vst [vmem:[#allocation16_spill] sm:$0xff] %v8948_v23  ;;  %v6336_v40 = vmax.f32 %v1129_v43, 0.0  ;;  %v1182_v36 = vrot.slane %v6132_v61, 7  ;;  %v1181_v13 = vrot.slane %v6130_v2, 7  ;;  %v5321_v6 = vpack.i.bf16 %v6247_v35, %v6144_v16 }
 0x19d   : > { %v1107_v33 = vmul.f32 %v6069_v63, %v6000_v17  ;;  %v1180_v34 = vrot.slane %v6136_v0, 7  ;;  %v1179_v25 = vrot.slane %v6134_v3, 7  ;;  %5337 = vrot.lane.b32.xlu2 %v5336_v45, %s5697_s10  ;;  %v8950_v14 = vrot.slane %v6138_v7, 1 }
 0x19e   : > { %v1108_v2 = vmul.f32 %v6069_v63, %v6007_v27  ;;  %v1178_v61 = vrot.slane %v6229_v24, 7  ;;  %5322 = vrot.lane.b32.xlu1 %v5321_v6, %s5696_s26  ;;  %v1375_v17 = vsel %vm8857_vm8, %v1364_v58, %v1365_v59  ;;  %v1494_v3 = vsel %vm6321_vm4, %v1374_v52, 0.0 }
 0x19f   : > { %v1392_v60 = vsel %vm8857_vm8, %v1347_v1, %v8950_v14  ;;  %v1142_v0 = vadd.f32 %v6094_v41, %v1107_v33  ;;  %v1353_v32 = vrot.slane %v6334_v51, 1  ;;  %v8837_v43 = vrot.slane %v6336_v40, 1 }
 0x1a0   : > { %v1143_v27 = vadd.f32 %v6094_v41, %v1108_v2  ;;  %v1393_v24 = vsel %vm8857_vm8, %v1346_v11, %v1347_v1  ;;  %v1476_v45 = vsel %vm6325_vm5, %v1392_v60, 0.0  ;;  %v6372_v58 = vsel %vm8853_vm6, %v1181_v13, %v1182_v36 }
 0x1a1   : > { %v5386_v59 = vpack.i.bf16 %v1494_v3, %v1375_v17  ;;  %v404_v52 = vadd.s32 232, %v6052_v44  ;;  %v6377_v6 = vsel %vm8853_vm6, %v1180_v34, %v1181_v13  ;;  %vm6379_vm7 = vcmp.lt.s32.totalorder %v516_v42, 15 }
 0x1a2   : > { %v8951_v33 = vmov 0  ;;  %v6383_v14 = vmax.f32 %v1142_v0, 0.0  ;;  %v6387_v11 = vsel %vm8853_vm6, %v1179_v25, %v1180_v34  ;;  %v5346_v1 = vpack.i.bf16 %v1476_v45, %v1393_v24 }
 0x1a3   : > { %v8952_v33 = vsel %vm6379_vm7, 4294967295, %v8951_v33  ;;  %5387 = vrot.lane.b32.xlu0 %v5386_v59, %s5697_s10  ;;  %v1386_v60 = vsel %vm8857_vm8, %v1353_v32, %v8837_v43  ;;  %v6394_v13 = vmax.f32 %v1143_v27, 0.0  ;;  %v6398_v42 = vsel %vm8853_vm6, %v1178_v61, %v1179_v25 }
 0x1a4   : > { %8953 = vst [vmem:[#allocation17_spill] sm:$0xff] %v8952_v33  ;;  %v1186_v2 = vrot.slane %v6306_v29, 7  ;;  %v5341_v34 = vpack.i.bf16 %v6306_v29, %v6269_v53  ;;  %v614_v17 = vand.u32 15, %v404_v52  ;;  %v1109_v3 = vmul.f32 %v6069_v63, %v6014_v37 }
 0x1a5   : > { %5347 = vrot.lane.b32.xlu2 %v5346_v1, %s5697_s10  ;;  %v1177_v0 = vrot.slane %v6224_v48, 7  ;;  %v1387_v25 = vsel %vm8857_vm8, %v1352_v21, %v1353_v32  ;;  %v1482_v27 = vsel %vm6379_vm7, %v1386_v60, 0.0  ;;  %v1367_v29 = vrot.slane %v6383_v14, 1 }
 0x1a6   : > { %5342 = vrot.lane.b32.xlu1 %v5341_v34, %s5696_s26  ;;  %v1187_v24 = vrot.slane %v6138_v7, 7  ;;  %v8840_v45 = vrot.slane %v6394_v13, 1  ;;  %v1144_v37 = vadd.f32 %v6094_v41, %v1109_v3  ;;  %v8838_v52 = vrot.slane %v6140_v8, 7 }
 0x1a7   : > { %v6420_v59 = vsel %vm8853_vm6, %v1177_v0, %v1178_v61  ;;  %v1183_v32 = vrot.slane %v6144_v16, 7  ;;  %v5396_v1 = vpack.i.bf16 %v1482_v27, %v1387_v25  ;;  %v1184_v61 = vrot.slane %v6247_v35, 7 }
 0x1a8   : > { %v6425_v21 = vsel %vm8853_vm6, %v1186_v2, %v1187_v24  ;;  %v6428_v60 = vmax.f32 %v1144_v37, 0.0  ;;  %v6434_v34 = vsel %vm8853_vm6, %v1187_v24, %v8838_v52  ;;  %v5351_v3 = vpack.i.bf16 %v6140_v8, %v6138_v7 }
 0x1a9   : > { %vm6439_vm2 = vcmp.lt.s32.totalorder %v614_v17, 15  ;;  %v8954_v43 = vmov 0  ;;  %v6445_v16 = vsel %vm8853_vm6, %v1182_v36, %v1183_v32  ;;  %v1101_v25 = vmul.f32 %v6069_v63, %v5955_v20 }
 0x1aa   : > { %v8955_v43 = vsel %vm6439_vm2, 4294967295, %v8954_v43  ;;  %v1372_v35 = vsel %vm8857_vm8, %v1367_v29, %v8840_v45  ;;  %v1095_v7 = vmul.f32 %v6069_v63, %v5910_v31  ;;  %v8839_v17 = vrot.slane %v6428_v60, 7 }
 0x1ab   : > { %8956 = vst [vmem:[#allocation18_spill] sm:$0xff] %v8955_v43  ;;  %5397 = vrot.lane.b32.xlu0 %v5396_v1, %s5697_s10  ;;  %v6459_v27 = vsel %vm8853_vm6, %v1183_v32, %v1184_v61  ;;  %v1136_v36 = vadd.f32 %v6094_v41, %v1101_v25  ;;  %v1201_v20 = vrot.slane %v6205_v22, 7  ;;  %v1202_v24 = vrot.slane %v6207_v19, 7 }
 0x1ac   : > { %v1130_v37 = vadd.f32 %v6094_v41, %v1095_v7  ;;  %v6470_v31 = vsel %vm8853_vm6, %v8839_v17, %v1177_v0  ;;  %v1373_v32 = vsel %vm8857_vm8, %v1366_v56, %v1367_v29  ;;  %v1496_v1 = vsel %vm6439_vm2, %v1372_v35, 0.0 }
 0x1ad   : > { %5352 = vrot.lane.b32.xlu2 %v5351_v3, %s5696_s26  ;;  %v6478_v25 = vmax.f32 %v1136_v36, 0.0  ;;  %v6482_v3 = vsel %vm8853_vm6, %v1201_v20, %v1202_v24  ;;  %v1185_v7 = vrot.slane %v6269_v53, 7  ;;  %v1203_v52 = vrot.slane %v6211_v5, 7 }
 0x1ae   : > { %v8841_v0 = vrot.slane %v6293_v28, 7  ;;  %v5406_v35 = vpack.i.bf16 %v1496_v1, %v1373_v32  ;;  %v6506_v17 = vmax.f32 %v1130_v37, 0.0  ;;  %v5356_v1 = vpack.i.bf16 %v6207_v19, %v6205_v22 }
 0x1af   : > { %v6494_v36 = vsel %vm8853_vm6, %v1185_v7, %v1186_v2  ;;  %v6498_v53 = vsel %vm8853_vm6, %v1184_v61, %v1185_v7  ;;  %v8957_v56 = vrot.slane %v6478_v25, 7  ;;  %v6516_v2 = vsel %vm8853_vm6, %v1202_v24, %v1203_v52 }
 0x1b0   : > { %v6504_v45 = vsel %vm8853_vm6, %v1203_v52, %v8841_v0  ;;  %v394_v61 = vadd.s32 152, %v6052_v44  ;;  %v1096_v37 = vmul.f32 %v6069_v63, %v5917_v38  ;;  %v1097_v7 = vmul.f32 %v6069_v63, %v5925_v46 }
 0x1b1   : > { %v6512_v32 = vsel %vm8853_vm6, %v8957_v56, %v1201_v20  ;;  %v1098_v20 = vmul.f32 %v6069_v63, %v5932_v54  ;;  %v8842_v24 = vrot.slane %v6334_v51, 7  ;;  %v1193_v56 = vrot.slane %v6336_v40, 7 }
 0x1b2   : > { %v1131_v52 = vadd.f32 %v6094_v41, %v1096_v37  ;;  %v1132_v19 = vadd.f32 %v6094_v41, %v1097_v7  ;;  %v8844_v38 = vrot.slane %v6506_v17, 7  ;;  %v5381_v46 = vpack.i.bf16 %v6293_v28, %v6211_v5 }
 0x1b3   : > { %5407 = vrot.lane.b32.xlu0 %v5406_v35, %s5697_s10  ;;  %v544_v35 = vand.u32 15, %v394_v61  ;;  %v1133_v29 = vadd.f32 %v6094_v41, %v1098_v20  ;;  %v6543_v54 = vsel %vm8853_vm6, %v8842_v24, %v1193_v56  ;;  %v1099_v61 = vmul.f32 %v6069_v63, %v5940_v62 }
 0x1b4   : > { %v6537_v0 = vmax.f32 %v1131_v52, 0.0  ;;  %v6555_v5 = vsel %vm8853_vm6, %v1193_v56, %v8844_v38  ;;  %v398_v7 = vadd.s32 184, %v6052_v44  ;;  %v5421_v20 = vpack.i.bf16 %v6506_v17, %v6336_v40 }
 0x1b5   : > { %5357 = vrot.lane.b32.xlu2 %v5356_v1, %s5696_s26  ;;  %v6547_v1 = vmax.f32 %v1132_v19, 0.0  ;;  %v6549_v37 = vmax.f32 %v1133_v29, 0.0  ;;  %v1134_v24 = vadd.f32 %v6094_v41, %v1099_v61  ;;  %v1100_v62 = vmul.f32 %v6069_v63, %v5947_v9 }
 0x1b6   : > { %v1356_v52 = vrot.slane %v6537_v0, 1  ;;  %vm6564_vm1 = vcmp.lt.s32.totalorder %v544_v35, 15  ;;  %v8958_v29 = vmov 0  ;;  %v572_v38 = vand.u32 15, %v398_v7 }
 0x1b7   : > { %v8959_v29 = vsel %vm6564_vm1, 4294967295, %v8958_v29  ;;  %v1357_v19 = vrot.slane %v6547_v1, 1  ;;  %v1358_v56 = vrot.slane %v6549_v37, 1  ;;  %v6571_v43 = vmax.f32 %v1134_v24, 0.0 }
 0x1b8   : > { %8960 = vst [vmem:[#allocation19_spill] sm:$0xff] %v8959_v29  ;;  %v1135_v39 = vadd.f32 %v6094_v41, %v1100_v62  ;;  %v1361_v61 = vrot.slane %v6478_v25, 1  ;;  %v392_v18 = vadd.s32 136, %v6052_v44  ;;  %vm6580_vm3 = vcmp.lt.s32.totalorder %v572_v38, 15 }
 0x1b9   : > { %v1382_v9 = vsel %vm8857_vm8, %v1357_v19, %v1358_v56  ;;  %v1383_v63 = vsel %vm8857_vm8, %v1356_v52, %v1357_v19  ;;  %v8961_v35 = vmov 0  ;;  %v1355_v7 = vrot.slane %v6506_v17, 1 }
 0x1ba   : > { %v8962_v35 = vsel %vm6580_vm3, 4294967295, %v8961_v35  ;;  %v1486_v41 = vsel %vm6564_vm1, %v1382_v9, 0.0  ;;  %v8964_v62 = vrot.slane %v6205_v22, 1  ;;  %v530_v50 = vand.u32 15, %v392_v18 }
 0x1bb   : > { %5422 = vrot.lane.b32.xlu0 %v5421_v20, %s5696_s26  ;;  %8963 = vst [vmem:[#allocation20_spill] sm:$0xff] %v8962_v35  ;;  %v6590_v20 = vmax.f32 %v1135_v39, 0.0  ;;  %v6596_v19 = vpack.i.bf16 %v1486_v41, %v1383_v63  ;;  %v8965_v24 = vrot.slane %v6336_v40, 1  ;;  %v406_v63 = vadd.s32 248, %v6052_v44 }
 0x1bc   : > { %v1378_v38 = vsel %vm8857_vm8, %v1361_v61, %v8964_v62  ;;  %vm6610_vm0 = vcmp.lt.s32.totalorder %v530_v50, 15  ;;  %v8966_v41 = vmov 0  ;;  %v1369_v18 = vrot.slane %v6428_v60, 1 }
 0x1bd   : > { %5382 = vrot.lane.b32.xlu2 %v5381_v46, %s5696_s26  ;;  %v1490_v33 = vsel %vm6580_vm3, %v1378_v38, 0.0  ;;  %v1384_v46 = vsel %vm8857_vm8, %v1355_v7, %v1356_v52  ;;  %v1360_v9 = vrot.slane %v6590_v20, 1  ;;  %v1385_v22 = vsel %vm8857_vm8, %v8965_v24, %v1355_v7 }
 0x1be   : > { %v8967_v41 = vsel %vm6610_vm0, 4294967295, %v8966_v41  ;;  %v1484_v7 = vsel %vm6610_vm0, %v1384_v46, 0.0  ;;  %v628_v24 = vand.u32 15, %v406_v63  ;;  %v396_v50 = vadd.s32 168, %v6052_v44 }
 0x1bf   : > { %8968 = vst [vmem:[#allocation21_spill] sm:$0xff] %v8967_v41  ;;  %v1379_v40 = vsel %vm8857_vm8, %v1360_v9, %v1361_v61  ;;  %v6626_v39 = vpack.i.bf16 %v1484_v7, %v1385_v22  ;;  %v8969_v35 = vrot.slane %v6394_v13, 1  ;;  %v8970_v62 = vmov 0 }
 0x1c0   : > { %v6624_v38 = vpack.i.bf16 %v1490_v33, %v1379_v40  ;;  %vm6632_vm6 = vcmp.lt.s32.totalorder %v628_v24, 15  ;;  %v8973_v61 = vrot.slane %v6224_v48, 1  ;;  %v558_v63 = vand.u32 15, %v396_v50 }
 0x1c1   : > { %v1371_v52 = vsel %vm8857_vm8, %v8969_v35, %v1369_v18  ;;  %v8971_v62 = vsel %vm6632_vm6, 4294967295, %v8970_v62  ;;  %v1359_v33 = vrot.slane %v6571_v43, 1  ;;  %v1205_v40 = vrot.slane %v6304_v57, 7 }
 0x1c2   : > { %8972 = vst [vmem:[#allocation22_spill] sm:$0xff] %v8971_v62  ;;  %v1402_v46 = vsel %vm8857_vm8, %v1369_v18, %v8973_v61  ;;  %v1206_v7 = vrot.slane %v6383_v14, 7  ;;  %vm6647_vm2 = vcmp.lt.s32.totalorder %v558_v63, 15  ;;  %v8974_v24 = vmov 0 }
 0x1c3   : > { %v1498_v22 = vsel %vm6632_vm6, %v1402_v46, 0.0  ;;  %v8975_v24 = vsel %vm6647_vm2, 4294967295, %v8974_v24  ;;  %v1380_v48 = vsel %vm8857_vm8, %v1359_v33, %v1360_v9  ;;  %v1381_v18 = vsel %vm8857_vm8, %v1358_v56, %v1359_v33 }
 0x1c4   : > { %v6645_v35 = vpack.i.bf16 %v1498_v22, %v1371_v52  ;;  %8976 = vst [vmem:[#allocation23_spill] sm:$0xff] %v8975_v24  ;;  %v1488_v50 = vsel %vm6647_vm2, %v1380_v48, 0.0  ;;  %vm8977_vm6 = vcmp.lt.s32.totalorder %v6052_v44, 1  ;;  %v8978_v52 = vrot.slane %v6293_v28, 7 }
 0x1c5   : > { %v6659_v61 = vsel %vm8977_vm6, %v1205_v40, %v1206_v7  ;;  %vm8979_vm4 = vmmov %vm8977_vm6  ;;  %v6667_v63 = vpack.i.bf16 %v1488_v50, %v1381_v18  ;;  %v8860_v9 = vrot.slane %v6231_v49, 7  ;;  %v1191_v22 = vrot.slane %v6233_v26, 7 }
 0x1c6   : > { %v6665_v46 = vsel %vm8979_vm4, %v8978_v52, %v1205_v40  ;;  %v8980_v56 = vrot.slane %v6334_v51, 7  ;;  %vm8981_vm8 = vmmov %vm8979_vm4  ;;  %v1196_v40 = vrot.slane %v6547_v1, 7  ;;  %v1197_v48 = vrot.slane %v6549_v37, 7 }
 0x1c7   : > { %vm8982_vm6 = vmmov %vm8979_vm4  ;;  %v1198_v18 = vrot.slane %v6571_v43, 7  ;;  %v1207_v62 = vrot.slane %v6394_v13, 7  ;;  %v1195_v29 = vrot.slane %v6537_v0, 7  ;;  %v8991_v41 = vrot.slane %v6428_v60, 7 }
 0x1c8   : > { %v6675_v33 = vsel %vm8981_vm8, %v1191_v22, %v8980_v56  ;;  %v6681_v28 = vsel %vm8982_vm6, %v8860_v9, %v1191_v22  ;;  %vm8984_vm12 = vmmov %vm8979_vm4  ;;  %v1199_v56 = vrot.slane %v6590_v20, 7  ;;  %v8986_v22 = vrot.slane %v6478_v25, 7 }
 0x1c9   : > { %v6688_v50 = vsel %vm8979_vm4, %v1197_v48, %v1198_v18  ;;  %v6692_v52 = vsel %vm8984_vm12, %v1196_v40, %v1197_v48  ;;  %vm8987_vm8 = vmmov %vm8979_vm4  ;;  %v6715_v15 = vsel %vm8979_vm4, %v1206_v7, %v1207_v62  ;;  %v8997_v23 = vrot.slane %v6506_v17, 7 }
 0x1ca   : > { %8983 = vst [vmem:[#allocation24_spill] sm:$0xff] %v6688_v50  ;;  %v6700_v9 = vsel %vm8987_vm8, %v1199_v56, %v8986_v22  ;;  %vm8989_vm6 = vmmov %vm8979_vm4 }
 0x1cb   : > { %8985 = vst [vmem:[#allocation25_spill] sm:$0xff] %v6692_v52  ;;  %v6704_v24 = vsel %vm8989_vm6, %v1198_v18, %v1199_v56  ;;  %vm8992_vm12 = vmmov %vm8979_vm4  ;;  %v379_v56 = vadd.s32 32, %v6052_v44 }
 0x1cc   : > { %8988 = vst [vmem:[#allocation26_spill] sm:$0xff] %v6700_v9  ;;  %v6711_v48 = vsel %vm8992_vm12, %v1207_v62, %v8991_v41  ;;  %vm8995_vm3 = vmmov %vm8979_vm4  ;;  %v9000_v41 = vmov 0  ;;  %vm8876_vm12 = vcmask 523264  }
 0x1cd   : > { %8990 = vst [vmem:[#allocation27_spill] sm:$0xff] %v6704_v24  ;;  %v6719_v22 = vsel %vm8995_vm3, %v1195_v29, %v1196_v40  ;;  %vm8998_vm8 = vmmov %vm8995_vm3  ;;  %v439_v4 = vand.u32 15, %v379_v56  ;;  %vm9003_vm3 = vcmask 261120  }
 0x1ce   : > { %8993 = vst [vmem:[#allocation28_spill] sm:$0xff] %v6711_v48  ;;  %v6725_v18 = vsel %vm8998_vm8, %v8997_v23, %v1195_v29  ;;  %vm9004_vm4 = vmmov %vm9003_vm3  ;;  %vm9005_vm8 = vcmask 781312  }
 0x1cf   : > { %8994 = vst [vmem:[#allocation29_spill] sm:$0xff] %v6715_v15  ;;  %vm6728_vm6 = vcmp.ge.s32.totalorder %v439_v4, 1  ;;  %vm9006_vm2 = vmmov %vm9005_vm8 }
 0x1d0   : > { %8996 = vst [vmem:[#allocation30_spill] sm:$0xff] %v6719_v22  ;;  %v9001_v41 = vsel %vm6728_vm6, 4294967295, %v9000_v41  ;;  %v1310_v17 = vsel %vm6728_vm6, %v6377_v6, 0.0  ;;  %v377_v6 = vadd.s32 16, %v6052_v44 }
 0x1d1   : > { %8999 = vst [vmem:[#allocation31_spill] sm:$0xff] %v6725_v18  ;;  %v411_v18 = vand.u32 15, %v6052_v44 }
 0x1d2   : > { %9002 = vst [vmem:[#allocation32_spill] sm:$0xff] %v9001_v41 }
 0x1d3   : > { %vm6767_vm6 = vcmp.ge.s32.totalorder %v411_v18, 1 }
 0x1d4   : > { %v1306_v18 = vsel %vm6767_vm6, %v6470_v31, 0.0 }
 0x1dd   : > { %v5313_v30 = vpop.permute.xlu2 %5312 }
 0x1de   : > { %v5315_v62 = vunpack.i.h.bf16 %v5313_v30  ;;  %v5314_v7 = vunpack.i.l.bf16 %v5313_v30 }
 0x1e0   : > { %v1759_v23 = vsel %vm9003_vm3, %v1310_v17, %v5314_v7  ;;  %v1760_v29 = vsel %vm9004_vm4, %v6372_v58, %v5315_v62  ;;  %v425_v7 = vand.u32 15, %v377_v6  ;;  %v385_v17 = vadd.s32 80, %v6052_v44 }
 0x1e2   : > { %vm6746_vm3 = vcmp.ge.s32.totalorder %v425_v7, 1 }
 0x1e5   : > { %v5328_v55 = vpop.permute.xlu2 %5327 }
 0x1e6   : > { %v5330_v40 = vunpack.i.h.bf16 %v5328_v55  ;;  %v5329_v47 = vunpack.i.l.bf16 %v5328_v55 }
 0x1e8   : > { %v1792_v4 = vsel %vm8876_vm12, %v1759_v23, %v5329_v47  ;;  %v1793_v56 = vsel %vm8876_vm12, %v1760_v29, %v5330_v40  ;;  %v9007_v47 = vmov 0  ;;  %v481_v29 = vand.u32 15, %v385_v17 }
 0x1e9   : > { %v1824_v10 = vpack.c.bf16 %v1792_v4, %v1792_v4  ;;  %v1825_v22 = vpack.c.bf16 %v1793_v56, %v1793_v56  ;;  %v9008_v47 = vsel %vm6746_vm3, 4294967295, %v9007_v47  ;;  %v1308_v4 = vsel %vm6746_vm3, %v6398_v42, 0.0 }
 0x1ea   : > { %9009 = vst [vmem:[#allocation33_spill] sm:$0xff] %v9008_v47  ;;  %v399_v17 = vadd.s32 192, %v6052_v44  ;;  %v9012_v42 = vmov 0  ;;  %v9015_v47 = vmov 0 }
 0x1eb   : > { %1856 = vst.msk [vmem:[#allocation2 + $0x18] sm:$0xf] %vm9005_vm8, %v1824_v10  ;;  %v381_v10 = vadd.s32 48, %v6052_v44  ;;  %vm6763_vm8 = vcmp.ge.s32.totalorder %v481_v29, 1  ;;  %v9016_v47 = vsel %vm6767_vm6, 4294967295, %v9015_v47  ;;  %vm9027_vm6 = vcmask 523264  }
 0x1ec   : > { %1857 = vst.msk [vmem:[#allocation2 + $0x1c] sm:$0xf] %vm9006_vm2, %v1825_v22  ;;  %vm9010_vm2 = vmmov %vm9004_vm4  ;;  %v9013_v42 = vsel %vm6763_vm8, 4294967295, %v9012_v42 }
 0x1ed   : > { %vm9011_vm4 = vmmov %vm9010_vm2  ;;  %v453_v50 = vand.u32 15, %v381_v10  ;;  %9014 = vst [vmem:[#allocation34_spill] sm:$0xff] %v9013_v42 }
 0x1ee   : > { %9017 = vst [vmem:[#allocation35_spill] sm:$0xff] %v9016_v47  ;;  %vm9028_vm1 = vmmov %vm9027_vm6 }
 0x1ef   : > { %v5333_v30 = vpop.permute.xlu2 %5332  ;;  %vm9029_vm0 = vmmov %vm9028_vm1 }
 0x1f0   : > { %vm9030_vm7 = vmmov %vm9029_vm0 }
 0x1f6   : > { %v5303_v55 = vpop.permute.xlu1 %5302 }
 0x1f7   : > { %v6743_v41 = vpop.permute.xlu2 %5337  ;;  %v5305_v62 = vunpack.i.h.bf16 %v5303_v55  ;;  %v5304_v40 = vunpack.i.l.bf16 %v5303_v55 }
 0x1f9   : > { %v1757_v7 = vsel %vm9010_vm2, %v1308_v4, %v5304_v40  ;;  %v1758_v48 = vsel %vm9011_vm4, %v6387_v11, %v5305_v62  ;;  %vm9018_vm2 = vcmask 781312   ;;  %v1316_v11 = vsel %vm6763_vm8, %v6425_v21, 0.0 }
 0x1fa   : > { %vm9019_vm4 = vmmov %vm9018_vm2  ;;  %v579_v62 = vand.u32 15, %v399_v17  ;;  %v5335_v21 = vunpack.i.h.bf16 %v5333_v30 }
 0x1fc   : > { %v5363_v58 = vpop.permute.xlu0 %5362 }
 0x1fd   : > { %v5364_v4 = vunpack.i.l.bf16 %v5363_v58 }
 0x1fe   : > { %v5308_v22 = vpop.permute.xlu1 %5307 }
 0x1ff   : > { %v6750_v23 = vpop.permute.xlu2 %5347  ;;  %v5310_v56 = vunpack.i.h.bf16 %v5308_v22  ;;  %v5309_v6 = vunpack.i.l.bf16 %v5308_v22 }
 0x201   : > { %v1790_v55 = vsel %vm8876_vm12, %v1757_v7, %v5309_v6  ;;  %v1791_v15 = vsel %vm8876_vm12, %v1758_v48, %v5310_v56  ;;  %vm6776_vm12 = vcmp.ge.s32.totalorder %v453_v50, 1  ;;  %v5334_v7 = vunpack.i.l.bf16 %v5333_v30 }
 0x202   : > { %v1822_v52 = vpack.c.bf16 %v1790_v55, %v1790_v55  ;;  %v1823_v9 = vpack.c.bf16 %v1791_v15, %v1791_v15  ;;  %v9020_v15 = vmov 0  ;;  %v401_v30 = vadd.s32 208, %v6052_v44 }
 0x203   : > { %v9021_v15 = vsel %vm6776_vm12, 4294967295, %v9020_v15 }
 0x204   : > { %1854 = vst.msk [vmem:[#allocation2 + $0x10] sm:$0xf] %vm9018_vm2, %v1822_v52  ;;  %v383_v52 = vadd.s32 64, %v6052_v44  ;;  %vm9023_vm2 = vcmask 261120  }
 0x205   : > { %v5368_v22 = vpop.permute.xlu0 %5367  ;;  %1855 = vst.msk [vmem:[#allocation2 + $0x14] sm:$0xf] %vm9019_vm4, %v1823_v9  ;;  %v5365_v9 = vunpack.i.h.bf16 %v5363_v58  ;;  %vm9024_vm4 = vmmov %vm9023_vm2 }
 0x206   : > { %9022 = vst [vmem:[#allocation36_spill] sm:$0xff] %v9021_v15  ;;  %vm9025_vm8 = vmmov %vm9023_vm2 }
 0x207   : > { %v5353_v48 = vpop.permute.xlu2 %5352  ;;  %vm9026_vm3 = vmmov %vm9023_vm2 }
 0x208   : > { %v5318_v40 = vpop.permute.xlu1 %5317  ;;  %v5355_v10 = vunpack.i.h.bf16 %v5353_v48  ;;  %v5354_v29 = vunpack.i.l.bf16 %v5353_v48 }
 0x209   : > { %v5320_v56 = vunpack.i.h.bf16 %v5318_v40  ;;  %v5319_v6 = vunpack.i.l.bf16 %v5318_v40 }
 0x20a   : > { %v1766_v50 = vsel %vm9023_vm2, %v6434_v34, %v5355_v10  ;;  %v1765_v55 = vsel %vm9024_vm4, %v1316_v11, %v5354_v29  ;;  %v1312_v29 = vsel %vm6776_vm12, %v6445_v16, 0.0  ;;  %vm9039_vm4 = vmmov %vm9023_vm2 }
 0x20b   : > { %v1755_v17 = vsel %vm9025_vm8, %v1306_v18, %v5319_v6  ;;  %v1756_v31 = vsel %vm9026_vm3, %v6420_v59, %v5320_v56  ;;  %v1799_v48 = vsel %vm9027_vm6, %v1766_v50, %v5365_v9  ;;  %v1798_v42 = vsel %vm9028_vm1, %v1765_v55, %v5364_v4  ;;  %vm9038_vm6 = vmmov %vm9023_vm2 }
 0x20c   : > { %v1788_v58 = vsel %vm9029_vm0, %v1755_v17, %v5334_v7  ;;  %v1789_v40 = vsel %vm9030_vm7, %v1756_v31, %v5335_v21  ;;  %v1831_v47 = vpack.c.bf16 %v1799_v48, %v1799_v48  ;;  %v1830_v10 = vpack.c.bf16 %v1798_v42, %v1798_v42  ;;  %v6802_v59 = vld [vmem:[#allocation2 + $0x10] sm:$0xff] }
 0x20d   : > { %v1820_v24 = vpack.c.bf16 %v1788_v58, %v1788_v58  ;;  %v1821_v34 = vpack.c.bf16 %v1789_v40, %v1789_v40  ;;  %v6795_v11 = vpop.permute.xlu0 %5377  ;;  %vm6797_vm8 = vcmp.ge.s32.totalorder %v579_v62, 1  ;;  %v9031_v18 = vmov 0  ;;  %2042 = vrot.lane.b32.xlu1 %v6802_v59, %s5697_s10 }
 0x20e   : > { %v9032_v18 = vsel %vm6797_vm8, 4294967295, %v9031_v18  ;;  %vm9034_vm3 = vcmask 781312   ;;  %v467_v4 = vand.u32 15, %v383_v52  ;;  %v593_v6 = vand.u32 15, %v401_v30 }
 0x20f   : > { %9033 = vst [vmem:[#allocation37_spill] sm:$0xff] %v9032_v18  ;;  %vm9035_vm1 = vmmov %vm9034_vm3  ;;  %v5358_v9 = vpop.permute.xlu2 %5357  ;;  %v5369_v21 = vunpack.i.l.bf16 %v5368_v22  ;;  %v5340_v52 = vunpack.i.h.bf16 %v6743_v41  ;;  %v5339_v50 = vunpack.i.l.bf16 %v6743_v41  ;;  %v9045_v41 = vmov 0 }
 0x210   : > { %1863 = vst.msk [vmem:[#allocation2 + $0x34] sm:$0xf] %vm9034_vm3, %v1831_v47  ;;  %vm9036_vm0 = vmmov %vm9035_vm1  ;;  %v5323_v42 = vpop.permute.xlu1 %5322  ;;  %v1330_v47 = vsel %vm6797_vm8, %v6512_v32, 0.0  ;;  %v5360_v62 = vunpack.i.h.bf16 %v5358_v9  ;;  %v5359_v56 = vunpack.i.l.bf16 %v5358_v9  ;;  %vm6827_vm12 = vcmp.ge.s32.totalorder %v467_v4, 1 }
 0x211   : > { %1852 = vst.msk [vmem:[#allocation2 + $0x8] sm:$0xf] %vm9035_vm1, %v1820_v24  ;;  %v5370_v24 = vunpack.i.h.bf16 %v5368_v22  ;;  %vm9037_vm7 = vmmov %vm9036_vm0  ;;  %v5325_v16 = vunpack.i.h.bf16 %v5323_v42  ;;  %v5324_v7 = vunpack.i.l.bf16 %v5323_v42  ;;  %vm9041_vm1 = vcmask 523264  }
 0x212   : > { %1853 = vst.msk [vmem:[#allocation2 + $0xc] sm:$0xf] %vm9036_vm0, %v1821_v34  ;;  %v1780_v55 = vsel %vm9038_vm6, %v6482_v3, %v5360_v62  ;;  %v1779_v17 = vsel %vm9023_vm2, %v1330_v47, %v5359_v56  ;;  %vm9040_vm3 = vmmov %vm9023_vm2  ;;  %v9046_v41 = vsel %vm6827_vm12, 4294967295, %v9045_v41  ;;  %vm6831_vm6 = vcmp.ge.s32.totalorder %v593_v6, 1 }
 0x213   : > { %1862 = vst.msk [vmem:[#allocation2 + $0x30] sm:$0xf] %vm9037_vm7, %v1830_v10  ;;  %v1762_v32 = vsel %vm9039_vm4, %v6459_v27, %v5325_v16  ;;  %v1761_v31 = vsel %vm9040_vm3, %v1312_v29, %v5324_v7  ;;  %v1813_v22 = vsel %vm9041_vm1, %v1780_v55, %v5370_v24  ;;  %vm9042_vm0 = vmmov %vm9041_vm1  ;;  %v9048_v27 = vmov 0 }
 0x214   : > { %v1812_v48 = vsel %vm9042_vm0, %v1779_v17, %v5369_v21  ;;  %vm9043_vm7 = vmmov %vm9042_vm0  ;;  %v1845_v30 = vpack.c.bf16 %v1813_v22, %v1813_v22  ;;  %9047 = vst [vmem:[#allocation38_spill] sm:$0xff] %v9046_v41  ;;  %v9049_v27 = vsel %vm6831_vm6, 4294967295, %v9048_v27  ;;  %vm9051_vm2 = vcmask 781312  }
 0x215   : > { %v1794_v58 = vsel %vm9043_vm7, %v1761_v31, %v5339_v50  ;;  %vm9044_vm8 = vmmov %vm9042_vm0  ;;  %v1844_v10 = vpack.c.bf16 %v1812_v48, %v1812_v48  ;;  %9050 = vst [vmem:[#allocation39_spill] sm:$0xff] %v9049_v27  ;;  %v5388_v29 = vpop.permute.xlu0 %5387  ;;  %v5371_v9 = vpack.i.bf16 %v6231_v49, %v6142_v12  ;;  %v1314_v47 = vsel %vm6827_vm12, %v6498_v53, 0.0 }
 0x216   : > { %v1795_v40 = vsel %vm9044_vm8, %v1762_v32, %v5340_v52  ;;  %v1826_v3 = vpack.c.bf16 %v1794_v58, %v1794_v58  ;;  %1877 = vst.msk [vmem:[#allocation2 + $0x6c] sm:$0xf] %vm9051_vm2, %v1845_v30  ;;  %vm9052_vm4 = vmmov %vm9051_vm2  ;;  %v1332_v56 = vsel %vm6831_vm6, %v6516_v2, 0.0  ;;  %v5390_v16 = vunpack.i.h.bf16 %v5388_v29 }
 0x217   : > { %v1827_v34 = vpack.c.bf16 %v1795_v40, %v1795_v40  ;;  %v5383_v42 = vpop.permute.xlu2 %5382  ;;  %vm9053_vm8 = vmmov %vm9051_vm2  ;;  %5372 = vrot.lane.b32.xlu1 %v5371_v9, %s5696_s26  ;;  %v5389_v7 = vunpack.i.l.bf16 %v5388_v29  ;;  %v5350_v53 = vunpack.i.h.bf16 %v6750_v23  ;;  %v5349_v55 = vunpack.i.l.bf16 %v6750_v23 }
 0x218   : > { %1858 = vst.msk [vmem:[#allocation2 + $0x20] sm:$0xf] %vm9052_vm4, %v1826_v3  ;;  %v5343_v62 = vpop.permute.xlu1 %5342  ;;  %v5385_v6 = vunpack.i.h.bf16 %v5383_v42  ;;  %v5384_v24 = vunpack.i.l.bf16 %v5383_v42  ;;  %vm9054_vm3 = vmmov %vm9051_vm2  ;;  %vm9055_vm1 = vcmask 261120   ;;  %vm9059_vm4 = vcmask 523264   ;;  %v5088_v42 = vld [vmem:[%s8826_s3 + $0x8] sm:$0xff] }
 0x219   : > { %v6839_v4 = vld [vmem:[#allocation2 + $0x8] sm:$0xff]  ;;  %1859 = vst.msk [vmem:[#allocation2 + $0x24] sm:$0xf] %vm9053_vm8, %v1827_v34  ;;  %v5345_v52 = vunpack.i.h.bf16 %v5343_v62  ;;  %v5344_v50 = vunpack.i.l.bf16 %v5343_v62  ;;  %vm9056_vm0 = vmmov %vm9055_vm1  ;;  %v6869_v34 = vld [vmem:[#allocation2 + $0x18] sm:$0xff]  ;;  %v9068_v29 = vpack.i.bf16 %v6334_v51, %v6233_v26  ;;  %v9069_v26 = vpack.i.bf16 %v6571_v43, %v6549_v37 }
 0x21a   : > { %v6849_v21 = vld [vmem:[#allocation2 + $0x30] sm:$0xff]  ;;  %1876 = vst.msk [vmem:[#allocation2 + $0x68] sm:$0xf] %vm9054_vm3, %v1844_v10  ;;  %2005 = vrot.lane.b32.xlu2 %v6839_v4, %s8916_s12  ;;  %v1782_v2 = vsel %vm9055_vm1, %v6504_v45, %v5385_v6  ;;  %v1781_v17 = vsel %vm9056_vm0, %v1332_v56, %v5384_v24  ;;  %vm9057_vm7 = vmmov %vm9056_vm0  ;;  %vm9063_vm1 = vcmask 781312   ;;  %v9067_v10 = vpack.i.bf16 %v6383_v14, %v6304_v57  ;;  %v5094_v57 = vld [vmem:[%s8826_s3 + $0x38] sm:$0xff] }
 0x21b   : > { %2050 = vrot.lane.b32.xlu0 %v6849_v21, %s5697_s10  ;;  %v1764_v32 = vsel %vm9057_vm7, %v6494_v36, %v5345_v52  ;;  %vm9058_vm2 = vmmov %vm9056_vm0  ;;  %v1815_v22 = vsel %vm9059_vm4, %v1782_v2, %v5390_v16  ;;  %2363 = vmatpush.bf16.msra.mxu0 %v5094_v57  ;;  %v9070_v51 = vpack.i.bf16 %v6478_v25, %v6590_v20  ;;  %v5093_v14 = vld [vmem:[%s8826_s3 + $0x30] sm:$0xff]  ;;  %v5092_v43 = vld [vmem:[%s8826_s3 + $0x28] sm:$0xff] }
 0x21c   : > { %v1763_v31 = vsel %vm9058_vm2, %v1314_v47, %v5344_v50  ;;  %vm9060_vm8 = vmmov %vm9059_vm4  ;;  %v1847_v40 = vpack.c.bf16 %v1815_v22, %v1815_v22  ;;  %5237 = vmatpush.bf16.msra.mxu3 %v5094_v57  ;;  %v5091_v25 = vld [vmem:[%s8826_s3 + $0x20] sm:$0xff]  ;;  %v5102_v20 = vld [vmem:[%s8826_s3 + $0x78] sm:$0xff]  ;;  %v9071_v6 = vpack.i.bf16 %v6428_v60, %v6394_v13  ;;  %v9072_v13 = vpack.i.bf16 %v6547_v1, %v6537_v0 }
 0x21d   : > { %v1814_v48 = vsel %vm9060_vm8, %v1781_v17, %v5389_v7  ;;  %vm9061_vm3 = vmmov %vm9059_vm4  ;;  %2452 = vmatpush.bf16.msra.mxu1 %v5102_v20  ;;  %v5099_v47 = vld [vmem:[%s8826_s3 + $0x60] sm:$0xff]  ;;  %v5098_v24 = vld [vmem:[%s8826_s3 + $0x58] sm:$0xff]  ;;  %v6994_v7 = vpop.permute.xlu0 %5397  ;;  %v403_v50 = vadd.s32 224, %v6052_v44  ;;  %vm9076_vm8 = vcmask 261120  }
 0x21e   : > { %v1796_v58 = vsel %vm9061_vm3, %v1763_v31, %v5349_v55  ;;  %vm9062_vm6 = vmmov %vm9061_vm3  ;;  %v1846_v3 = vpack.c.bf16 %v1814_v48, %v1814_v48  ;;  %1879 = vst.msk [vmem:[#allocation2 + $0x74] sm:$0xf] %vm9063_vm1, %v1847_v40  ;;  %v5087_v56 = vld [vmem:[%s8826_s3] sm:$0xff]  ;;  %v5097_v16 = vld [vmem:[%s8826_s3 + $0x50] sm:$0xff] }
 0x21f   : > { %v1797_v23 = vsel %vm9062_vm6, %v1764_v32, %v5350_v53  ;;  %v1828_v45 = vpack.c.bf16 %v1796_v58, %v1796_v58  ;;  %vm9064_vm0 = vmmov %vm9063_vm1  ;;  %2044 = vrot.lane.b32.xlu1 %v6869_v34, %s5697_s10  ;;  %2364 = vmatpush.bf16.msra.mxu0 %v5093_v14  ;;  %v6979_v60 = vld [vmem:[%s8826_s3 + $0x88] sm:$0xff]  ;;  %v6988_v1 = vld [vmem:[%s8826_s3 + $0x80] sm:$0xff]  ;;  %vm8888_vm6 = vcmask 785408   ;;  %v607_v2 = vand.u32 15, %v403_v50 }
 0x220   : > { %v1829_v30 = vpack.c.bf16 %v1797_v23, %v1797_v23  ;;  %vm9065_vm7 = vmmov %vm9064_vm0  ;;  %v6892_v9 = vld [vmem:[#allocation2 + $0x20] sm:$0xff]  ;;  %5238 = vmatpush.bf16.msra.mxu3 %v5093_v14  ;;  %v5096_v0 = vld [vmem:[%s8826_s3 + $0x48] sm:$0xff]  ;;  %2547 = vmatpush.bf16.msra.mxu2 %v6979_v60  ;;  %v9073_v32 = vmov 0  ;;  %vm9078_vm1 = vcmask 523264  }
 0x221   : > { %1860 = vst.msk [vmem:[#allocation2 + $0x28] sm:$0xf] %vm9064_vm0, %v1828_v45  ;;  %v6875_v36 = vld [vmem:[#allocation2 + $0x68] sm:$0xff]  ;;  %vm9066_vm2 = vmmov %vm9064_vm0  ;;  %v5069_v52 = vld [vmem:[#allocation2] sm:$0xff]  ;;  %vm6998_vm4 = vcmp.ge.s32.totalorder %v607_v2, 1 }
 0x222   : > { %1861 = vst.msk [vmem:[#allocation2 + $0x2c] sm:$0xf] %vm9065_vm7, %v1829_v30  ;;  %5402 = vrot.lane.b32.xlu2 %v9067_v10, %s5696_s26  ;;  %v9074_v32 = vsel %vm6998_vm4, 4294967295, %v9073_v32  ;;  %v1334_v40 = vsel %vm6998_vm4, %v6665_v46, 0.0  ;;  %vm9077_vm3 = vmmov %vm9076_vm8 }
 0x223   : > { %1878 = vst.msk [vmem:[#allocation2 + $0x70] sm:$0xf] %vm9066_vm2, %v1846_v3  ;;  %2029 = vrot.lane.b32.xlu0 %v6875_v36, %s8916_s12  ;;  %2365 = vmatpush.bf16.msra.mxu0 %v5092_v43  ;;  %vm9079_vm0 = vmmov %vm9078_vm1 }
 0x224   : > { %5239 = vmatpush.bf16.msra.mxu3 %v5092_v43  ;;  %2548 = vmatpush.bf16.msra.mxu2 %v6988_v1  ;;  %9075 = vst [vmem:[#allocation40_spill] sm:$0xff] %v9074_v32  ;;  %vm9080_vm7 = vmmov %vm9066_vm2 }
 0x225   : > { %v5408_v17 = vpop.permute.xlu0 %5407  ;;  %vm9082_vm4 = vmmov %vm9079_vm0 }
 0x226   : > { %v5410_v58 = vunpack.i.h.bf16 %v5408_v17  ;;  %v5409_v23 = vunpack.i.l.bf16 %v5408_v17 }
 0x227   : > { %5392 = vrot.lane.b32.xlu1 %v9068_v29, %s5696_s26  ;;  %2366 = vmatpush.bf16.msra.mxu0 %v5091_v25 }
 0x228   : > { %5240 = vmatpush.bf16.msra.mxu3 %v5091_v25  ;;  %v1189_v25 = vrot.slane %v6142_v12, 7  ;;  %v5379_v12 = vunpack.i.l.bf16 %v6795_v11 }
 0x229   : > { %v6917_v37 = vld [vmem:[#allocation2 + $0x28] sm:$0xff] }
 0x22a   : > { %2007 = vrot.lane.b32.xlu2 %v6802_v59, %s8916_s12  ;;  %v6951_v62 = vld [vmem:[#allocation2 + $0x70] sm:$0xff] }
 0x22b   : > { %5447 = vrot.lane.b32.xlu0 %v6596_v19, %s5697_s10  ;;  %v5090_v19 = vld [vmem:[%s8826_s3 + $0x18] sm:$0xff] }
 0x22c   : > { %2367 = vmatpush.bf16.msra.mxu0 %v5090_v19  ;;  %5241 = vmatpush.bf16.msra.mxu3 %v5090_v19  ;;  %v391_v19 = vadd.s32 128, %v6052_v44 }
 0x22f   : > { %2046 = vrot.lane.b32.xlu1 %v6892_v9, %s5697_s10 }
 0x232   : > { %5417 = vrot.lane.b32.xlu2 %v6624_v38, %s5697_s10  ;;  %v5089_v38 = vld [vmem:[%s8826_s3 + $0x10] sm:$0xff] }
 0x233   : > { %5452 = vrot.lane.b32.xlu0 %v9069_v26, %s5696_s26  ;;  %2368 = vmatpush.bf16.msra.mxu0 %v5089_v38  ;;  %v387_v26 = vadd.s32 96, %v6052_v44 }
 0x234   : > { %5242 = vmatpush.bf16.msra.mxu3 %v5089_v38  ;;  %v9087_v38 = vrot.slane %v6140_v8, 7 }
 0x235   : > { %v495_v43 = vand.u32 15, %v387_v26 }
 0x237   : > { %5412 = vrot.lane.b32.xlu1 %v9070_v51, %s5696_s26  ;;  %2369 = vmatpush.bf16.msra.mxu0 %v5088_v42 }
 0x238   : > { %5243 = vmatpush.bf16.msra.mxu3 %v5088_v42 }
 0x23a   : > { %5427 = vrot.lane.b32.xlu2 %v6626_v39, %s5697_s10  ;;  %v5101_v39 = vld [vmem:[%s8826_s3 + $0x70] sm:$0xff] }
 0x23b   : > { %2453 = vmatpush.bf16.msra.mxu1 %v5101_v39  ;;  %2370 = vmatpush.bf16.msra.mxu0 %v5087_v56 }
 0x23c   : > { %5244 = vmatpush.bf16.msra.mxu3 %v5087_v56 }
 0x23f   : > { %2048 = vrot.lane.b32.xlu1 %v6917_v37, %s5697_s10 }
 0x240   : > { %5245 = vmatpush.bf16.msrb.mxu3 %v5102_v20  ;;  %v5423_v20 = vpop.permute.xlu0 %5422 }
 0x241   : > { %v5425_v2 = vunpack.i.h.bf16 %v5423_v20  ;;  %v5424_v17 = vunpack.i.l.bf16 %v5423_v20  ;;  %v5400_v20 = vunpack.i.h.bf16 %v6994_v7 }
 0x242   : > { %5437 = vrot.lane.b32.xlu2 %v6645_v35, %s5697_s10  ;;  %v5100_v35 = vld [vmem:[%s8826_s3 + $0x68] sm:$0xff] }
 0x243   : > { %2454 = vmatpush.bf16.msra.mxu1 %v5100_v35 }
 0x244   : > { %5246 = vmatpush.bf16.msrb.mxu3 %v5101_v39  ;;  %v9084_v39 = vmov 0 }
 0x247   : > { %2009 = vrot.lane.b32.xlu1 %v6869_v34, %s8916_s12  ;;  %2455 = vmatpush.bf16.msra.mxu1 %v5099_v47 }
 0x248   : > { %5247 = vmatpush.bf16.msrb.mxu3 %v5100_v35 }
 0x24a   : > { %2011 = vrot.lane.b32.xlu2 %v6892_v9, %s8916_s12 }
 0x24b   : > { %2456 = vmatpush.bf16.msra.mxu1 %v5098_v24 }
 0x24c   : > { %5248 = vmatpush.bf16.msrb.mxu3 %v5099_v47 }
 0x24f   : > { %5432 = vrot.lane.b32.xlu1 %v9071_v6, %s5696_s26  ;;  %2457 = vmatpush.bf16.msra.mxu1 %v5097_v16  ;;  %v5380_v6 = vunpack.i.h.bf16 %v6795_v11 }
 0x250   : > { %5249 = vmatpush.bf16.msrb.mxu3 %v5098_v24  ;;  %v9089_v24 = vrot.slane %v6231_v49, 7  ;;  %v9095_v49 = vmov 0 }
 0x252   : > { %2031 = vrot.lane.b32.xlu2 %v6951_v62, %s8916_s12 }
 0x253   : > { %2458 = vmatpush.bf16.msra.mxu1 %v5096_v0 }
 0x254   : > { %5250 = vmatpush.bf16.msrb.mxu3 %v5097_v16 }
 0x257   : > { %5442 = vrot.lane.b32.xlu1 %v9072_v13, %s5696_s26  ;;  %v523_v13 = vand.u32 15, %v391_v19  ;;  %v5399_v19 = vunpack.i.l.bf16 %v6994_v7 }
 0x258   : > { %5251 = vmatpush.bf16.msrb.mxu3 %v5096_v0 }
 0x25a   : > { %5457 = vrot.lane.b32.xlu2 %v6667_v63, %s5697_s10  ;;  %v5095_v63 = vld [vmem:[%s8826_s3 + $0x40] sm:$0xff] }
 0x25b   : > { %2459 = vmatpush.bf16.msra.mxu1 %v5095_v63 }
 0x25c   : > { %5252 = vmatpush.bf16.msrb.mxu3 %v5095_v63 }
 0x262   : > { %2015 = vrot.lane.b32.xlu2 %v6849_v21, %s8916_s12 }
 0x274   : > { %v2006_v53 = vpop.permute.xlu2 %2005 }
 0x275   : > { %v2077_v55 = vsel %vm8888_vm6, %v5069_v52, %v2006_v53  ;;  %vm9081_vm6 = vmmov %vm9077_vm3 }
 0x276   : > { %2371 = vmatmul.bf16.vlgmr.msra.gmra.mxu0 %v2077_v55 }
 0x27c   : > { %v5403_v31 = vpop.permute.xlu2 %5402 }
 0x27d   : > { %v5405_v22 = vunpack.i.h.bf16 %v5403_v31  ;;  %v5404_v48 = vunpack.i.l.bf16 %v5403_v31  ;;  %v389_v31 = vadd.s32 112, %v6052_v44 }
 0x27f   : > { %v1784_v45 = vsel %vm9076_vm8, %v6659_v61, %v5405_v22  ;;  %v1783_v30 = vsel %vm9077_vm3, %v1334_v40, %v5404_v48  ;;  %v2043_v51 = vpop.permute.xlu1 %2042  ;;  %vm9083_vm8 = vcmask 785408   ;;  %vm7019_vm3 = vcmp.ge.s32.totalorder %v495_v43, 1 }
 0x280   : > { %v1817_v3 = vsel %vm9078_vm1, %v1784_v45, %v5410_v58  ;;  %v1816_v10 = vsel %vm9079_vm0, %v1783_v30, %v5409_v23  ;;  %4781 = vmatmul.msk.bf16.vlgmr.msra.gmra.mxu2 %vm9081_vm6, %v2043_v51  ;;  %v2140_v61 = vsel %vm9082_vm4, %v2006_v53, %v2043_v51  ;;  %v9085_v39 = vsel %vm7019_vm3, 4294967295, %v9084_v39 }
 0x281   : > { %v1849_v29 = vpack.c.bf16 %v1817_v3, %v1817_v3  ;;  %v1848_v57 = vpack.c.bf16 %v1816_v10, %v1816_v10  ;;  %2460 = vmatmul.bf16.vlgmr.msra.gmra.mxu1 %v2140_v61  ;;  %9086 = vst [vmem:[#allocation41_spill] sm:$0xff] %v9085_v39  ;;  %vm9088_vm6 = vcmp.lt.s32.totalorder %v6052_v44, 1  ;;  %vm9091_vm1 = vcmask 261120  }
 0x282   : > { %v1229_v35 = vsel %vm9088_vm6, %v9087_v38, %v1189_v25  ;;  %vm9090_vm4 = vmmov %vm9088_vm6  ;;  %vm9098_vm6 = vcmask 781312   ;;  %v509_v10 = vand.u32 15, %v389_v31  ;;  %v9118_v31 = vld [vmem:[#allocation27_spill] sm:$0xff] }
 0x283   : > { %1881 = vst.msk [vmem:[#allocation2 + $0x7c] sm:$0xf] %vm9080_vm7, %v1849_v29  ;;  %v1228_v16 = vsel %vm9090_vm4, %v1189_v25, %v9089_v24  ;;  %v1318_v8 = vsel %vm7019_vm3, %v1229_v35, 0.0  ;;  %vm9092_vm0 = vmmov %vm9091_vm1  ;;  %vm9093_vm7 = vcmask 523264   ;;  %v397_v24 = vadd.s32 176, %v6052_v44 }
 0x284   : > { %1880 = vst.msk [vmem:[#allocation2 + $0x78] sm:$0xf] %vm9066_vm2, %v1848_v57  ;;  %v2008_v46 = vpop.permute.xlu2 %2007  ;;  %vm9094_vm2 = vmmov %vm9093_vm7 }
 0x285   : > { %v2081_v14 = vsel %vm9083_vm8, %v6839_v4, %v2008_v46  ;;  %vm7043_vm8 = vcmp.ge.s32.totalorder %v523_v13, 1  ;;  %vm9099_vm4 = vmmov %vm9098_vm6  ;;  %v9115_v13 = vmov 0 }
 0x286   : > { %2376 = vmatmul.bf16.gmra.mxu0 %v2081_v14  ;;  %v9096_v49 = vsel %vm7043_vm8, 4294967295, %v9095_v49  ;;  %v1322_v23 = vsel %vm7043_vm8, %v6543_v54, 0.0 }
 0x287   : > { %9097 = vst [vmem:[#allocation42_spill] sm:$0xff] %v9096_v49 }
 0x289   : > { %v5373_v42 = vpop.permute.xlu1 %5372 }
 0x28a   : > { %v5375_v47 = vunpack.i.h.bf16 %v5373_v42  ;;  %v5374_v56 = vunpack.i.l.bf16 %v5373_v42 }
 0x28c   : > { %v7027_v4 = vpop.permute.xlu2 %5417  ;;  %v1768_v0 = vsel %vm9091_vm1, %v1228_v16, %v5375_v47  ;;  %v1767_v63 = vsel %vm9092_vm0, %v1318_v8, %v5374_v56  ;;  %vm9100_vm1 = vmmov %vm9092_vm0  ;;  %v565_v16 = vand.u32 15, %v397_v24  ;;  %v395_v8 = vadd.s32 160, %v6052_v44 }
 0x28d   : > { %v1801_v52 = vsel %vm9093_vm7, %v1768_v0, %v5380_v6  ;;  %v1800_v50 = vsel %vm9094_vm2, %v1767_v63, %v5379_v12  ;;  %v7041_v11 = vpop.permute.xlu0 %2050  ;;  %vm9101_vm0 = vmmov %vm9094_vm2 }
 0x28e   : > { %v1833_v53 = vpack.c.bf16 %v1801_v52, %v1801_v52  ;;  %v1832_v55 = vpack.c.bf16 %v1800_v50, %v1800_v50  ;;  %vm9102_vm7 = vmmov %vm9100_vm1  ;;  %v7103_v52 = vld [vmem:[#allocation2 + $0x78] sm:$0xff] }
 0x28f   : > { %v1772_v30 = vsel %vm9102_vm7, %v6555_v5, %v5425_v2  ;;  %vm9103_vm2 = vmmov %vm9100_vm1  ;;  %v5420_v2 = vunpack.i.h.bf16 %v7027_v4 }
 0x290   : > { %1865 = vst.msk [vmem:[#allocation2 + $0x3c] sm:$0xf] %vm9098_vm6, %v1833_v53  ;;  %v1771_v3 = vsel %vm9103_vm2, %v1322_v23, %v5424_v17  ;;  %vm9104_vm6 = vmmov %vm9101_vm0  ;;  %v5419_v17 = vunpack.i.l.bf16 %v7027_v4 }
 0x291   : > { %1864 = vst.msk [vmem:[#allocation2 + $0x38] sm:$0xf] %vm9099_vm4, %v1832_v55  ;;  %v2045_v22 = vpop.permute.xlu1 %2044  ;;  %vm9105_vm4 = vmmov %vm9101_vm0 }
 0x292   : > { %4782 = vmatmul.msk.bf16.gmra.mxu2 %vm9100_vm1, %v2045_v22  ;;  %v2143_v58 = vsel %vm9101_vm0, %v2008_v46, %v2045_v22  ;;  %vm9106_vm1 = vcmask 781312   ;;  %vm7061_vm0 = vcmp.ge.s32.totalorder %v509_v10, 1  ;;  %v9107_v46 = vmov 0 }
 0x293   : > { %2465 = vmatmul.bf16.gmra.mxu1 %v2143_v58  ;;  %v9108_v46 = vsel %vm7061_vm0, 4294967295, %v9107_v46  ;;  %vm9110_vm7 = vmmov %vm9106_vm1  ;;  %v1320_v38 = vsel %vm7061_vm0, %v6681_v28, 0.0  ;;  %v9119_v58 = vld [vmem:[#allocation26_spill] sm:$0xff] }
 0x294   : > { %v5428_v48 = vpop.permute.xlu2 %5427  ;;  %9109 = vst [vmem:[#allocation43_spill] sm:$0xff] %v9108_v46  ;;  %vm9113_vm8 = vmmov %vm9110_vm7 }
 0x295   : > { %v5430_v40 = vunpack.i.h.bf16 %v5428_v48  ;;  %v5429_v45 = vunpack.i.l.bf16 %v5428_v48  ;;  %v7067_v61 = vpop.permute.xlu0 %2029  ;;  %vm9114_vm0 = vmmov %vm9103_vm2  ;;  %v551_v48 = vand.u32 15, %v395_v8  ;;  %v405_v8 = vadd.s32 240, %v6052_v44 }
 0x297   : > { %v1805_v29 = vsel %vm9104_vm6, %v1772_v30, %v5430_v40  ;;  %v1804_v57 = vsel %vm9105_vm4, %v1771_v3, %v5429_v45  ;;  %vm9111_vm6 = vmmov %vm9103_vm2 }
 0x298   : > { %v1837_v26 = vpack.c.bf16 %v1805_v29, %v1805_v29  ;;  %v1836_v51 = vpack.c.bf16 %v1804_v57, %v1804_v57  ;;  %v7065_v54 = vld [vmem:[#allocation2 + $0x38] sm:$0xff]  ;;  %v9123_v29 = vmov 0 }
 0x299   : > { %v5393_v5 = vpop.permute.xlu1 %5392  ;;  %2052 = vrot.lane.b32.xlu1 %v7065_v54, %s5697_s10  ;;  %2017 = vrot.lane.b32.xlu2 %v7065_v54, %s8916_s12 }
 0x29a   : > { %1869 = vst.msk [vmem:[#allocation2 + $0x4c] sm:$0xf] %vm9106_vm1, %v1837_v26  ;;  %v5395_v14 = vunpack.i.h.bf16 %v5393_v5  ;;  %v5394_v43 = vunpack.i.l.bf16 %v5393_v5  ;;  %vm9112_vm1 = vmmov %vm9105_vm4 }
 0x29b   : > { %1868 = vst.msk [vmem:[#allocation2 + $0x48] sm:$0xf] %vm9110_vm7, %v1836_v51 }
 0x29c   : > { %v7074_v25 = vpop.permute.xlu2 %5437  ;;  %v1770_v35 = vsel %vm9103_vm2, %v6675_v33, %v5395_v14  ;;  %v1769_v42 = vsel %vm9111_vm6, %v1320_v38, %v5394_v43  ;;  %vm7097_vm2 = vcmp.ge.s32.totalorder %v565_v16, 1  ;;  %vm9121_vm6 = vmmov %vm9112_vm1  ;;  %v9127_v43 = vld [vmem:[#allocation25_spill] sm:$0xff] }
 0x29d   : > { %v1803_v47 = vsel %vm9105_vm4, %v1770_v35, %v5400_v20  ;;  %v1802_v56 = vsel %vm9112_vm1, %v1769_v42, %v5399_v19  ;;  %v7094_v28 = vpop.permute.xlu0 %5447  ;;  %v9116_v13 = vsel %vm7097_vm2, 4294967295, %v9115_v13  ;;  %v1328_v22 = vsel %vm7097_vm2, %v9118_v31, 0.0  ;;  %vm9122_vm4 = vmmov %vm9112_vm1  ;;  %v9128_v35 = vld [vmem:[#allocation24_spill] sm:$0xff] }
 0x29e   : > { %v1835_v6 = vpack.c.bf16 %v1803_v47, %v1803_v47  ;;  %v1834_v12 = vpack.c.bf16 %v1802_v56, %v1802_v56  ;;  %9117 = vst [vmem:[#allocation44_spill] sm:$0xff] %v9116_v13  ;;  %vm7123_vm1 = vcmp.ge.s32.totalorder %v551_v48, 1  ;;  %v9138_v31 = vmov 0 }
 0x29f   : > { %v9124_v29 = vsel %vm7123_vm1, 4294967295, %v9123_v29  ;;  %v1326_v20 = vsel %vm7123_vm1, %v9127_v43, 0.0  ;;  %vm9135_vm1 = vcmask 785408  }
 0x2a0   : > { %1867 = vst.msk [vmem:[#allocation2 + $0x44] sm:$0xf] %vm9110_vm7, %v1835_v6 }
 0x2a1   : > { %1866 = vst.msk [vmem:[#allocation2 + $0x40] sm:$0xf] %vm9113_vm8, %v1834_v12  ;;  %v2047_v7 = vpop.permute.xlu1 %2046  ;;  %2013 = vrot.lane.b32.xlu1 %v6917_v37, %s8916_s12  ;;  %vm9120_vm8 = vmmov %vm9114_vm0 }
 0x2a2   : > { %4783 = vmatmul.msk.bf16.gmra.mxu2 %vm9114_vm0, %v2047_v7  ;;  %9125 = vst [vmem:[#allocation27_spill] sm:$0xff] %v9124_v29  ;;  %v7128_v51 = vld [vmem:[#allocation2 + $0x48] sm:$0xff] }
 0x2a4   : > { %v7092_v33 = vpop.permute.xlu2 %2011 }
 0x2a5   : > { %v5453_v45 = vpop.permute.xlu0 %5452 }
 0x2a6   : > { %v5455_v57 = vunpack.i.h.bf16 %v5453_v45  ;;  %v5454_v26 = vunpack.i.l.bf16 %v5453_v45  ;;  %v9143_v45 = vld [vmem:[#allocation28_spill] sm:$0xff] }
 0x2a8   : > { %v7101_v0 = vld [vmem:[#allocation2 + $0x40] sm:$0xff] }
 0x2a9   : > { %v5413_v63 = vpop.permute.xlu1 %5412  ;;  %2054 = vrot.lane.b32.xlu0 %v7101_v0, %s5697_s10  ;;  %2019 = vrot.lane.b32.xlu2 %v7101_v0, %s8916_s12 }
 0x2aa   : > { %v5415_v50 = vunpack.i.h.bf16 %v5413_v63  ;;  %v5414_v53 = vunpack.i.l.bf16 %v5413_v63  ;;  %2033 = vrot.lane.b32.xlu1 %v7103_v52, %s8916_s12 }
 0x2ac   : > { %v7109_v55 = vpop.permute.xlu2 %2031  ;;  %v1778_v23 = vsel %vm9120_vm8, %v9119_v58, %v5415_v50  ;;  %v1777_v40 = vsel %vm9114_vm0, %v1328_v22, %v5414_v53  ;;  %vm9126_vm8 = vmmov %vm9110_vm7  ;;  %v393_v22 = vadd.s32 144, %v6052_v44 }
 0x2ad   : > { %v1810_v30 = vsel %vm9121_vm6, %v1777_v40, %v5419_v17  ;;  %v1811_v3 = vsel %vm9122_vm4, %v1778_v23, %v5420_v2  ;;  %vm9129_vm6 = vmmov %vm9114_vm0  ;;  %v621_v17 = vand.u32 15, %v405_v8  ;;  %v5439_v23 = vunpack.i.l.bf16 %v7074_v25  ;;  %v9142_v40 = vld [vmem:[#allocation29_spill] sm:$0xff] }
 0x2ae   : > { %v1842_v10 = vpack.c.bf16 %v1810_v30, %v1810_v30  ;;  %v1843_v4 = vpack.c.bf16 %v1811_v3, %v1811_v3  ;;  %v1776_v42 = vsel %vm9129_vm6, %v9128_v35, %v5455_v57  ;;  %vm9130_vm4 = vmmov %vm9114_vm0  ;;  %v5450_v35 = vunpack.i.h.bf16 %v7094_v28 }
 0x2af   : > { %v1775_v47 = vsel %vm9130_vm4, %v1326_v20, %v5454_v26  ;;  %vm9136_vm6 = vmmov %vm9135_vm1 }
 0x2b0   : > { %1874 = vst.msk [vmem:[#allocation2 + $0x60] sm:$0xf] %vm9110_vm7, %v1842_v10  ;;  %vm9131_vm7 = vcmask 523264  }
 0x2b1   : > { %1875 = vst.msk [vmem:[#allocation2 + $0x64] sm:$0xf] %vm9126_vm8, %v1843_v4  ;;  %v2049_v5 = vpop.permute.xlu1 %2048  ;;  %2021 = vrot.lane.b32.xlu2 %v7128_v51, %s8916_s12  ;;  %2056 = vrot.lane.b32.xlu0 %v7128_v51, %s5697_s10  ;;  %vm9132_vm8 = vmmov %vm9131_vm7 }
 0x2b2   : > { %4784 = vmatmul.msk.bf16.gmra.mxu2 %vm9114_vm0, %v2049_v5  ;;  %vm9133_vm0 = vcmask 781312   ;;  %vm9137_vm4 = vmmov %vm9131_vm7 }
 0x2b3   : > { %vm9134_vm2 = vmmov %vm9133_vm0 }
 0x2b4   : > { %v5458_v14 = vpop.permute.xlu2 %5457 }
 0x2b5   : > { %v5460_v19 = vunpack.i.h.bf16 %v5458_v14  ;;  %v5459_v38 = vunpack.i.l.bf16 %v5458_v14 }
 0x2b7   : > { %v1809_v56 = vsel %vm9131_vm7, %v1776_v42, %v5460_v19  ;;  %v1808_v6 = vsel %vm9132_vm8, %v1775_v47, %v5459_v38  ;;  %vm7156_vm7 = vcmp.ge.s32.totalorder %v621_v17, 1  ;;  %v5449_v42 = vunpack.i.l.bf16 %v7094_v28  ;;  %v9155_v47 = vld [vmem:[#allocation31_spill] sm:$0xff] }
 0x2b8   : > { %v1841_v12 = vpack.c.bf16 %v1809_v56, %v1809_v56  ;;  %v1840_v24 = vpack.c.bf16 %v1808_v6, %v1808_v6  ;;  %v7145_v16 = vld [vmem:[#allocation2 + $0x60] sm:$0xff]  ;;  %v9139_v31 = vsel %vm7156_vm7, 4294967295, %v9138_v31 }
 0x2b9   : > { %v2010_v63 = vpop.permute.xlu1 %2009  ;;  %v2125_v53 = vsel %vm9136_vm6, %v7145_v16, %v7067_v61  ;;  %9140 = vst [vmem:[#allocation26_spill] sm:$0xff] %v9139_v31 }
 0x2ba   : > { %1873 = vst.msk [vmem:[#allocation2 + $0x5c] sm:$0xf] %vm9133_vm0, %v1841_v12  ;;  %v2085_v50 = vsel %vm9135_vm1, %v6802_v59, %v2010_v63  ;;  %v2146_v2 = vsel %vm9137_vm4, %v2010_v63, %v2047_v7  ;;  %2431 = vmatmul.bf16.vlgmr.msra.gmra.mxu3 %v2125_v53  ;;  %v5440_v7 = vunpack.i.h.bf16 %v7074_v25  ;;  %vm9146_vm0 = vmmov %vm9137_vm4  ;;  %vm9148_vm4 = vcmask 781312   ;;  %v9157_v12 = vld [vmem:[#allocation30_spill] sm:$0xff] }
 0x2bb   : > { %1872 = vst.msk [vmem:[#allocation2 + $0x58] sm:$0xf] %vm9134_vm2, %v1840_v24  ;;  %2381 = vmatmul.bf16.gmra.mxu0 %v2085_v50  ;;  %2470 = vmatmul.bf16.gmra.mxu1 %v2146_v2  ;;  %vm9141_vm2 = vcmask 261120   ;;  %vm9147_vm6 = vmmov %vm9146_vm0  ;;  %v9149_v25 = vmov 0  ;;  %v5086_v2 = vld [vmem:[#allocation2 + $0x88] sm:$0xff] }
 0x2bc   : > { %5253 = vmatpush.bf16.msra.mxu3 %v6979_v60  ;;  %v1336_v60 = vsel %vm7156_vm7, %v9142_v40, 0.0  ;;  %vm9144_vm1 = vmmov %vm9141_vm2 }
 0x2bd   : > { %vm9145_vm8 = vmmov %vm9144_vm1 }
 0x2be   : > { %vm9152_vm3 = vmmov %vm9148_vm4 }
 0x2c0   : > { %5254 = vmatpush.bf16.msra.mxu3 %v6988_v1  ;;  %v537_v1 = vand.u32 15, %v393_v22 }
 0x2c1   : > { %v5433_v59 = vpop.permute.xlu1 %5432 }
 0x2c2   : > { %v5435_v48 = vunpack.i.h.bf16 %v5433_v59  ;;  %v5434_v58 = vunpack.i.l.bf16 %v5433_v59  ;;  %4785 = vmatmul.msk.bf16.gmra.mxu2 %vm9141_vm2, %v7041_v11  ;;  %vm7175_vm2 = vcmp.ge.s32.totalorder %v537_v1, 1 }
 0x2c3   : > { %v9150_v25 = vsel %vm7175_vm2, 4294967295, %v9149_v25  ;;  %v1324_v56 = vsel %vm7175_vm2, %v9155_v47, 0.0 }
 0x2c4   : > { %v1786_v30 = vsel %vm9144_vm1, %v9143_v45, %v5435_v48  ;;  %v1785_v3 = vsel %vm9145_vm8, %v1336_v60, %v5434_v58  ;;  %9151 = vst [vmem:[#allocation25_spill] sm:$0xff] %v9150_v25  ;;  %vm9153_vm1 = vcmask 785408  }
 0x2c5   : > { %v1818_v10 = vsel %vm9146_vm0, %v1785_v3, %v5439_v23  ;;  %v1819_v4 = vsel %vm9147_vm6, %v1786_v30, %v5440_v7  ;;  %v2089_v19 = vsel %vm9153_vm1, %v6869_v34, %v7092_v33  ;;  %vm9154_vm8 = vmmov %vm9153_vm1 }
 0x2c6   : > { %v1850_v57 = vpack.c.bf16 %v1818_v10, %v1818_v10  ;;  %v1851_v26 = vpack.c.bf16 %v1819_v4, %v1819_v4  ;;  %v2129_v38 = vsel %vm9154_vm8, %v6875_v36, %v7109_v55  ;;  %vm9162_vm8 = vcmask 781312  }
 0x2c7   : > { %vm9163_vm7 = vmmov %vm9162_vm8 }
 0x2c8   : > { %1882 = vst.msk [vmem:[#allocation2 + $0x80] sm:$0xf] %vm9148_vm4, %v1850_v57 }
 0x2c9   : > { %1883 = vst.msk [vmem:[#allocation2 + $0x84] sm:$0xf] %vm9152_vm3, %v1851_v26  ;;  %v5443_v14 = vpop.permute.xlu1 %5442  ;;  %vm9156_vm3 = vmmov %vm9146_vm0  ;;  %vm9158_vm0 = vcmask 261120  }
 0x2ca   : > { %v5445_v43 = vunpack.i.h.bf16 %v5443_v14  ;;  %v5444_v20 = vunpack.i.l.bf16 %v5443_v14  ;;  %2436 = vmatmul.bf16.gmra.mxu3 %v2129_v38  ;;  %v2149_v6 = vsel %vm9156_vm3, %v7092_v33, %v2049_v5  ;;  %vm9159_vm6 = vmmov %vm9158_vm0  ;;  %v7209_v5 = vld [vmem:[#allocation2 + $0x58] sm:$0xff] }
 0x2cb   : > { %2386 = vmatmul.bf16.gmra.mxu0 %v2089_v19  ;;  %2475 = vmatmul.bf16.gmra.mxu1 %v2149_v6  ;;  %vm9160_vm4 = vmmov %vm9156_vm3 }
 0x2cc   : > { %v1774_v34 = vsel %vm9158_vm0, %v9157_v12, %v5445_v43  ;;  %v1773_v24 = vsel %vm9159_vm6, %v1324_v56, %v5444_v20  ;;  %vm9161_vm1 = vmmov %vm9156_vm3  ;;  %vm9166_vm3 = vcmask 785408   ;;  %v2016_v43 = vpop.permute.xlu2 %2015 }
 0x2cd   : > { %v1807_v8 = vsel %vm9160_vm4, %v1774_v34, %v5450_v35  ;;  %v1806_v63 = vsel %vm9161_vm1, %v1773_v24, %v5449_v42  ;;  %vm9169_vm4 = vmmov %vm9166_vm3 }
 0x2ce   : > { %v1839_v28 = vpack.c.bf16 %v1807_v8, %v1807_v8  ;;  %v1838_v50 = vpack.c.bf16 %v1806_v63, %v1806_v63 }
 0x2d0   : > { %1871 = vst.msk [vmem:[#allocation2 + $0x54] sm:$0xf] %vm9162_vm8, %v1839_v28  ;;  %v5085_v53 = vld [vmem:[#allocation2 + $0x80] sm:$0xff] }
 0x2d1   : > { %1870 = vst.msk [vmem:[#allocation2 + $0x50] sm:$0xf] %vm9163_vm7, %v1838_v50  ;;  %2035 = vrot.lane.b32.xlu1 %v5085_v53, %s8916_s12  ;;  %vm9165_vm7 = vmmov %vm9158_vm0 }
 0x2d2   : > { %vm9167_vm0 = vmmov %vm9161_vm1 }
 0x2d3   : > { %vm9170_vm1 = vmmov %vm9166_vm3 }
 0x2d4   : > { %vm9171_vm8 = vmmov %vm9167_vm0 }
 0x2d8   : > { %v7201_v33 = vld [vmem:[#allocation2 + $0x50] sm:$0xff] }
 0x2d9   : > { %2023 = vrot.lane.b32.xlu2 %v7201_v33, %s8916_s12  ;;  %2058 = vrot.lane.b32.xlu0 %v7201_v33, %s5697_s10 }
 0x2da   : > { %2066 = vrot.lane.b32.xlu1 %v6951_v62, %s5697_s10 }
 0x2e1   : > { %2025 = vrot.lane.b32.xlu2 %v7209_v5, %s8916_s12  ;;  %2060 = vrot.lane.b32.xlu0 %v7209_v5, %s5697_s10 }
 0x2e2   : > { %2068 = vrot.lane.b32.xlu1 %v7103_v52, %s5697_s10 }
 0x2e9   : > { %2062 = vrot.lane.b32.xlu0 %v7145_v16, %s5697_s10 }
 0x2ea   : > { %2070 = vrot.lane.b32.xlu1 %v5085_v53, %s5697_s10 }
 0x2f1   : > { %2064 = vrot.lane.b32.xlu0 %v6875_v36, %s5697_s10 }
 0x2f2   : > { %2072 = vrot.lane.b32.xlu1 %v5086_v2, %s5697_s10 }
 0x2f3   : > { %v2372_v17 = vpop.f32.mrf.mxu0  ;;  %v2018_v42 = vpop.permute.xlu2 %2017 }
 0x2f9   : > { %2027 = vrot.lane.b32.xlu0 %v7145_v16, %s8916_s12 }
 0x2fb   : > { %v7225_v58 = vpop.f32.mrf.mxu0 }
 0x2fe   : > { %v2461_v22 = vpop.f32.mrf.mxu1 }
 0x2ff   : > { %v2462_v59 = vadd.f32 %v2461_v22, %v2372_v17 }
 0x303   : > { %v2550_v48 = vpop.f32.mrf.mxu2  ;;  %v2377_v36 = vpop.f32.mrf.mxu0 }
 0x304   : > { %v7227_v7 = vadd.f32 %v2550_v48, %v2462_v59  ;;  %v2020_v28 = vpop.permute.xlu2 %2019 }
 0x306   : > { %9164 = vst [vmem:[#allocation24_spill] sm:$0xff] %v7227_v7  ;;  %v7229_v23 = vpop.f32.mrf.mxu1 }
 0x307   : > { %v2464_v29 = vadd.f32 %v7229_v23, %v7225_v58 }
 0x30b   : > { %v2053_v40 = vpop.permute.xlu1 %2052  ;;  %v7231_v60 = vpop.f32.mrf.mxu2 }
 0x30c   : > { %4786 = vmatmul.msk.bf16.gmra.mxu2 %vm9165_vm7, %v2053_v40  ;;  %vm9172_vm7 = vmmov %vm9159_vm6  ;;  %v7252_v38 = vpop.f32.mrf.mxu0  ;;  %v7392_v49 = vadd.f32 %v7231_v60, %v2464_v29  ;;  %v2701_v29 = vmul.f32 %v7227_v7, %v7227_v7 }
 0x30e   : > { %9199 = vst [vmem:[#allocation47_spill] sm:$0xff] %v7392_v49  ;;  %v2702_v41 = vmul.f32 %v7392_v49, %v7392_v49 }
 0x310   : > { %v2466_v45 = vpop.f32.mrf.mxu1 }
 0x311   : > { %v2467_v30 = vadd.f32 %v2466_v45, %v2377_v36  ;;  %v2022_v45 = vpop.permute.xlu2 %2021 }
 0x313   : > { %v2014_v3 = vpop.permute.xlu1 %2013 }
 0x314   : > { %v2093_v1 = vsel %vm9166_vm3, %v6892_v9, %v2014_v3  ;;  %v2152_v10 = vsel %vm9167_vm0, %v2014_v3, %v7041_v11  ;;  %v2097_v9 = vsel %vm9170_vm1, %v6917_v37, %v2016_v43  ;;  %v2155_v11 = vsel %vm9171_vm8, %v2016_v43, %v2053_v40  ;;  %vm9173_vm3 = vmmov %vm9170_vm1 }
 0x315   : > { %v2555_v16 = vpop.f32.mrf.mxu2  ;;  %2391 = vmatmul.bf16.gmra.mxu0 %v2093_v1  ;;  %2480 = vmatmul.bf16.gmra.mxu1 %v2152_v10  ;;  %vm9177_vm8 = vmmov %vm9172_vm7 }
 0x316   : > { %v7238_v4 = vadd.f32 %v2555_v16, %v2467_v30 }
 0x318   : > { %9168 = vst [vmem:[#allocation29_spill] sm:$0xff] %v7238_v4  ;;  %v7254_v35 = vpop.f32.mrf.mxu1 }
 0x319   : > { %v2469_v39 = vadd.f32 %v7254_v35, %v7252_v38  ;;  %v2703_v38 = vmul.f32 %v7238_v4, %v7238_v4 }
 0x31b   : > { %v2055_v57 = vpop.permute.xlu0 %2054 }
 0x31c   : > { %v7240_v26 = vpop.permute.xlu1 %2033  ;;  %4787 = vmatmul.msk.bf16.gmra.mxu2 %vm9159_vm6, %v2055_v57  ;;  %v2158_v47 = vsel %vm9167_vm0, %v2018_v42, %v2055_v57  ;;  %vm9174_vm6 = vmmov %vm9170_vm1 }
 0x31d   : > { %v2133_v14 = vsel %vm9169_vm4, %v6951_v62, %v7240_v26  ;;  %v7249_v19 = vpop.f32.mrf.mxu2  ;;  %v2101_v62 = vsel %vm9173_vm3, %v6849_v21, %v2018_v42  ;;  %v2105_v21 = vsel %vm9174_vm6, %v7065_v54, %v2020_v28  ;;  %vm9175_vm4 = vmmov %vm9170_vm1 }
 0x31e   : > { %2441 = vmatmul.bf16.gmra.mxu3 %v2133_v14  ;;  %vm9176_vm1 = vmmov %vm9167_vm0  ;;  %v7403_v44 = vadd.f32 %v7249_v19, %v2469_v39 }
 0x31f   : > { %vm9180_vm6 = vmmov %vm9177_vm8 }
 0x323   : > { %v2057_v20 = vpop.permute.xlu0 %2056 }
 0x324   : > { %v2161_v2 = vsel %vm9176_vm1, %v2020_v28, %v2057_v20  ;;  %vm9181_vm1 = vmmov %vm9167_vm0 }
 0x325   : > { %2396 = vmatmul.bf16.gmra.mxu0 %v2097_v9  ;;  %2485 = vmatmul.bf16.gmra.mxu1 %v2155_v11  ;;  %v2560_v37 = vpop.f32.mrf.mxu2 }
 0x32c   : > { %4788 = vmatmul.msk.bf16.gmra.mxu2 %vm9172_vm7, %v2057_v20  ;;  %vm9178_vm7 = vmmov %vm9173_vm3 }
 0x32d   : > { %v7263_v8 = vpop.f32.mrf.mxu2  ;;  %v2109_v54 = vsel %vm9178_vm7, %v7101_v0, %v2022_v45  ;;  %vm9179_vm3 = vmmov %vm9167_vm0 }
 0x32e   : > { %vm9183_vm7 = vmmov %vm9180_vm6 }
 0x333   : > { %v2024_v1 = vpop.permute.xlu2 %2023 }
 0x334   : > { %v2113_v57 = vsel %vm9175_vm4, %v7128_v51, %v2024_v1 }
 0x335   : > { %2401 = vmatmul.bf16.gmra.mxu0 %v2101_v62  ;;  %2490 = vmatmul.bf16.gmra.mxu1 %v2158_v47  ;;  %v2565_v48 = vpop.f32.mrf.mxu2 }
 0x338   : > { %v2382_v56 = vpop.f32.mrf.mxu0  ;;  %v2471_v6 = vpop.f32.mrf.mxu1 }
 0x339   : > { %v2472_v12 = vadd.f32 %v2471_v6, %v2382_v56 }
 0x33b   : > { %v7259_v34 = vadd.f32 %v2560_v37, %v2472_v12  ;;  %v2026_v43 = vpop.permute.xlu2 %2025 }
 0x33d   : > { %v7292_v42 = vpop.f32.mrf.mxu2 }
 0x340   : > { %v7261_v24 = vpop.f32.mrf.mxu0  ;;  %v7265_v63 = vpop.f32.mrf.mxu1 }
 0x341   : > { %v2474_v58 = vadd.f32 %v7265_v63, %v7261_v24  ;;  %v2704_v63 = vmul.f32 %v7403_v44, %v7403_v44 }
 0x343   : > { %v2036_v50 = vpop.permute.xlu1 %2035 }
 0x344   : > { %v2137_v53 = vsel %vm9175_vm4, %v7103_v52, %v2036_v50 }
 0x345   : > { %2406 = vmatmul.bf16.gmra.mxu0 %v2105_v21  ;;  %2446 = vmatmul.bf16.gmra.mxu3 %v2137_v53  ;;  %v7295_v37 = vpop.f32.mrf.mxu2  ;;  %v7308_v21 = vpop.f32.mrf.mxu3 }
 0x346   : > { %2495 = vmatmul.bf16.gmra.mxu1 %v2161_v2 }
 0x348   : > { %v2387_v17 = vpop.f32.mrf.mxu0  ;;  %v2476_v22 = vpop.f32.mrf.mxu1 }
 0x349   : > { %v2477_v59 = vadd.f32 %v2476_v22, %v2387_v17 }
 0x34b   : > { %v7272_v40 = vadd.f32 %v2565_v48, %v2477_v59  ;;  %v2059_v36 = vpop.permute.xlu0 %2058 }
 0x34c   : > { %4789 = vmatmul.msk.bf16.gmra.mxu2 %vm9177_vm8, %v2059_v36  ;;  %v2067_v30 = vpop.permute.xlu1 %2066  ;;  %v2164_v3 = vsel %vm9167_vm0, %v2022_v45, %v2059_v36  ;;  %vm9182_vm8 = vmmov %vm9167_vm0 }
 0x34d   : > { %v2176_v52 = vsel %vm9179_vm3, %v7067_v61, %v2067_v30  ;;  %vm9184_vm3 = vmmov %vm9175_vm4  ;;  %v7306_v28 = vpop.f32.mrf.mxu2  ;;  %v7313_v17 = vpop.f32.mrf.mxu3 }
 0x34e   : > { %v2117_v11 = vsel %vm9184_vm3, %v7201_v33, %v2026_v43  ;;  %vm9186_vm4 = vmmov %vm9183_vm7 }
 0x350   : > { %v7301_v6 = vpop.f32.mrf.mxu0  ;;  %v7303_v12 = vpop.f32.mrf.mxu1 }
 0x353   : > { %v2061_v16 = vpop.permute.xlu0 %2060 }
 0x354   : > { %v2069_v10 = vpop.permute.xlu1 %2068  ;;  %v2167_v0 = vsel %vm9182_vm8, %v2024_v1, %v2061_v16  ;;  %vm9188_vm8 = vmmov %vm9167_vm0 }
 0x355   : > { %2411 = vmatmul.bf16.gmra.mxu0 %v2109_v54  ;;  %2520 = vmatmul.bf16.vlgmr.msrb.gmra.mxu3 %v2176_v52  ;;  %v2179_v14 = vsel %vm9181_vm1, %v7109_v55, %v2069_v10  ;;  %vm9187_vm1 = vmmov %vm9184_vm3  ;;  %v7322_v54 = vpop.f32.mrf.mxu3 }
 0x356   : > { %2500 = vmatmul.bf16.gmra.mxu1 %v2164_v3  ;;  %vm9190_vm3 = vmmov %vm9186_vm4 }
 0x35b   : > { %v2063_v61 = vpop.permute.xlu0 %2062 }
 0x35c   : > { %4790 = vmatmul.msk.bf16.gmra.mxu2 %vm9180_vm6, %v2061_v16  ;;  %v2071_v9 = vpop.permute.xlu1 %2070  ;;  %vm9185_vm6 = vmmov %vm9167_vm0 }
 0x35d   : > { %v2182_v20 = vsel %vm9167_vm0, %v7240_v26, %v2071_v9  ;;  %v2170_v51 = vsel %vm9185_vm6, %v2026_v43, %v2063_v61 }
 0x363   : > { %v2065_v55 = vpop.permute.xlu0 %2064 }
 0x364   : > { %v2073_v62 = vpop.permute.xlu1 %2072 }
 0x365   : > { %2416 = vmatmul.bf16.gmra.mxu0 %v2113_v57  ;;  %2525 = vmatmul.bf16.gmra.mxu3 %v2179_v14  ;;  %v2185_v56 = vsel %vm9188_vm8, %v2036_v50, %v2073_v62  ;;  %v7331_v57 = vpop.f32.mrf.mxu3 }
 0x366   : > { %2505 = vmatmul.bf16.gmra.mxu1 %v2167_v0  ;;  %9194 = vst [vmem:[#allocation28_spill] sm:$0xff] %v7331_v57 }
 0x36b   : > { %v2028_v47 = vpop.permute.xlu0 %2027 }
 0x36c   : > { %4791 = vmatmul.msk.bf16.gmra.mxu2 %vm9183_vm7, %v2063_v61  ;;  %v2121_v33 = vsel %vm9187_vm1, %v7209_v5, %v2028_v47  ;;  %vm9189_vm7 = vmmov %vm9167_vm0 }
 0x36d   : > { %v2173_v26 = vsel %vm9189_vm7, %v2028_v47, %v2065_v55  ;;  %vm9191_vm0 = vmmov %vm9190_vm3 }
 0x36e   : > { %vm9192_vm6 = vmmov %vm9191_vm0 }
 0x36f   : > { %vm9201_vm1 = vmmov %vm9191_vm0 }
 0x370   : > { %v2633_v60 = vsel %vm9201_vm1, %v7392_v49, 0.0  ;;  %vm9202_vm8 = vmmov %vm9191_vm0  ;;  %v7427_v49 = vadd.f32 %v7263_v8, %v2474_v58 }
 0x371   : > { %v2632_v39 = vsel %vm9202_vm8, %v7227_v7, 0.0  ;;  %vm9203_vm7 = vmmov %vm9191_vm0 }
 0x372   : > { %v2734_v19 = vsel %vm9203_vm7, %v2702_v41, 0.0  ;;  %vm9207_vm1 = vmmov %vm9191_vm0 }
 0x373   : > { %vm9208_vm8 = vmmov %vm9191_vm0 }
 0x374   : > { %vm9209_vm7 = vmmov %vm9191_vm0 }
 0x375   : > { %2421 = vmatmul.bf16.gmra.mxu0 %v2117_v11  ;;  %2530 = vmatmul.bf16.gmra.mxu3 %v2182_v20 }
 0x376   : > { %2510 = vmatmul.bf16.gmra.mxu1 %v2170_v51 }
 0x37c   : > { %4792 = vmatmul.msk.bf16.gmra.mxu2 %vm9186_vm4, %v2065_v55  ;;  %vm9193_vm4 = vmmov %vm9191_vm0 }
 0x385   : > { %2426 = vmatmul.bf16.gmra.mxu0 %v2121_v33  ;;  %2535 = vmatmul.bf16.gmra.mxu3 %v2185_v56 }
 0x386   : > { %2515 = vmatmul.bf16.gmra.mxu1 %v2173_v26 }
 0x38c   : > { %4793 = vmatmul.msk.bf16.gmra.mxu2 %vm9190_vm3, %v2067_v30  ;;  %vm9204_vm3 = vmmov %vm9191_vm0 }
 0x38d   : > { %v2635_v24 = vsel %vm9204_vm3, %v7238_v4, 0.0  ;;  %v2705_v4 = vmul.f32 %v7259_v34, %v7259_v34  ;;  %vm9210_vm3 = vmmov %vm9191_vm0 }
 0x38f   : > { %v2575_v50 = vpop.f32.mrf.mxu2 }
 0x392   : > { %v2392_v53 = vpop.f32.mrf.mxu0  ;;  %v2481_v2 = vpop.f32.mrf.mxu1 }
 0x393   : > { %v7310_v5 = vadd.f32 %v2481_v2, %v2392_v53 }
 0x395   : > { %4795 = vmatmul.msk.bf16.vlgmr.msra.gmra.mxu3 %vm9191_vm0, %v2071_v9 }
 0x397   : > { %v7320_v48 = vpop.f32.mrf.mxu2 }
 0x39a   : > { %v7315_v22 = vpop.f32.mrf.mxu0  ;;  %v7317_v59 = vpop.f32.mrf.mxu1 }
 0x39b   : > { %v2484_v8 = vadd.f32 %v7317_v59, %v7315_v22  ;;  %v2641_v22 = vsel %vm9210_vm3, %v7427_v49, 0.0  ;;  %v2707_v59 = vmul.f32 %v7272_v40, %v7272_v40  ;;  %vm9216_vm3 = vmmov %vm9191_vm0 }
 0x39c   : > { %4794 = vmatmul.msk.bf16.gmra.mxu2 %vm9192_vm6, %v2069_v10  ;;  %vm9205_vm6 = vmmov %vm9191_vm0 }
 0x39d   : > { %v2736_v7 = vsel %vm9205_vm6, %v2703_v38, 0.0  ;;  %vm9211_vm6 = vmmov %vm9191_vm0 }
 0x39f   : > { %v2580_v3 = vpop.f32.mrf.mxu2 }
 0x3a1   : > { %v7337_v9 = vpop.f32.mrf.mxu3 }
 0x3a2   : > { %v2397_v36 = vpop.f32.mrf.mxu0  ;;  %v2486_v45 = vpop.f32.mrf.mxu1  ;;  %9195 = vst [vmem:[#allocation31_spill] sm:$0xff] %v7337_v9 }
 0x3a3   : > { %v2487_v30 = vadd.f32 %v2486_v45, %v2397_v36 }
 0x3a5   : > { %v7324_v52 = vadd.f32 %v2575_v50, %v2487_v30  ;;  %4796 = vmatmul.msk.bf16.gmra.mxu3 %vm9193_vm4, %v2073_v62  ;;  %vm9206_vm4 = vmmov %vm9191_vm0 }
 0x3a6   : > { %v2637_v41 = vsel %vm9206_vm4, %v7403_v44, 0.0  ;;  %vm9212_vm4 = vmmov %vm9191_vm0 }
 0x3a7   : > { %v7333_v0 = vpop.f32.mrf.mxu2 }
 0x3a9   : > { %v7345_v55 = vpop.f32.mrf.mxu3 }
 0x3aa   : > { %v7327_v16 = vpop.f32.mrf.mxu0  ;;  %v7329_v1 = vpop.f32.mrf.mxu1  ;;  %9196 = vst [vmem:[#allocation30_spill] sm:$0xff] %v7345_v55  ;;  %v2634_v55 = vadd.f32 %v2633_v60, %v2632_v39  ;;  %v2740_v39 = vsel %vm9209_vm7, %v2705_v4, 0.0  ;;  %v2643_v4 = vsel %vm9211_vm6, %v7272_v40, 0.0  ;;  %vm9215_vm7 = vmmov %vm9191_vm0 }
 0x3ab   : > { %vm9217_vm6 = vmmov %vm9191_vm0 }
 0x3ac   : > { %v2636_v9 = vadd.f32 %v2635_v24, %v2634_v55 }
 0x3ae   : > { %v2638_v55 = vadd.f32 %v2637_v41, %v2636_v9  ;;  %v2489_v9 = vadd.f32 %v7329_v1, %v7327_v16 }
 0x3af   : > { %v7343_v51 = vpop.f32.mrf.mxu2 }
 0x3b2   : > { %v2402_v14 = vpop.f32.mrf.mxu0  ;;  %v2491_v10 = vpop.f32.mrf.mxu1 }
 0x3b3   : > { %v2492_v61 = vadd.f32 %v2491_v10, %v2402_v14 }
 0x3b5   : > { %v7335_v43 = vadd.f32 %v2580_v3, %v2492_v61 }
 0x3b7   : > { %v7351_v33 = vpop.f32.mrf.mxu2 }
 0x3ba   : > { %v7339_v11 = vpop.f32.mrf.mxu0  ;;  %v7341_v20 = vpop.f32.mrf.mxu1 }
 0x3c2   : > { %v7347_v62 = vpop.f32.mrf.mxu0 }
 0x3c3   : > { %v7349_v47 = vpop.f32.mrf.mxu1 }
 0x3c8   : > { %v7353_v56 = vpop.f32.mrf.mxu3 }
 0x3c9   : > { %9197 = vst [vmem:[#allocation45_spill] sm:$0xff] %v7353_v56  ;;  %v2479_v56 = vadd.f32 %v7303_v12, %v7301_v6  ;;  %v2738_v6 = vsel %vm9207_vm1, %v2704_v63, 0.0  ;;  %v2639_v12 = vsel %vm9208_vm8, %v7259_v34, 0.0  ;;  %vm9213_vm1 = vmmov %vm9191_vm0 }
 0x3ca   : > { %v7355_v26 = vpop.f32.mrf.mxu0  ;;  %v2640_v63 = vadd.f32 %v2639_v12, %v2638_v55  ;;  %vm9214_vm8 = vmmov %vm9191_vm0 }
 0x3cb   : > { %v7357_v53 = vpop.f32.mrf.mxu1  ;;  %v7447_v60 = vadd.f32 %v7292_v42, %v2479_v56  ;;  %v7461_v42 = vadd.f32 %v7306_v28, %v2484_v8  ;;  %v2744_v28 = vsel %vm9212_vm4, %v2707_v59, 0.0  ;;  %vm9218_vm4 = vmmov %vm9191_vm0 }
 0x3cd   : > { %v2645_v8 = vsel %vm9213_vm1, %v7447_v60, 0.0  ;;  %vm9219_vm1 = vmmov %vm9191_vm0 }
 0x3cf   : > { %v7359_v2 = vpop.f32.mrf.mxu2 }
 0x3d0   : > { %v7361_v50 = vpop.f32.mrf.mxu3 }
 0x3d1   : > { %9198 = vst [vmem:[#allocation46_spill] sm:$0xff] %v7361_v50 }
 0x3d2   : > { %v7363_v36 = vpop.f32.mrf.mxu0 }
 0x3d3   : > { %v7365_v45 = vpop.f32.mrf.mxu1 }
 0x3d7   : > { %v7367_v30 = vpop.f32.mrf.mxu2 }
 0x3d8   : > { %v7369_v3 = vpop.f32.mrf.mxu3 }
 0x3da   : > { %v7371_v14 = vpop.f32.mrf.mxu0 }
 0x3db   : > { %v7373_v10 = vpop.f32.mrf.mxu1 }
 0x3df   : > { %v7375_v61 = vpop.f32.mrf.mxu2 }
 0x3e0   : > { %v7377_v31 = vpop.f32.mrf.mxu3 }
 0x3e2   : > { %v7379_v32 = vpop.f32.mrf.mxu0 }
 0x3e3   : > { %v7381_v27 = vpop.f32.mrf.mxu1 }
 0x3e7   : > { %v7383_v18 = vpop.f32.mrf.mxu2 }
 0x3e8   : > { %v7385_v13 = vpop.f32.mrf.mxu3 }
 0x3ea   : > { %v7389_v25 = vpop.f32.mrf.mxu0 }
 0x3eb   : > { %v7394_v46 = vpop.f32.mrf.mxu1 }
 0x3ef   : > { %v7400_v15 = vpop.f32.mrf.mxu2 }
 0x3f0   : > { %v7407_v23 = vpop.f32.mrf.mxu3 }
 0x3f1   : > { %9200 = vst [vmem:[#allocation48_spill] sm:$0xff] %v7407_v23  ;;  %v2733_v23 = vsel %vm9191_vm0, %v2701_v29, 0.0  ;;  %v2706_v29 = vmul.f32 %v7427_v49, %v7427_v49 }
 0x3f2   : > { %v7415_v35 = vpop.f32.mrf.mxu0  ;;  %v2735_v57 = vadd.f32 %v2734_v19, %v2733_v23  ;;  %v7458_v19 = vadd.f32 %v7295_v37, %v7310_v5  ;;  %v2642_v5 = vadd.f32 %v2641_v22, %v2640_v63  ;;  %v2494_v22 = vadd.f32 %v7341_v20, %v7339_v11 }
 0x3f3   : > { %v7420_v50 = vpop.f32.mrf.mxu1  ;;  %v2651_v11 = vsel %vm9218_vm4, %v7324_v52, 0.0  ;;  %vm9224_vm4 = vmmov %vm9191_vm0 }
 0x3f4   : > { %v2737_v23 = vadd.f32 %v2736_v7, %v2735_v57  ;;  %v2742_v7 = vsel %vm9191_vm0, %v2706_v29, 0.0  ;;  %v2708_v57 = vmul.f32 %v7447_v60, %v7447_v60  ;;  %v2644_v29 = vadd.f32 %v2643_v4, %v2642_v5 }
 0x3f5   : > { %v2647_v55 = vsel %vm9215_vm7, %v7458_v19, 0.0  ;;  %v2649_v4 = vsel %vm9191_vm0, %v7461_v42, 0.0  ;;  %vm9221_vm7 = vmmov %vm9191_vm0 }
 0x3f6   : > { %v2739_v24 = vadd.f32 %v2738_v6, %v2737_v23  ;;  %v2709_v6 = vmul.f32 %v7458_v19, %v7458_v19  ;;  %v2710_v23 = vmul.f32 %v7461_v42, %v7461_v42  ;;  %v2746_v1 = vsel %vm9214_vm8, %v2708_v57, 0.0  ;;  %vm9220_vm8 = vmmov %vm9191_vm0 }
 0x3f7   : > { %v7439_v58 = vpop.f32.mrf.mxu2  ;;  %v2646_v63 = vadd.f32 %v2645_v8, %v2644_v29  ;;  %v2711_v57 = vmul.f32 %v7324_v52, %v7324_v52  ;;  %v2499_v8 = vadd.f32 %v7357_v53, %v7355_v26  ;;  %v2504_v26 = vadd.f32 %v7373_v10, %v7371_v14 }
 0x3f8   : > { %v7449_v38 = vpop.f32.mrf.mxu3  ;;  %v2741_v37 = vadd.f32 %v2740_v39, %v2739_v24  ;;  %v7487_v39 = vadd.f32 %v7320_v48, %v2489_v9  ;;  %v2750_v5 = vsel %vm9217_vm6, %v2710_v23, 0.0  ;;  %v2713_v23 = vmul.f32 %v7335_v43, %v7335_v43  ;;  %vm9223_vm6 = vmmov %vm9191_vm0 }
 0x3f9   : > { %v2648_v9 = vadd.f32 %v2647_v55, %v2646_v63 }
 0x3fa   : > { %v7470_v56 = vpop.f32.mrf.mxu0  ;;  %v2743_v12 = vadd.f32 %v2742_v7, %v2741_v37  ;;  %v2748_v7 = vsel %vm9216_vm3, %v2709_v6, 0.0  ;;  %v2497_v37 = vadd.f32 %v7349_v47, %v7347_v62  ;;  %v2712_v20 = vmul.f32 %v7487_v39, %v7487_v39  ;;  %vm9222_vm3 = vmmov %vm9191_vm0 }
 0x3fb   : > { %v7472_v41 = vpop.f32.mrf.mxu1  ;;  %v2502_v62 = vadd.f32 %v7365_v45, %v7363_v36  ;;  %v2752_v47 = vsel %vm9219_vm1, %v2711_v57, 0.0  ;;  %v2653_v29 = vsel %vm9220_vm8, %v7487_v39, 0.0  ;;  %v2655_v45 = vsel %vm9222_vm3, %v7335_v43, 0.0  ;;  %vm9225_vm1 = vmmov %vm9191_vm0 }
 0x3fc   : > { %v2745_v24 = vadd.f32 %v2744_v28, %v2743_v12  ;;  %v7506_v28 = vadd.f32 %v7333_v0, %v2494_v22  ;;  %v2650_v12 = vadd.f32 %v2649_v4, %v2648_v9  ;;  %v2754_v36 = vsel %vm9221_vm7, %v2712_v20, 0.0  ;;  %vm9226_vm8 = vmmov %vm9191_vm0 }
 0x3fd   : > { %v7535_v14 = vadd.f32 %v7359_v2, %v2502_v62  ;;  %v2756_v10 = vsel %vm9191_vm0, %v2713_v23, 0.0  ;;  %v2507_v9 = vadd.f32 %v7381_v27, %v7379_v32  ;;  %vm9227_vm7 = vmmov %vm9191_vm0 }
 0x3fe   : > { %v2747_v48 = vadd.f32 %v2746_v1, %v2745_v24  ;;  %v7518_v1 = vadd.f32 %v7343_v51, %v2497_v37  ;;  %v2652_v22 = vadd.f32 %v2651_v11, %v2650_v12  ;;  %v2714_v63 = vmul.f32 %v7506_v28, %v7506_v28  ;;  %vm9228_vm3 = vmmov %vm9191_vm0 }
 0x3ff   : > { %v7481_v16 = vpop.f32.mrf.mxu2  ;;  %v7530_v51 = vadd.f32 %v7351_v33, %v2499_v8  ;;  %v2657_v37 = vsel %vm9223_vm6, %v7506_v28, 0.0  ;;  %v7545_v11 = vadd.f32 %v7367_v30, %v2504_v26  ;;  %v2717_v27 = vmul.f32 %v7535_v14, %v7535_v14  ;;  %vm9229_vm6 = vmmov %vm9191_vm0 }
 0x400   : > { %v7491_v59 = vpop.f32.mrf.mxu3  ;;  %v2749_v6 = vadd.f32 %v2748_v7, %v2747_v48  ;;  %v2654_v57 = vadd.f32 %v2653_v29, %v2652_v22  ;;  %v2715_v48 = vmul.f32 %v7518_v1, %v7518_v1  ;;  %v2758_v20 = vsel %vm9224_vm4, %v2714_v63, 0.0  ;;  %vm9230_vm4 = vmmov %vm9191_vm0 }
 0x401   : > { %v2659_v2 = vsel %vm9225_vm1, %v7518_v1, 0.0  ;;  %v2716_v8 = vmul.f32 %v7530_v51, %v7530_v51  ;;  %v2661_v30 = vsel %vm9227_vm7, %v7530_v51, 0.0  ;;  %v2512_v29 = vadd.f32 %v7420_v50, %v7415_v35  ;;  %vm9231_vm1 = vmmov %vm9191_vm0 }
 0x402   : > { %v2427_v0 = vpop.f32.mrf.mxu0  ;;  %v2751_v55 = vadd.f32 %v2750_v5, %v2749_v6  ;;  %v2656_v5 = vadd.f32 %v2655_v45, %v2654_v57  ;;  %v2509_v6 = vadd.f32 %v7394_v46, %v7389_v25  ;;  %v2760_v32 = vsel %vm9226_vm8, %v2715_v48, 0.0  ;;  %vm9232_vm8 = vmmov %vm9191_vm0 }
 0x403   : > { %v2516_v53 = vpop.f32.mrf.mxu1  ;;  %v2718_v46 = vmul.f32 %v7545_v11, %v7545_v11  ;;  %v2762_v22 = vsel %vm9228_vm3, %v2716_v8, 0.0  ;;  %v2663_v26 = vsel %vm9191_vm0, %v7535_v14, 0.0  ;;  %v2764_v63 = vsel %vm9229_vm6, %v2717_v27, 0.0  ;;  %vm9233_vm7 = vmmov %vm9191_vm0 }
 0x404   : > { %v2753_v4 = vadd.f32 %v2752_v47, %v2751_v55  ;;  %v2658_v62 = vadd.f32 %v2657_v37, %v2656_v5  ;;  %v7560_v47 = vadd.f32 %v7375_v61, %v2507_v9  ;;  %v2514_v61 = vadd.f32 %v7472_v41, %v7470_v56  ;;  %vm9234_vm3 = vmmov %vm9191_vm0 }
 0x405   : > { %v2517_v48 = vadd.f32 %v2516_v53, %v2427_v0  ;;  %v2766_v41 = vsel %vm9231_vm1, %v2718_v46, 0.0  ;;  %vm9235_vm6 = vmmov %vm9191_vm0 }
 0x406   : > { %v2755_v33 = vadd.f32 %v2754_v36, %v2753_v4  ;;  %v2660_v55 = vadd.f32 %v2659_v2, %v2658_v62  ;;  %v7570_v36 = vadd.f32 %v7383_v18, %v2509_v6  ;;  %v2719_v37 = vmul.f32 %v7560_v47, %v7560_v47  ;;  %vm9237_vm1 = vmmov %vm9191_vm0 }
 0x407   : > { %v7522_v24 = vpop.f32.mrf.mxu2  ;;  %v7582_v18 = vadd.f32 %v7400_v15, %v2512_v29 }
 0x408   : > { %v7532_v7 = vpop.f32.mrf.mxu3  ;;  %v2757_v12 = vadd.f32 %v2756_v10, %v2755_v33  ;;  %v2662_v35 = vadd.f32 %v2661_v30, %v2660_v55  ;;  %v2665_v10 = vsel %vm9230_vm4, %v7545_v11, 0.0  ;;  %v2667_v33 = vsel %vm9232_vm8, %v7560_v47, 0.0  ;;  %vm9236_vm4 = vmmov %vm9191_vm0 }
 0x409   : > { %v2720_v5 = vmul.f32 %v7570_v36, %v7570_v36  ;;  %v2768_v15 = vsel %vm9233_vm7, %v2719_v37, 0.0  ;;  %v2669_v0 = vsel %vm9234_vm3, %v7570_v36, 0.0  ;;  %v2721_v53 = vmul.f32 %v7582_v18, %v7582_v18  ;;  %vm9238_vm8 = vmmov %vm9191_vm0 }
 0x40a   : > { %v2759_v23 = vadd.f32 %v2758_v20, %v2757_v12  ;;  %v2429_v4 = vpop.f32.mrf.mxu0  ;;  %v2664_v56 = vadd.f32 %v2663_v26, %v2662_v35  ;;  %v7590_v20 = vadd.f32 %v7439_v58, %v2514_v61  ;;  %v7598_v12 = vadd.f32 %v7481_v16, %v2517_v48  ;;  %vm9239_vm7 = vmmov %vm9191_vm0 }
 0x40b   : > { %v2518_v57 = vpop.f32.mrf.mxu1  ;;  %v2770_v58 = vsel %vm9191_vm0, %v2720_v5, 0.0  ;;  %v2671_v30 = vsel %vm9235_vm6, %v7582_v18, 0.0  ;;  %v2522_v16 = vadd.f32 %v7369_v3, %v7308_v21  ;;  %v2772_v26 = vsel %vm9236_vm4, %v2721_v53, 0.0  ;;  %vm9240_vm3 = vmmov %vm9191_vm0  ;;  %v9243_v53 = vld [vmem:[#allocation31_spill] sm:$0xff] }
 0x40c   : > { %v2761_v50 = vadd.f32 %v2760_v32, %v2759_v23  ;;  %v2519_v2 = vadd.f32 %v2518_v57, %v2429_v4  ;;  %v2666_v6 = vadd.f32 %v2665_v10, %v2664_v56  ;;  %v2722_v29 = vmul.f32 %v7590_v20, %v7590_v20  ;;  %vm9241_vm6 = vmmov %vm9191_vm0 }
 0x40d   : > { %v2673_v61 = vsel %vm9237_vm1, %v7590_v20, 0.0  ;;  %v2524_v35 = vadd.f32 %v7377_v31, %v7313_v17  ;;  %v2675_v57 = vsel %vm9239_vm7, %v7598_v12, 0.0  ;;  %v2527_v48 = vadd.f32 %v7385_v13, %v7322_v54  ;;  %vm9242_vm4 = vmmov %vm9191_vm0 }
 0x40e   : > { %v2763_v9 = vadd.f32 %v2762_v22, %v2761_v50  ;;  %v2668_v27 = vadd.f32 %v2667_v33, %v2666_v6  ;;  %v7606_v23 = vadd.f32 %v7522_v24, %v2519_v2  ;;  %v2723_v50 = vmul.f32 %v7598_v12, %v7598_v12  ;;  %vm9244_vm1 = vmmov %vm9191_vm0 }
 0x40f   : > { %v2610_v25 = vpop.f32.mrf.mxu2  ;;  %v2774_v4 = vsel %vm9238_vm8, %v2722_v29, 0.0  ;;  %vm9245_vm8 = vmmov %vm9191_vm0  ;;  %v9247_v29 = vld [vmem:[#allocation48_spill] sm:$0xff] }
 0x410   : > { %v7574_v45 = vpop.f32.mrf.mxu3  ;;  %v2765_v8 = vadd.f32 %v2764_v63, %v2763_v9  ;;  %v2670_v22 = vadd.f32 %v2669_v0, %v2668_v27  ;;  %v2724_v21 = vmul.f32 %v7606_v23, %v7606_v23  ;;  %v7622_v3 = vadd.f32 %v2610_v25, %v2522_v16  ;;  %v9248_v16 = vld [vmem:[#allocation30_spill] sm:$0xff]  ;;  %vm9249_vm7 = vmmov %vm9191_vm0 }
 0x411   : > { %v2776_v9 = vsel %vm9240_vm3, %v2723_v50, 0.0  ;;  %v2677_v31 = vsel %vm9191_vm0, %v7606_v23, 0.0  ;;  %vm9250_vm3 = vmmov %vm9191_vm0 }
 0x412   : > { %v2767_v62 = vadd.f32 %v2766_v41, %v2765_v8  ;;  %v2672_v24 = vadd.f32 %v2671_v30, %v2670_v22  ;;  %v2778_v5 = vsel %vm9241_vm6, %v2724_v21, 0.0  ;;  %v2725_v25 = vmul.f32 %v7622_v3, %v7622_v3  ;;  %v9246_v30 = vld [vmem:[#allocation28_spill] sm:$0xff]  ;;  %vm9252_vm6 = vmmov %vm9191_vm0 }
 0x413   : > { %v2679_v54 = vsel %vm9242_vm4, %v7622_v3, 0.0  ;;  %vm9253_vm4 = vmmov %vm9191_vm0 }
 0x414   : > { %v2769_v46 = vadd.f32 %v2768_v15, %v2767_v62  ;;  %v2674_v37 = vadd.f32 %v2673_v61, %v2672_v24  ;;  %v2532_v62 = vadd.f32 %v7449_v38, %v9243_v53  ;;  %v2780_v27 = vsel %vm9244_vm1, %v2725_v25, 0.0  ;;  %vm9254_vm1 = vmmov %vm9191_vm0  ;;  %v9257_v53 = vld [vmem:[#allocation46_spill] sm:$0xff] }
 0x416   : > { %v2771_v63 = vadd.f32 %v2770_v58, %v2769_v46  ;;  %v2676_v41 = vadd.f32 %v2675_v57, %v2674_v37  ;;  %v2529_v46 = vadd.f32 %v9247_v29, %v9246_v30 }
 0x417   : > { %v2612_v32 = vpop.f32.mrf.mxu2 }
 0x418   : > { %v2620_v55 = vpop.f32.mrf.mxu3  ;;  %v2773_v10 = vadd.f32 %v2772_v26, %v2771_v63  ;;  %v7629_v17 = vadd.f32 %v2612_v32, %v2524_v35  ;;  %v2678_v13 = vadd.f32 %v2677_v31, %v2676_v41  ;;  %v2534_v26 = vadd.f32 %v7491_v59, %v9248_v16 }
 0x419   : > { %v7652_v50 = vadd.f32 %v2620_v55, %v2532_v62  ;;  %v2539_v62 = vadd.f32 %v7574_v45, %v9257_v53 }
 0x41a   : > { %v2775_v56 = vadd.f32 %v2774_v4, %v2773_v10  ;;  %v2726_v15 = vmul.f32 %v7629_v17, %v7629_v17  ;;  %v2681_v32 = vsel %vm9245_vm8, %v7629_v17, 0.0  ;;  %v2680_v22 = vadd.f32 %v2679_v54, %v2678_v13  ;;  %v9251_v4 = vld [vmem:[#allocation45_spill] sm:$0xff]  ;;  %vm9255_vm8 = vmmov %vm9191_vm0 }
 0x41b   : > { %v2537_v57 = vadd.f32 %v7532_v7, %v9251_v4  ;;  %v2729_v55 = vmul.f32 %v7652_v50, %v7652_v50 }
 0x41c   : > { %v2777_v6 = vadd.f32 %v2776_v9, %v2775_v56  ;;  %v2782_v61 = vsel %vm9249_vm7, %v2726_v15, 0.0  ;;  %v2682_v63 = vadd.f32 %v2681_v32, %v2680_v22  ;;  %vm9256_vm7 = vmmov %vm9191_vm0 }
 0x41d   : > { %v2788_v54 = vsel %vm9255_vm8, %v2729_v55, 0.0  ;;  %vm9262_vm8 = vcmask 1040384  }
 0x41e   : > { %v2779_v0 = vadd.f32 %v2778_v5, %v2777_v6  ;;  %v2687_v5 = vsel %vm9253_vm4, %v7652_v50, 0.0  ;;  %vm9260_vm4 = vmmov %vm9191_vm0 }
 0x41f   : > { %v2615_v33 = vpop.f32.mrf.mxu2 }
 0x420   : > { %v7634_v2 = vadd.f32 %v2615_v33, %v2527_v48  ;;  %v2622_v8 = vpop.f32.mrf.mxu3  ;;  %v2781_v35 = vadd.f32 %v2780_v27, %v2779_v0 }
 0x421   : > { %v7659_v10 = vadd.f32 %v2622_v8, %v2534_v26 }
 0x422   : > { %v2727_v58 = vmul.f32 %v7634_v2, %v7634_v2  ;;  %v2683_v38 = vsel %vm9250_vm3, %v7634_v2, 0.0  ;;  %v2783_v48 = vadd.f32 %v2782_v61, %v2781_v35  ;;  %vm9258_vm3 = vmmov %vm9191_vm0 }
 0x423   : > { %v2684_v9 = vadd.f32 %v2683_v38, %v2682_v63  ;;  %v2730_v25 = vmul.f32 %v7659_v10, %v7659_v10  ;;  %v2689_v15 = vsel %vm9256_vm7, %v7659_v10, 0.0  ;;  %vm9263_vm7 = vcmask 254976  }
 0x424   : > { %v2784_v21 = vsel %vm9191_vm0, %v2727_v58, 0.0 }
 0x425   : > { %v2785_v7 = vadd.f32 %v2784_v21, %v2783_v48  ;;  %v2790_v58 = vsel %vm9258_vm3, %v2730_v25, 0.0 }
 0x427   : > { %v2617_v24 = vpop.f32.mrf.mxu2 }
 0x428   : > { %v7661_v37 = vadd.f32 %v2617_v24, %v2529_v46  ;;  %v2625_v59 = vpop.f32.mrf.mxu3 }
 0x429   : > { %v7669_v41 = vadd.f32 %v2625_v59, %v2537_v57 }
 0x42a   : > { %v2685_v31 = vsel %vm9252_vm6, %v7661_v37, 0.0  ;;  %v2728_v56 = vmul.f32 %v7661_v37, %v7661_v37  ;;  %vm9259_vm6 = vmmov %vm9191_vm0 }
 0x42b   : > { %v2686_v33 = vadd.f32 %v2685_v31, %v2684_v9  ;;  %v2731_v0 = vmul.f32 %v7669_v41, %v7669_v41  ;;  %v2691_v30 = vsel %vm9191_vm0, %v7669_v41, 0.0 }
 0x42c   : > { %v2786_v8 = vsel %vm9254_vm1, %v2728_v56, 0.0  ;;  %vm9261_vm1 = vmmov %vm9191_vm0 }
 0x42d   : > { %v2688_v6 = vadd.f32 %v2687_v5, %v2686_v33  ;;  %v2787_v13 = vadd.f32 %v2786_v8, %v2785_v7  ;;  %v2792_v26 = vsel %vm9259_vm6, %v2731_v0, 0.0 }
 0x42f   : > { %v2789_v27 = vadd.f32 %v2788_v54, %v2787_v13  ;;  %v2690_v32 = vadd.f32 %v2689_v15, %v2688_v6  ;;  %v9264_v13 = vld [vmem:[#allocation6_spill] sm:$0xff] }
 0x430   : > { %v2627_v29 = vpop.f32.mrf.mxu3 }
 0x431   : > { %v2692_v46 = vadd.f32 %v2691_v30, %v2690_v32  ;;  %v2791_v22 = vadd.f32 %v2790_v58, %v2789_v27  ;;  %v7686_v16 = vadd.f32 %v2627_v29, %v2539_v62 }
 0x433   : > { %v2793_v61 = vadd.f32 %v2792_v26, %v2791_v22  ;;  %v2693_v38 = vsel %vm9260_vm4, %v7686_v16, 0.0  ;;  %v2732_v45 = vmul.f32 %v7686_v16, %v7686_v16 }
 0x434   : > { %v2694_v35 = vadd.f32 %v2693_v38, %v2692_v46 }
 0x435   : > { %v2794_v63 = vsel %vm9261_vm1, %v2732_v45, 0.0 }
 0x436   : > { %v2695_v24 = vrot.slane %v2694_v35, 4  ;;  %v2795_v4 = vadd.f32 %v2794_v63, %v2793_v61  ;;  %v5623_v61 = vld [vmem:[%s8827_s4] ss:$0 sm:$0xff] }
 0x437   : > { %v2631_v63 = vld [vmem:[%s8828_s5] sm:$0x1] }
 0x438   : > { %v2696_v57 = vadd.f32 %v2695_v24, %v2694_v35  ;;  %v2796_v21 = vrot.slane %v2795_v4, 4 }
 0x43a   : > { %v2697_v59 = vrot.slane %v2696_v57, 2  ;;  %v2797_v48 = vadd.f32 %v2796_v21, %v2795_v4 }
 0x43c   : > { %v2698_v9 = vadd.f32 %v2697_v59, %v2696_v57  ;;  %v2798_v55 = vrot.slane %v2797_v48, 2  ;;  %v9265_v59 = vld [vmem:[#allocation24_spill] sm:$0xff] }
 0x43e   : > { %v2699_v31 = vrot.slane %v2698_v9, 1  ;;  %v2799_v56 = vadd.f32 %v2798_v55, %v2797_v48 }
 0x440   : > { %v2800_v7 = vrot.slane %v2799_v56, 1  ;;  %v2700_v33 = vadd.f32 %v2699_v31, %v2698_v9  ;;  %v9266_v9 = vld [vmem:[#allocation47_spill] sm:$0xff]  ;;  %v9267_v31 = vld [vmem:[#allocation29_spill] sm:$0xff] }
 0x442   : > { %v2801_v5 = vadd.f32 %v2800_v7, %v2799_v56 }
 0x444   : > { %v2802_v25 = vsel %vm9262_vm8, %v2700_v33, %v2801_v5 }
 0x445   : > { %v2803_v8 = vsel %vm9263_vm7, %v2802_v25, 0.0 }
 0x446   : > { %2804 = vadd.xlane.f32.xlu1 %v2803_v8 }
 0x4b9   : > { %v2805_v6 = vpop.xlane.xlu1 %2804 }
 0x4ba   : > { %v2806_v54 = vmul.f32 %v2805_v6, %v9264_v13 }
 0x4bc   : > { %v2807_v15 = vmul.f32 %v2806_v54, %v2806_v54 }
 0x4be   : > { %v2809_v0 = vrot.slane %v2807_v15, 7 }
 0x4c0   : > { %v2811_v53 = vsub.f32 %v2806_v54, %v2809_v0 }
 0x4c2   : > { %v2812_v62 = vmax.f32 %v2811_v53, 0.0 }
 0x4c4   : > { %v2813_v27 = vadd.f32 1e-05, %v2812_v62 }
 0x4c6   : > { %5628 = vrsqrt.f32 %v2813_v27  ;;  %vm2820_vm0 = vweird.f32 %v2813_v27 }
 0x4cc   : > { %v5629_v32 = vpop.eup %5628 }
 0x4cd   : > { %v2815_v58 = vmul.f32 %v5629_v32, %v2813_v27  ;;  %vm2821_vm3 = vweird.f32 %v5629_v32 }
 0x4ce   : > { %vm2822_vm6 = vmor %vm2820_vm0, %vm2821_vm3 }
 0x4cf   : > { %v2816_v30 = vmul.f32 %v5629_v32, %v2815_v58 }
 0x4d1   : > { %v2817_v29 = vmul.f32 0.5, %v2816_v30 }
 0x4d3   : > { %v2818_v46 = vsub.f32 1.5, %v2817_v29 }
 0x4d5   : > { %v2819_v22 = vmul.f32 %v5629_v32, %v2818_v46 }
 0x4d7   : > { %v2823_v26 = vsel %vm2822_vm6, %v5629_v32, %v2819_v22 }
 0x4d8   : > { %2826 = vperm.xlu2 %5461, %v2823_v26  }
 0x532   : > { %v2827_v38 = vpop.permute.xlu2 %2826 }
 0x533   : > { %v2832_v45 = vmul.f32 %v5623_v61, %v2827_v38 }
 0x535   : > { %v2834_v35 = vrot.slane %v2832_v45, 1  ;;  %v7703_v4 = vperm.slane %v2832_v45, 1 }
 0x537   : > { %v2836_v24 = vmul.f32 %v2834_v35, %v2806_v54  ;;  %v2839_v48 = vmul.f32 %v7703_v4, %v9265_v59  ;;  %v2840_v55 = vmul.f32 %v7703_v4, %v9266_v9  ;;  %v2841_v56 = vmul.f32 %v7703_v4, %v9267_v31 }
 0x538   : > { %v2842_v7 = vmul.f32 %v7703_v4, %v7403_v44  ;;  %v2843_v33 = vmul.f32 %v7703_v4, %v7259_v34  ;;  %v2844_v5 = vmul.f32 %v7703_v4, %v7427_v49  ;;  %v2853_v25 = vmul.f32 %v7703_v4, %v7518_v1 }
 0x539   : > { %v2837_v57 = vsub.f32 %v2631_v63, %v2836_v24  ;;  %v2855_v8 = vmul.f32 %v7703_v4, %v7535_v14  ;;  %v2856_v6 = vmul.f32 %v7703_v4, %v7545_v11  ;;  %v2857_v13 = vmul.f32 %v7703_v4, %v7560_v47 }
 0x53a   : > { %v2859_v44 = vmul.f32 %v7703_v4, %v7582_v18  ;;  %v2861_v34 = vmul.f32 %v7703_v4, %v7598_v12  ;;  %v2863_v49 = vmul.f32 %v7703_v4, %v7622_v3  ;;  %v2864_v1 = vmul.f32 %v7703_v4, %v7629_v17 }
 0x53b   : > { %v7705_v21 = vperm.slane %v2837_v57, 0  ;;  %v2865_v11 = vmul.f32 %v7703_v4, %v7634_v2  ;;  %v2866_v47 = vmul.f32 %v7703_v4, %v7661_v37  ;;  %v2867_v18 = vmul.f32 %v7703_v4, %v7652_v50 }
 0x53c   : > { %v2868_v12 = vmul.f32 %v7703_v4, %v7659_v10  ;;  %v2869_v3 = vmul.f32 %v7703_v4, %v7669_v41  ;;  %v2870_v17 = vmul.f32 %v7703_v4, %v7686_v16  ;;  %v2845_v26 = vmul.f32 %v7703_v4, %v7272_v40 }
 0x53d   : > { %v2876_v14 = vadd.f32 %v7705_v21, %v2841_v56  ;;  %v2877_v54 = vadd.f32 %v7705_v21, %v2842_v7  ;;  %v2874_v37 = vadd.f32 %v7705_v21, %v2839_v48  ;;  %v2875_v0 = vadd.f32 %v7705_v21, %v2840_v55 }
 0x53e   : > { %v2878_v50 = vadd.f32 %v7705_v21, %v2843_v33  ;;  %v7757_v53 = vadd.f32 %v7705_v21, %v2853_v25  ;;  %v7760_v10 = vadd.f32 %v7705_v21, %v2855_v8  ;;  %v7763_v41 = vadd.f32 %v7705_v21, %v2856_v6  ;;  %v9268_v8 = vld [vmem:[#allocation7_spill] sm:$0xff] }
 0x53f   : > { %v7749_v15 = vmax.f32 %v2876_v14, 0.0  ;;  %v7751_v2 = vmax.f32 %v2877_v54, 0.0  ;;  %v7766_v16 = vadd.f32 %v7705_v21, %v2857_v13  ;;  %v7771_v27 = vadd.f32 %v7705_v21, %v2859_v44 }
 0x540   : > { %v7774_v32 = vadd.f32 %v7705_v21, %v2861_v34  ;;  %v7777_v58 = vadd.f32 %v7705_v21, %v2863_v49  ;;  %v7780_v30 = vadd.f32 %v7705_v21, %v2864_v1  ;;  %v7783_v29 = vadd.f32 %v7705_v21, %v2865_v11 }
 0x541   : > { %v5467_v62 = vpack.i.bf16 %v7751_v2, %v7749_v15  ;;  %v7786_v46 = vadd.f32 %v7705_v21, %v2866_v47  ;;  %v7789_v22 = vadd.f32 %v7705_v21, %v2867_v18  ;;  %v7795_v61 = vadd.f32 %v7705_v21, %v2868_v12 }
 0x542   : > { %v7798_v38 = vadd.f32 %v7705_v21, %v2869_v3  ;;  %v7801_v45 = vadd.f32 %v7705_v21, %v2870_v17  ;;  %v7803_v35 = vmax.f32 %v2874_v37, 0.0  ;;  %v7805_v63 = vmax.f32 %v2875_v0, 0.0 }
 0x543   : > { %5468 = vrot.lane.b32.xlu2 %v5467_v62, %s5696_s26  ;;  %v2879_v24 = vadd.f32 %v7705_v21, %v2844_v5  ;;  %v2880_v57 = vadd.f32 %v7705_v21, %v2845_v26  ;;  %v7811_v59 = vmax.f32 %v2878_v50, 0.0  ;;  %v2846_v48 = vmul.f32 %v7703_v4, %v7447_v60 }
 0x544   : > { %v5462_v40 = vpack.i.bf16 %v7805_v63, %v7803_v35  ;;  %v2847_v31 = vmul.f32 %v7703_v4, %v7458_v19  ;;  %v3036_v56 = vrot.slane %v7749_v15, 1  ;;  %v3037_v7 = vrot.slane %v7751_v2, 1 }
 0x545   : > { %v7816_v9 = vmax.f32 %v2879_v24, 0.0  ;;  %v7818_v55 = vmax.f32 %v2880_v57, 0.0  ;;  %v3038_v33 = vrot.slane %v7811_v59, 1  ;;  %v2881_v5 = vadd.f32 %v7705_v21, %v2846_v48 }
 0x546   : > { %5463 = vrot.lane.b32.xlu0 %v5462_v40, %s5696_s26  ;;  %v2882_v25 = vadd.f32 %v7705_v21, %v2847_v31  ;;  %vm9269_vm4 = vcmp.lt.s32.totalorder %v9268_v8, 7  ;;  %v8914_v13 = vrot.slane %v7803_v35, 1  ;;  %v3035_v34 = vrot.slane %v7805_v63, 1 }
 0x547   : > { %v3093_v60 = vsel %vm9269_vm4, %v3037_v7, %v3038_v33  ;;  %vm9270_vm1 = vmmov %vm9269_vm4  ;;  %v3039_v49 = vrot.slane %v7816_v9, 1  ;;  %v3040_v1 = vrot.slane %v7818_v55, 1  ;;  %v7843_v18 = vmax.f32 %v2881_v5, 0.0 }
 0x548   : > { %v3094_v6 = vsel %vm9270_vm1, %v3036_v56, %v3037_v7  ;;  %v3101_v19 = vsel %vm6110_vm11, %v3093_v60, 0.0  ;;  %vm9272_vm8 = vmmov %vm9270_vm1  ;;  %v7845_v54 = vmax.f32 %v2882_v25, 0.0  ;;  %v2848_v0 = vmul.f32 %v7703_v4, %v7461_v42 }
 0x549   : > { %v5477_v14 = vpack.i.bf16 %v3101_v19, %v3094_v6  ;;  %v3095_v11 = vsel %vm9272_vm8, %v3035_v34, %v3036_v56  ;;  %vm9273_vm7 = vmmov %vm9270_vm1  ;;  %v2849_v50 = vmul.f32 %v7703_v4, %v7324_v52  ;;  %v3041_v48 = vrot.slane %v7843_v18, 1 }
 0x54a   : > { %v3096_v47 = vsel %vm9273_vm7, %v8914_v13, %v3035_v34  ;;  %v3099_v3 = vsel %vm6190_vm13, %v3095_v11, 0.0  ;;  %vm9275_vm11 = vmmov %vm9270_vm1  ;;  %v2883_v57 = vadd.f32 %v7705_v21, %v2848_v0  ;;  %v3042_v31 = vrot.slane %v7845_v54, 1 }
 0x54b   : > { %5478 = vrot.lane.b32.xlu2 %v5477_v14, %s5697_s10  ;;  %v3091_v17 = vsel %vm9275_vm11, %v3039_v49, %v3040_v1  ;;  %v5472_v37 = vpack.i.bf16 %v3099_v3, %v3096_v47  ;;  %vm9276_vm3 = vmmov %vm9270_vm1  ;;  %v2884_v40 = vadd.f32 %v7705_v21, %v2849_v50  ;;  %v2850_v19 = vmul.f32 %v7703_v4, %v7487_v39 }
 0x54c   : > { %v3092_v62 = vsel %vm9276_vm3, %v3038_v33, %v3039_v49  ;;  %v3103_v24 = vsel %vm6102_vm10, %v3091_v17, 0.0  ;;  %v7865_v56 = vmax.f32 %v2883_v57, 0.0  ;;  %vm9278_vm13 = vmmov %vm9270_vm1  ;;  %v5482_v33 = vpack.i.bf16 %v7816_v9, %v7811_v59 }
 0x54d   : > { %v5487_v42 = vpack.i.bf16 %v3103_v24, %v3092_v62  ;;  %v7867_v52 = vmax.f32 %v2884_v40, 0.0  ;;  %v3089_v7 = vsel %vm9278_vm13, %v3041_v48, %v3042_v31  ;;  %vm9279_vm10 = vmmov %vm9270_vm1  ;;  %v2851_v49 = vmul.f32 %v7703_v4, %v7335_v43 }
 0x54e   : > { %5473 = vrot.lane.b32.xlu0 %v5472_v37, %s5697_s10  ;;  %v3090_v5 = vsel %vm9279_vm10, %v3040_v1, %v3041_v48  ;;  %v3105_v60 = vsel %vm6237_vm15, %v3089_v7, 0.0  ;;  %v3043_v6 = vrot.slane %v7865_v56, 1  ;;  %v2852_v14 = vmul.f32 %v7703_v4, %v7506_v28  ;;  %vm9281_vm15 = vmmov %vm9270_vm1 }
 0x54f   : > { %v3044_v44 = vrot.slane %v7867_v52, 1  ;;  %v5497_v34 = vpack.i.bf16 %v3105_v60, %v3090_v5  ;;  %v2854_v1 = vmul.f32 %v7703_v4, %v7530_v51  ;;  %v2858_v11 = vmul.f32 %v7703_v4, %v7570_v36  ;;  %vm9282_vm0 = vmmov %vm9270_vm1 }
 0x550   : > { %v2860_v47 = vmul.f32 %v7703_v4, %v7590_v20  ;;  %v2862_v12 = vmul.f32 %v7703_v4, %v7606_v23  ;;  %v2885_v39 = vadd.f32 %v7705_v21, %v2850_v19  ;;  %v2940_v28 = vrot.slane %v7749_v15, 7  ;;  %vm9289_vm8 = vmmov %vm9282_vm0 }
 0x551   : > { %v3087_v43 = vsel %vm9281_vm15, %v3043_v6, %v3044_v44  ;;  %v2939_v51 = vrot.slane %v7805_v63, 7  ;;  %v7902_v3 = vmax.f32 %v7757_v53, 0.0  ;;  %v5492_v36 = vpack.i.bf16 %v7843_v18, %v7818_v55  ;;  %vm9290_vm7 = vmmov %vm9282_vm0 }
 0x552   : > { %v7907_v20 = vmax.f32 %v7760_v10, 0.0  ;;  %v7910_v23 = vmax.f32 %v7763_v41, 0.0  ;;  %v7913_v4 = vmax.f32 %v7766_v16, 0.0  ;;  %v7916_v17 = vmax.f32 %v7771_v27, 0.0 }
 0x553   : > { %5488 = vrot.lane.b32.xlu2 %v5487_v42, %s5697_s10  ;;  %v7919_v15 = vmax.f32 %v7774_v32, 0.0  ;;  %v7922_v53 = vmax.f32 %v7801_v45, 0.0  ;;  %v3088_v10 = vsel %vm9282_vm0, %v3042_v31, %v3043_v6  ;;  %v3107_v41 = vsel %vm6325_vm5, %v3087_v43, 0.0 }
 0x554   : > { %v7930_v16 = vmax.f32 %v7777_v58, 0.0  ;;  %v7933_v27 = vmax.f32 %v7783_v29, 0.0  ;;  %v7936_v32 = vmax.f32 %v7789_v22, 0.0  ;;  %v7938_v37 = vmax.f32 %v2885_v39, 0.0 }
 0x555   : > { %v2886_v45 = vadd.f32 %v7705_v21, %v2851_v49  ;;  %v2887_v0 = vadd.f32 %v7705_v21, %v2852_v14  ;;  %v2889_v50 = vadd.f32 %v7705_v21, %v2854_v1  ;;  %v2893_v62 = vadd.f32 %v7705_v21, %v2858_v11  ;;  %v9305_v11 = vld [vmem:[#allocation17_spill] sm:$0xff] }
 0x556   : > { %5483 = vrot.lane.b32.xlu0 %v5482_v33, %s5696_s26  ;;  %9284 = vst [vmem:[#allocation31_spill] sm:$0xff] %v7936_v32  ;;  %v2938_v26 = vrot.slane %v7803_v35, 7  ;;  %v5507_v58 = vpack.i.bf16 %v3107_v41, %v3088_v10  ;;  %v2895_v24 = vadd.f32 %v7705_v21, %v2860_v47  ;;  %v2897_v29 = vadd.f32 %v7705_v21, %v2862_v12 }
 0x557   : > { %v8913_v22 = vrot.slane %v7922_v53, 7  ;;  %v2941_v57 = vrot.slane %v7751_v2, 7  ;;  %v7949_v40 = vmax.f32 %v2886_v45, 0.0  ;;  %v7951_v48 = vmax.f32 %v2887_v0, 0.0 }
 0x558   : > { %v7954_v31 = vmax.f32 %v7795_v61, 0.0  ;;  %v7957_v42 = vmax.f32 %v7798_v38, 0.0  ;;  %v5502_v21 = vpack.i.bf16 %v7865_v56, %v7845_v54  ;;  %v3045_v33 = vrot.slane %v7938_v37, 1 }
 0x559   : > { %v3046_v5 = vrot.slane %v7949_v40, 1  ;;  %v2947_v61 = vrot.slane %v7865_v56, 7  ;;  %v2948_v25 = vrot.slane %v7867_v52, 7  ;;  %v2949_v38 = vrot.slane %v7938_v37, 7 }
 0x55a   : > { %v2942_v60 = vrot.slane %v7811_v59, 7  ;;  %v2943_v6 = vrot.slane %v7816_v9, 7  ;;  %vm9285_vm5 = vcmp.lt.s32.totalorder %v9268_v8, 1  ;;  %v3086_v14 = vsel %vm9290_vm7, %v3044_v44, %v3045_v33  ;;  %v9332_v9 = vld [vmem:[#allocation20_spill] sm:$0xff] }
 0x55b   : > { %5498 = vrot.lane.b32.xlu2 %v5497_v34, %s5697_s10  ;;  %v7975_v19 = vsel %vm9285_vm5, %v2940_v28, %v2941_v57  ;;  %vm9286_vm6 = vmmov %vm9285_vm5  ;;  %v3085_v49 = vsel %vm9289_vm8, %v3045_v33, %v3046_v5  ;;  %v7996_v1 = vmax.f32 %v2889_v50, 0.0  ;;  %v5512_v44 = vpack.i.bf16 %v7938_v37, %v7867_v52 }
 0x55c   : > { %v7979_v34 = vsel %vm9286_vm6, %v2939_v51, %v2940_v28  ;;  %vm9287_vm4 = vmmov %vm9285_vm5  ;;  %v3109_v47 = vsel %vm6096_vm9, %v3085_v49, 0.0  ;;  %v2945_v10 = vrot.slane %v7843_v18, 7  ;;  %v2946_v63 = vrot.slane %v7845_v54, 7 }
 0x55d   : > { %v7983_v56 = vsel %vm9287_vm4, %v2938_v26, %v2939_v51  ;;  %vm9288_vm1 = vmmov %vm9287_vm4  ;;  %v8016_v28 = vpack.i.bf16 %v3109_v47, %v3086_v14  ;;  %v3047_v41 = vrot.slane %v7951_v48, 1  ;;  %v8026_v45 = vmax.f32 %v2893_v62, 0.0 }
 0x55e   : > { %5493 = vrot.lane.b32.xlu0 %v5492_v36, %s5696_s26  ;;  %v7989_v59 = vsel %vm9288_vm1, %v8913_v22, %v2938_v26  ;;  %vm9292_vm11 = vmmov %vm9288_vm1  ;;  %v2944_v36 = vrot.slane %v7818_v55, 7  ;;  %v3048_v0 = vrot.slane %v7902_v3, 1  ;;  %v3049_v55 = vrot.slane %v7996_v1, 1 }
 0x55f   : > { %v8004_v12 = vsel %vm9292_vm11, %v2948_v25, %v2949_v38  ;;  %vm9293_vm3 = vmmov %vm9288_vm1  ;;  %v8049_v26 = vmax.f32 %v2895_v24, 0.0  ;;  %v8056_v33 = vmax.f32 %v2897_v29, 0.0  ;;  %v3052_v24 = vrot.slane %v7913_v4, 1 }
 0x560   : > { %v8008_v43 = vsel %vm9293_vm3, %v2947_v61, %v2948_v25  ;;  %vm9294_vm13 = vmmov %vm9288_vm1 }
 0x561   : > { %v8012_v39 = vsel %vm9294_vm13, %v2942_v60, %v2943_v6  ;;  %vm9295_vm9 = vmmov %vm9288_vm1  ;;  %v3057_v29 = vrot.slane %v8056_v33, 1  ;;  %v2959_v13 = vrot.slane %v8049_v26, 7 }
 0x562   : > { %v8020_v51 = vsel %vm9295_vm9, %v2941_v57, %v2942_v60  ;;  %vm9296_vm10 = vmmov %vm9288_vm1 }
 0x563   : > { %5508 = vrot.lane.b32.xlu2 %v5507_v58, %s5697_s10  ;;  %v8031_v52 = vsel %vm9296_vm10, %v2943_v6, %v2944_v36  ;;  %vm9297_vm15 = vmmov %vm9288_vm1  ;;  %v3051_v6 = vrot.slane %v7910_v23, 1 }
 0x564   : > { %v8039_v18 = vsel %vm9297_vm15, %v2944_v36, %v2945_v10  ;;  %vm9298_vm0 = vmmov %vm9288_vm1 }
 0x565   : > { %v8043_v54 = vsel %vm9298_vm0, %v2946_v63, %v2947_v61  ;;  %vm9299_vm5 = vmmov %vm9298_vm0 }
 0x566   : > { %5503 = vrot.lane.b32.xlu0 %v5502_v21, %s5696_s26  ;;  %v8047_v62 = vsel %vm9299_vm5, %v2945_v10, %v2946_v63  ;;  %vm9300_vm6 = vmmov %vm9290_vm7  ;;  %v3050_v21 = vrot.slane %v7907_v20, 1  ;;  %v3053_v10 = vrot.slane %v8026_v45, 1 }
 0x567   : > { %v3083_v58 = vsel %vm9300_vm6, %v3047_v41, %v3048_v0  ;;  %vm9301_vm4 = vmmov %vm9300_vm6 }
 0x568   : > { %v3084_v57 = vsel %vm9301_vm4, %v3046_v5, %v3047_v41  ;;  %v3111_v61 = vsel %vm6216_vm14, %v3083_v58, 0.0  ;;  %vm9303_vm1 = vmmov %vm9301_vm4  ;;  %vm9306_vm14 = vnez %v9305_v11  ;;  %v9309_v41 = vld [vmem:[#allocation21_spill] sm:$0xff]  ;;  %v2952_v11 = vrot.slane %v7902_v3, 7  ;;  %v9318_v58 = vld [vmem:[#allocation23_spill] sm:$0xff] }
 0x569   : > { %v3082_v60 = vsel %vm9303_vm1, %v3048_v0, %v3049_v55  ;;  %v8064_v49 = vpack.i.bf16 %v3111_v61, %v3084_v57  ;;  %vm9304_vm8 = vmmov %vm9303_vm1  ;;  %vm9310_vm3 = vnez %v9309_v41  ;;  %v2950_v61 = vrot.slane %v7949_v40, 7 }
 0x56a   : > { %v3081_v14 = vsel %vm9304_vm8, %v3049_v55, %v3050_v21  ;;  %vm9307_vm7 = vmmov %vm9303_vm1  ;;  %v3054_v55 = vrot.slane %v7916_v17, 1  ;;  %vm9319_vm4 = vnez %v9318_v58  ;;  %v2966_v58 = vrot.slane %v7936_v32, 7 }
 0x56b   : > { %5513 = vrot.lane.b32.xlu2 %v5512_v44, %s5696_s26  ;;  %v3113_v47 = vsel %vm9306_vm14, %v3081_v14, 0.0  ;;  %v3079_v44 = vsel %vm9307_vm7, %v3051_v6, %v3052_v24  ;;  %vm9308_vm11 = vmmov %vm9303_vm1  ;;  %v3056_v14 = vrot.slane %v7919_v15, 1 }
 0x56c   : > { %v3080_v36 = vsel %vm9308_vm11, %v3050_v21, %v3051_v6  ;;  %v8079_v63 = vpack.i.bf16 %v3113_v47, %v3082_v60  ;;  %v3115_v0 = vsel %vm9310_vm3, %v3079_v44, 0.0  ;;  %vm9311_vm13 = vmmov %vm9303_vm1  ;;  %v2951_v21 = vrot.slane %v7951_v48, 7  ;;  %v9313_v47 = vld [vmem:[#allocation19_spill] sm:$0xff] }
 0x56d   : > { %v8086_v57 = vpack.i.bf16 %v3115_v0, %v3080_v36  ;;  %v3078_v25 = vsel %vm9311_vm13, %v3052_v24, %v3053_v10  ;;  %vm9312_vm9 = vmmov %vm9303_vm1  ;;  %v3055_v6 = vrot.slane %v8049_v26, 1  ;;  %vm9314_vm10 = vnez %v9313_v47 }
 0x56e   : > { %v3077_v60 = vsel %vm9312_vm9, %v3053_v10, %v3054_v55  ;;  %vm9315_vm15 = vmmov %vm9298_vm0  ;;  %v8107_v24 = vsel %vm9298_vm0, %v2949_v38, %v2950_v61  ;;  %v2953_v10 = vrot.slane %v7996_v1, 7  ;;  %v8117_v47 = vmax.f32 %v7780_v30, 0.0 }
 0x56f   : > { %v3117_v44 = vsel %vm9314_vm10, %v3077_v60, 0.0  ;;  %v8101_v36 = vsel %vm9315_vm15, %v2950_v61, %v2951_v21  ;;  %vm9316_vm5 = vmmov %vm9303_vm1  ;;  %v2955_v61 = vrot.slane %v7910_v23, 7  ;;  %v2957_v30 = vrot.slane %v8026_v45, 7 }
 0x570   : > { %v8110_v41 = vpack.i.bf16 %v3117_v44, %v3078_v25  ;;  %v3075_v0 = vsel %vm9316_vm5, %v3055_v6, %v3056_v14  ;;  %vm9317_vm6 = vmmov %vm9303_vm1  ;;  %vm9333_vm10 = vnez %v9332_v9 }
 0x571   : > { %v3076_v60 = vsel %vm9317_vm6, %v3054_v55, %v3055_v6  ;;  %v3119_v37 = vsel %vm9319_vm4, %v3075_v0, 0.0  ;;  %vm9320_vm1 = vmmov %vm9298_vm0  ;;  %v2956_v55 = vrot.slane %v7913_v4, 7  ;;  %v8135_v6 = vmax.f32 %v7786_v46, 0.0 }
 0x572   : > { %v8123_v38 = vsel %vm9320_vm1, %v2952_v11, %v2953_v10  ;;  %vm9321_vm8 = vmmov %vm9298_vm0  ;;  %v8130_v44 = vpack.i.bf16 %v3119_v37, %v3076_v60  ;;  %v2954_v0 = vrot.slane %v7907_v20, 7  ;;  %v2958_v37 = vrot.slane %v7916_v17, 7 }
 0x573   : > { %v8127_v25 = vsel %vm9321_vm8, %v2951_v21, %v2952_v11  ;;  %v3058_v21 = vrot.slane %v7930_v16, 1  ;;  %vm9322_vm14 = vmmov %vm9298_vm0 }
 0x574   : > { %v8144_v11 = vsel %vm9322_vm14, %v2956_v55, %v2957_v30  ;;  %vm9324_vm7 = vmmov %vm9298_vm0 }
 0x575   : > { %9323 = vst [vmem:[#allocation28_spill] sm:$0xff] %v8144_v11  ;;  %v8148_v60 = vsel %vm9324_vm7, %v2955_v61, %v2956_v55  ;;  %vm9326_vm11 = vmmov %vm9298_vm0  ;;  %v2967_v55 = vrot.slane %v7954_v31, 7  ;;  %v2968_v11 = vrot.slane %v7957_v42, 7 }
 0x576   : > { %9325 = vst [vmem:[#allocation48_spill] sm:$0xff] %v8148_v60  ;;  %v8156_v5 = vsel %vm9326_vm11, %v2954_v0, %v2955_v61  ;;  %vm9328_vm3 = vmmov %vm9298_vm0 }
 0x577   : > { %9327 = vst [vmem:[#allocation30_spill] sm:$0xff] %v8156_v5  ;;  %v8160_v50 = vsel %vm9328_vm3, %v2953_v10, %v2954_v0  ;;  %vm9330_vm13 = vmmov %vm9316_vm5  ;;  %v3059_v10 = vrot.slane %v8117_v47, 1  ;;  %v3060_v0 = vrot.slane %v7933_v27, 1 }
 0x578   : > { %9329 = vst [vmem:[#allocation45_spill] sm:$0xff] %v8160_v50  ;;  %v3073_v2 = vsel %vm9330_vm13, %v3057_v29, %v3058_v21  ;;  %vm9331_vm9 = vmmov %vm9316_vm5  ;;  %v2960_v50 = vrot.slane %v7919_v15, 7 }
 0x579   : > { %v3074_v46 = vsel %vm9331_vm9, %v3056_v14, %v3057_v29  ;;  %v3121_v22 = vsel %vm9333_vm10, %v3073_v2, 0.0  ;;  %vm9335_vm15 = vmmov %vm9298_vm0  ;;  %v8181_v29 = vsel %vm9298_vm0, %v2958_v37, %v2959_v13  ;;  %v3071_v9 = vsel %vm9316_vm5, %v3059_v10, %v3060_v0 }
 0x57a   : > { %v8170_v7 = vpack.i.bf16 %v3121_v22, %v3074_v46  ;;  %v8174_v61 = vsel %vm9335_vm15, %v2957_v30, %v2958_v37  ;;  %9337 = vst [vmem:[#allocation24_spill] sm:$0xff] %v8181_v29  ;;  %v3061_v22 = vrot.slane %v8135_v6, 1  ;;  %vm9338_vm6 = vmmov %vm9316_vm5  ;;  %v3062_v30 = vrot.slane %v7936_v32, 1  ;;  %v9347_v29 = vld [vmem:[#allocation18_spill] sm:$0xff] }
 0x57b   : > { %9336 = vst [vmem:[#allocation6_spill] sm:$0xff] %v8174_v61  ;;  %v3072_v14 = vsel %vm9338_vm6, %v3058_v21, %v3059_v10  ;;  %v3063_v46 = vrot.slane %v7954_v31, 1  ;;  %v9339_v61 = vld [vmem:[#allocation11_spill] sm:$0xff]  ;;  %vm9341_vm1 = vmmov %vm9316_vm5  ;;  %v3064_v2 = vrot.slane %v7957_v42, 1  ;;  %vm9348_vm3 = vnez %v9347_v29 }
 0x57c   : > { %9334 = vst [vmem:[#allocation46_spill] sm:$0xff] %v8170_v7  ;;  %vm9340_vm4 = vnez %v9339_v61  ;;  %v3070_v37 = vsel %vm9341_vm1, %v3060_v0, %v3061_v22  ;;  %vm9342_vm8 = vmmov %vm9341_vm1  ;;  %v3065_v32 = vrot.slane %v7922_v53, 1 }
 0x57d   : > { %v3123_v60 = vsel %vm9340_vm4, %v3071_v9, 0.0  ;;  %v3069_v21 = vsel %vm9342_vm8, %v3061_v22, %v3062_v30  ;;  %vm9343_vm14 = vmmov %vm9341_vm1  ;;  %v9344_v9 = vld [vmem:[#allocation15_spill] sm:$0xff] }
 0x57e   : > { %v8199_v7 = vpack.i.bf16 %v3123_v60, %v3072_v14  ;;  %v3068_v10 = vsel %vm9343_vm14, %v3062_v30, %v3063_v46  ;;  %vm9345_vm7 = vnez %v9344_v9  ;;  %vm9346_vm11 = vmmov %vm9341_vm1  ;;  %v2961_v60 = vrot.slane %v8056_v33, 7 }
 0x57f   : > { %v3125_v5 = vsel %vm9345_vm7, %v3069_v21, 0.0  ;;  %v3067_v0 = vsel %vm9346_vm11, %v3063_v46, %v3064_v2  ;;  %v2963_v30 = vrot.slane %v8117_v47, 7  ;;  %vm9349_vm13 = vmmov %vm9298_vm0 }
 0x580   : > { %v8213_v14 = vpack.i.bf16 %v3125_v5, %v3070_v37  ;;  %v3127_v22 = vsel %vm9348_vm3, %v3067_v0, 0.0  ;;  %v8223_v21 = vsel %vm9349_vm13, %v2960_v50, %v2961_v60  ;;  %vm9350_vm9 = vmmov %vm9298_vm0  ;;  %v9351_v5 = vrot.slane %v7930_v16, 7 }
 0x581   : > { %v8219_v61 = vpack.i.bf16 %v3127_v22, %v3068_v10  ;;  %v8227_v46 = vsel %vm9350_vm9, %v2959_v13, %v2960_v50  ;;  %vm9352_vm10 = vmmov %vm9298_vm0  ;;  %v9356_v0 = vrot.slane %v7803_v35, 1  ;;  %v9358_v50 = vrot.slane %v7922_v53, 7 }
 0x582   : > { %v8233_v29 = vsel %vm9352_vm10, %v2961_v60, %v9351_v5  ;;  %v9353_v37 = vmov %v9351_v5  ;;  %vm9354_vm15 = vmmov %vm9298_vm0  ;;  %v2965_v5 = vrot.slane %v8135_v6, 7  ;;  %v9365_v35 = vrot.slane %v7933_v27, 7 }
 0x583   : > { %v8239_v10 = vsel %vm9354_vm15, %v9353_v37, %v2963_v30  ;;  %vm9355_vm0 = vmmov %vm9341_vm1  ;;  %v9363_v37 = vld [vmem:[#allocation22_spill] sm:$0xff]  ;;  %vm9376_vm13 = vcmask 261120   ;;  %vm9378_vm10 = vcmask 523264  }
 0x584   : > { %v3066_v9 = vsel %vm9355_vm0, %v3064_v2, %v3065_v32  ;;  %vm9357_vm5 = vmmov %vm9355_vm0  ;;  %vm9364_vm1 = vnez %v9363_v37  ;;  %vm9380_vm0 = vcmask 781312  }
 0x585   : > { %v3097_v13 = vsel %vm9357_vm5, %v3065_v32, %v9356_v0  ;;  %vm9359_vm6 = vmmov %vm9350_vm9 }
 0x586   : > { %v8251_v60 = vsel %vm9359_vm6, %v2968_v11, %v9358_v50  ;;  %vm9361_vm4 = vmmov %vm9359_vm6  ;;  %v3129_v2 = vsel %vm9364_vm1, %v3097_v13, 0.0 }
 0x587   : > { %9360 = vst [vmem:[#allocation47_spill] sm:$0xff] %v8251_v60  ;;  %v8255_v22 = vsel %vm9361_vm4, %v2967_v55, %v2968_v11  ;;  %vm9366_vm8 = vmmov %vm9361_vm4  ;;  %v8270_v50 = vpack.i.bf16 %v3129_v2, %v3066_v9  ;;  %v9370_v11 = vmov %v9365_v35 }
 0x588   : > { %9362 = vst [vmem:[#allocation29_spill] sm:$0xff] %v8255_v22  ;;  %v8264_v32 = vsel %vm9366_vm8, %v2963_v30, %v9365_v35  ;;  %vm9368_vm14 = vmmov %vm9361_vm4 }
 0x589   : > { %9367 = vst [vmem:[#allocation7_spill] sm:$0xff] %v8264_v32  ;;  %v8268_v0 = vsel %vm9368_vm14, %v2966_v58, %v2967_v55  ;;  %vm9371_vm7 = vmmov %vm9361_vm4  ;;  %v9374_v32 = vld [vmem:[#allocation33_spill] sm:$0xff] }
 0x58a   : > { %9369 = vst [vmem:[#allocation10_spill] sm:$0xff] %v8268_v0  ;;  %v8276_v60 = vsel %vm9371_vm7, %v9370_v11, %v2965_v5  ;;  %vm9373_vm11 = vmmov %vm9361_vm4  ;;  %vm9375_vm3 = vnez %v9374_v32 }
 0x58b   : > { %9372 = vst [vmem:[#allocation12_spill] sm:$0xff] %v8276_v60  ;;  %v8280_v13 = vsel %vm9373_vm11, %v2965_v5, %v2966_v58  ;;  %v3004_v55 = vsel %vm9375_vm3, %v7979_v34, 0.0  ;;  %vm9377_vm9 = vmmov %vm9376_vm13 }
 0x58c   : > { %vm9379_vm15 = vmmov %vm9378_vm10 }
 0x58d   : > { %vm9381_vm5 = vmmov %vm9380_vm0 }
 0x58e   : > { %vm9385_vm4 = vmmov %vm9377_vm9 }
 0x58f   : > { %vm9386_vm1 = vmmov %vm9385_vm4 }
 0x590   : > { %vm9387_vm8 = vmmov %vm9378_vm10 }
 0x591   : > { %vm9388_vm14 = vmmov %vm9387_vm8 }
 0x592   : > { %vm9389_vm7 = vmmov %vm9380_vm0 }
 0x593   : > { %vm9390_vm11 = vmmov %vm9380_vm0 }
 0x59d   : > { %v5469_v37 = vpop.permute.xlu2 %5468 }
 0x59e   : > { %v5471_v22 = vunpack.i.h.bf16 %v5469_v37  ;;  %v5470_v30 = vunpack.i.l.bf16 %v5469_v37 }
 0x5a0   : > { %v3388_v0 = vsel %vm9376_vm13, %v3004_v55, %v5470_v30  ;;  %v3389_v11 = vsel %vm9377_vm9, %v7975_v19, %v5471_v22  ;;  %v9382_v19 = vpack.i.bf16 %v7951_v48, %v7949_v40  ;;  %vm9393_vm13 = vmmov %vm9386_vm1 }
 0x5a1   : > { %vm9394_vm9 = vmmov %vm9386_vm1 }
 0x5a5   : > { %v5479_v35 = vpop.permute.xlu2 %5478 }
 0x5a6   : > { %v5481_v9 = vunpack.i.h.bf16 %v5479_v35  ;;  %v5480_v2 = vunpack.i.l.bf16 %v5479_v35 }
 0x5a8   : > { %v3420_v60 = vsel %vm9378_vm10, %v3388_v0, %v5480_v2  ;;  %v3421_v8 = vsel %vm9379_vm15, %v3389_v11, %v5481_v9  ;;  %v9383_v0 = vld [vmem:[#allocation35_spill] sm:$0xff]  ;;  %vm9395_vm10 = vmmov %vm9387_vm8 }
 0x5a9   : > { %v3452_v58 = vpack.c.bf16 %v3420_v60, %v3420_v60  ;;  %v3453_v5 = vpack.c.bf16 %v3421_v8, %v3421_v8  ;;  %vm9384_vm6 = vnez %v9383_v0  ;;  %vm9396_vm15 = vmmov %vm9387_vm8 }
 0x5aa   : > { %v3002_v30 = vsel %vm9384_vm6, %v7989_v59, 0.0 }
 0x5ab   : > { %3484 = vst.msk [vmem:[#allocation2 + $0x10] sm:$0xf] %vm9380_vm0, %v3452_v58 }
 0x5ac   : > { %3485 = vst.msk [vmem:[#allocation2 + $0x14] sm:$0xf] %vm9381_vm5, %v3453_v5  ;;  %vm9397_vm5 = vmmov %vm9380_vm0 }
 0x5ad   : > { %v5489_v11 = vpop.permute.xlu2 %5488 }
 0x5b3   : > { %v8292_v37 = vld [vmem:[#allocation2 + $0x10] sm:$0xff] }
 0x5b4   : > { %3637 = vrot.lane.b32.xlu2 %v8292_v37, %s8916_s12  ;;  %3672 = vrot.lane.b32.xlu0 %v8292_v37, %s5697_s10 }
 0x5b8   : > { %v5464_v34 = vpop.permute.xlu0 %5463 }
 0x5b9   : > { %v5466_v60 = vunpack.i.h.bf16 %v5464_v34  ;;  %v5465_v22 = vunpack.i.l.bf16 %v5464_v34  ;;  %v5491_v34 = vunpack.i.h.bf16 %v5489_v11 }
 0x5bb   : > { %v3386_v9 = vsel %vm9385_vm4, %v3002_v30, %v5465_v22  ;;  %v3387_v2 = vsel %vm9386_vm1, %v7983_v56, %v5466_v60  ;;  %v9391_v22 = vld [vmem:[#allocation32_spill] sm:$0xff]  ;;  %vm9400_vm4 = vmmov %vm9386_vm1 }
 0x5bc   : > { %5523 = vrot.lane.b32.xlu2 %v9382_v19, %s5696_s26  ;;  %5518 = vrot.lane.b32.xlu0 %v8016_v28, %s5697_s10  ;;  %v5490_v19 = vunpack.i.l.bf16 %v5489_v11  ;;  %vm9392_vm3 = vnez %v9391_v22 }
 0x5bd   : > { %v3006_v56 = vsel %vm9392_vm3, %v8020_v51, 0.0  ;;  %vm9405_vm3 = vmmov %vm9386_vm1 }
 0x5c0   : > { %v5474_v32 = vpop.permute.xlu0 %5473 }
 0x5c1   : > { %v5476_v35 = vunpack.i.h.bf16 %v5474_v32  ;;  %v5475_v55 = vunpack.i.l.bf16 %v5474_v32 }
 0x5c3   : > { %v3418_v40 = vsel %vm9387_vm8, %v3386_v9, %v5475_v55  ;;  %v3419_v48 = vsel %vm9388_vm14, %v3387_v2, %v5476_v35  ;;  %v5499_v35 = vpop.permute.xlu2 %5498  ;;  %vm9401_vm14 = vmmov %vm9387_vm8 }
 0x5c4   : > { %v3450_v28 = vpack.c.bf16 %v3418_v40, %v3418_v40  ;;  %v3451_v8 = vpack.c.bf16 %v3419_v48, %v3419_v48  ;;  %v5501_v40 = vunpack.i.h.bf16 %v5499_v35  ;;  %v5500_v48 = vunpack.i.l.bf16 %v5499_v35 }
 0x5c6   : > { %3482 = vst.msk [vmem:[#allocation2 + $0x8] sm:$0xf] %vm9389_vm7, %v3450_v28  ;;  %v9398_v28 = vld [vmem:[#allocation36_spill] sm:$0xff]  ;;  %vm9402_vm7 = vmmov %vm9380_vm0 }
 0x5c7   : > { %3483 = vst.msk [vmem:[#allocation2 + $0xc] sm:$0xf] %vm9390_vm11, %v3451_v8  ;;  %vm9399_vm6 = vnez %v9398_v28  ;;  %vm9403_vm11 = vmmov %vm9380_vm0 }
 0x5c8   : > { %v5484_v58 = vpop.permute.xlu0 %5483  ;;  %v3008_v8 = vsel %vm9399_vm6, %v8031_v52, 0.0  ;;  %vm9417_vm6 = vmmov %vm9386_vm1 }
 0x5c9   : > { %v5486_v59 = vunpack.i.h.bf16 %v5484_v58  ;;  %v5485_v5 = vunpack.i.l.bf16 %v5484_v58 }
 0x5cb   : > { %v3391_v60 = vsel %vm9393_vm13, %v8012_v39, %v5486_v59  ;;  %v3390_v32 = vsel %vm9394_vm9, %v3006_v56, %v5485_v5  ;;  %v5509_v56 = vpop.permute.xlu2 %5508  ;;  %vm9406_vm13 = vmmov %vm9386_vm1 }
 0x5cc   : > { %v3423_v0 = vsel %vm9395_vm10, %v3391_v60, %v5491_v34  ;;  %v3422_v30 = vsel %vm9396_vm15, %v3390_v32, %v5490_v19  ;;  %vm9407_vm9 = vmmov %vm9387_vm8 }
 0x5cd   : > { %v3455_v55 = vpack.c.bf16 %v3423_v0, %v3423_v0  ;;  %v3454_v9 = vpack.c.bf16 %v3422_v30, %v3422_v30  ;;  %v5511_v0 = vunpack.i.h.bf16 %v5509_v56  ;;  %v5510_v30 = vunpack.i.l.bf16 %v5509_v56  ;;  %vm9408_vm10 = vmmov %vm9387_vm8  ;;  %v5132_v56 = vld [vmem:[%s8829_s6 + $0x48] sm:$0xff] }
 0x5ce   : > { %v8322_v2 = vld [vmem:[#allocation2 + $0x8] sm:$0xff]  ;;  %vm9409_vm15 = vmmov %vm9380_vm0 }
 0x5cf   : > { %3487 = vst.msk [vmem:[#allocation2 + $0x1c] sm:$0xf] %vm9380_vm0, %v3455_v55  ;;  %3635 = vrot.lane.b32.xlu1 %v8322_v2, %s8916_s12  ;;  %v3010_v55 = vsel %vm6827_vm12, %v8047_v62, 0.0  ;;  %v9410_v62 = vpack.i.bf16 %v7996_v1, %v7902_v3  ;;  %v9411_v3 = vpack.i.bf16 %v7910_v23, %v7907_v20  ;;  %v9412_v1 = vpack.i.bf16 %v8026_v45, %v7913_v4  ;;  %v5130_v20 = vld [vmem:[%s8829_s6 + $0x38] sm:$0xff]  ;;  %v5137_v23 = vld [vmem:[%s8829_s6 + $0x70] sm:$0xff]  ;;  %v5139_v4 = vld [vmem:[%s8829_s6 + $0x80] sm:$0xff] }
 0x5d0   : > { %3486 = vst.msk [vmem:[#allocation2 + $0x18] sm:$0xf] %vm9397_vm5, %v3454_v9  ;;  %v5494_v11 = vpop.permute.xlu0 %5493  ;;  %3992 = vmatpush.bf16.msrb.mxu3 %v5130_v20  ;;  %v5129_v45 = vld [vmem:[%s8829_s6 + $0x30] sm:$0xff]  ;;  %vm9414_vm12 = vmmov %vm9386_vm1 }
 0x5d1   : > { %v5496_v39 = vunpack.i.h.bf16 %v5494_v11  ;;  %v5495_v51 = vunpack.i.l.bf16 %v5494_v11 }
 0x5d3   : > { %v3393_v58 = vsel %vm9400_vm4, %v8039_v18, %v5496_v39  ;;  %v3392_v59 = vsel %vm9386_vm1, %v3008_v8, %v5495_v51  ;;  %v5136_v8 = vld [vmem:[%s8829_s6 + $0x68] sm:$0xff]  ;;  %vm9418_vm4 = vmmov %vm9386_vm1 }
 0x5d4   : > { %v3425_v5 = vsel %vm9387_vm8, %v3393_v58, %v5501_v40  ;;  %v3424_v34 = vsel %vm9401_vm14, %v3392_v59, %v5500_v48  ;;  %3993 = vmatpush.bf16.msrb.mxu3 %v5129_v45  ;;  %v5127_v58 = vld [vmem:[%s8829_s6 + $0x20] sm:$0xff]  ;;  %vm9419_vm1 = vmmov %vm9387_vm8 }
 0x5d5   : > { %v3457_v19 = vpack.c.bf16 %v3425_v5, %v3425_v5  ;;  %v3456_v22 = vpack.c.bf16 %v3424_v34, %v3424_v34  ;;  %v5135_v59 = vld [vmem:[%s8829_s6 + $0x60] sm:$0xff]  ;;  %v5134_v5 = vld [vmem:[%s8829_s6 + $0x58] sm:$0xff]  ;;  %v5125_v34 = vld [vmem:[%s8829_s6 + $0x10] sm:$0xff] }
 0x5d6   : > { %vm9420_vm8 = vmmov %vm9419_vm1 }
 0x5d7   : > { %3489 = vst.msk [vmem:[#allocation2 + $0x24] sm:$0xf] %vm9402_vm7, %v3457_v19  ;;  %v8337_v60 = vld [vmem:[#allocation2 + $0x18] sm:$0xff]  ;;  %5528 = vrot.lane.b32.xlu1 %v8064_v49, %s5697_s10  ;;  %v5133_v19 = vld [vmem:[%s8829_s6 + $0x50] sm:$0xff]  ;;  %vm9421_vm14 = vmmov %vm9380_vm0 }
 0x5d8   : > { %3488 = vst.msk [vmem:[#allocation2 + $0x20] sm:$0xf] %vm9403_vm11, %v3456_v22  ;;  %v5504_v32 = vpop.permute.xlu0 %5503  ;;  %3674 = vrot.lane.b32.xlu0 %v8337_v60, %s5697_s10  ;;  %v5124_v22 = vld [vmem:[%s8829_s6 + $0x8] sm:$0xff]  ;;  %vm9422_vm7 = vmmov %vm9380_vm0 }
 0x5d9   : > { %v5506_v52 = vunpack.i.h.bf16 %v5504_v32  ;;  %v5505_v18 = vunpack.i.l.bf16 %v5504_v32  ;;  %v5123_v32 = vld [vmem:[%s8829_s6] sm:$0xff]  ;;  %vm9423_vm11 = vmmov %vm9405_vm3 }
 0x5db   : > { %v3395_v9 = vsel %vm9405_vm3, %v8043_v54, %v5506_v52  ;;  %v3394_v11 = vsel %vm9406_vm13, %v3010_v55, %v5505_v18  ;;  %v5138_v54 = vld [vmem:[%s8829_s6 + $0x78] sm:$0xff]  ;;  %v5131_v52 = vld [vmem:[%s8829_s6 + $0x40] sm:$0xff]  ;;  %vm9424_vm3 = vcmask 785408   ;;  %vm9425_vm13 = vmmov %vm9419_vm1 }
 0x5dc   : > { %v3427_v39 = vsel %vm9407_vm9, %v3395_v9, %v5511_v0  ;;  %v3426_v49 = vsel %vm9408_vm10, %v3394_v11, %v5510_v30  ;;  %4081 = vmatpush.bf16.msrb.mxu2 %v5138_v54  ;;  %v5514_v0 = vpop.permute.xlu2 %5513  ;;  %v9415_v9 = vld [vmem:[#allocation34_spill] sm:$0xff]  ;;  %vm9426_vm9 = vmmov %vm9418_vm4 }
 0x5dd   : > { %v3459_v51 = vpack.c.bf16 %v3427_v39, %v3427_v39  ;;  %v3458_v40 = vpack.c.bf16 %v3426_v49, %v3426_v49  ;;  %v5516_v30 = vunpack.i.h.bf16 %v5514_v0  ;;  %v5515_v35 = vunpack.i.l.bf16 %v5514_v0 }
 0x5de   : > { %vm9416_vm5 = vnez %v9415_v9 }
 0x5df   : > { %3491 = vst.msk [vmem:[#allocation2 + $0x2c] sm:$0xf] %vm9409_vm15, %v3459_v51  ;;  %v8353_v48 = vld [vmem:[#allocation2 + $0x20] sm:$0xff]  ;;  %5533 = vrot.lane.b32.xlu1 %v9410_v62, %s5696_s26  ;;  %v3012_v11 = vsel %vm9416_vm5, %v8008_v43, 0.0  ;;  %v3397_v51 = vsel %vm9417_vm6, %v8004_v12, %v5516_v30  ;;  %vm9430_vm15 = vmmov %vm9418_vm4 }
 0x5e0   : > { %3490 = vst.msk [vmem:[#allocation2 + $0x28] sm:$0xf] %vm9380_vm0, %v3458_v40  ;;  %3676 = vrot.lane.b32.xlu2 %v8353_v48, %s5697_s10  ;;  %3639 = vrot.lane.b32.xlu0 %v8337_v60, %s8916_s12  ;;  %v3396_v40 = vsel %vm9418_vm4, %v3012_v11, %v5515_v35  ;;  %v5067_v62 = vld [vmem:[%s8830_s7] sm:$0xff]  ;;  %vm9431_vm0 = vmmov %vm9418_vm4 }
 0x5e1   : > { %4082 = vmatpush.bf16.msrb.mxu2 %v5137_v23  ;;  %v5105_v23 = vld [vmem:[#allocation2] sm:$0xff]  ;;  %vm9433_vm5 = vmmov %vm9419_vm1 }
 0x5e2   : > { %vm9434_vm6 = vmmov %vm9419_vm1 }
 0x5e3   : > { %vm9435_vm4 = vmmov %vm9422_vm7 }
 0x5e5   : > { %4083 = vmatpush.bf16.msrb.mxu2 %v5136_v8 }
 0x5e7   : > { %v8367_v28 = vld [vmem:[#allocation2 + $0x28] sm:$0xff] }
 0x5e8   : > { %3641 = vrot.lane.b32.xlu2 %v8353_v48, %s8916_s12  ;;  %5538 = vrot.lane.b32.xlu0 %v8079_v63, %s5697_s10  ;;  %v5140_v63 = vld [vmem:[%s8829_s6 + $0x88] sm:$0xff] }
 0x5e9   : > { %3678 = vrot.lane.b32.xlu1 %v8367_v28, %s5697_s10  ;;  %4176 = vmatpush.bf16.msrb.mxu0 %v5140_v63 }
 0x5ea   : > { %4084 = vmatpush.bf16.msrb.mxu2 %v5135_v59 }
 0x5ed   : > { %4177 = vmatpush.bf16.msrb.mxu0 %v5139_v4 }
 0x5ee   : > { %4085 = vmatpush.bf16.msrb.mxu2 %v5134_v5  ;;  %v9428_v5 = vld [vmem:[#allocation41_spill] sm:$0xff] }
 0x5ef   : > { %vm9429_vm10 = vnez %v9428_v5 }
 0x5f0   : > { %5548 = vrot.lane.b32.xlu2 %v8086_v57, %s5697_s10  ;;  %5543 = vrot.lane.b32.xlu0 %v9411_v3, %s5696_s26  ;;  %v9413_v57 = vpack.i.bf16 %v8049_v26, %v7916_v17  ;;  %v5068_v17 = vld [vmem:[%s8830_s7 + $0x8] sm:$0xff]  ;;  %v5126_v26 = vld [vmem:[%s8829_s6 + $0x18] sm:$0xff] }
 0x5f1   : > { %3643 = vrot.lane.b32.xlu1 %v8367_v28, %s8916_s12  ;;  %4405 = vmatpush.bf16.msrb.mxu1 %v5068_v17 }
 0x5f2   : > { %4086 = vmatpush.bf16.msrb.mxu2 %v5133_v19 }
 0x5f5   : > { %4406 = vmatpush.bf16.msrb.mxu1 %v5067_v62  ;;  %v9441_v62 = vld [vmem:[#allocation43_spill] sm:$0xff] }
 0x5f6   : > { %4087 = vmatpush.bf16.msrb.mxu2 %v5132_v56 }
 0x5f8   : > { %5553 = vrot.lane.b32.xlu2 %v9412_v1, %s5696_s26  ;;  %v5051_v1 = vld [vmem:[%s5798_s21] sm:$0xff] }
 0x5f9   : > { %5558 = vrot.lane.b32.xlu1 %v8110_v41, %s5697_s10  ;;  %v5128_v41 = vld [vmem:[%s8829_s6 + $0x28] sm:$0xff]  ;;  %5029 = vmatmul.msk.bf16.vlgmr.msrb.gmra.mxu1 %vm9423_vm11, %v5051_v1  ;;  %vm9442_vm11 = vnez %v9441_v62  ;;  %v9466_v62 = vld [vmem:[#allocation28_spill] sm:$0xff] }
 0x5fa   : > { %3994 = vmatpush.bf16.msrb.mxu3 %v5128_v41  ;;  %4088 = vmatpush.bf16.msrb.mxu2 %v5131_v52 }
 0x5fe   : > { %3995 = vmatpush.bf16.msrb.mxu3 %v5127_v58 }
 0x601   : > { %5563 = vrot.lane.b32.xlu1 %v9413_v57, %s5696_s26  ;;  %v5052_v57 = vld [vmem:[%s5798_s21 + $0x8] sm:$0xff] }
 0x602   : > { %3996 = vmatpush.bf16.msrb.mxu3 %v5126_v26 }
 0x606   : > { %3997 = vmatpush.bf16.msrb.mxu3 %v5125_v34  ;;  %v3014_v34 = vsel %vm9429_vm10, %v8107_v24, 0.0  ;;  %vm9446_vm10 = vmmov %vm9433_vm5 }
 0x609   : > { %5030 = vmatmul.msk.bf16.gmra.mxu1 %vm9426_vm9, %v5052_v57  ;;  %vm9445_vm9 = vmmov %vm9431_vm0 }
 0x60a   : > { %3998 = vmatpush.bf16.msrb.mxu3 %v5124_v22 }
 0x60e   : > { %3999 = vmatpush.bf16.msrb.mxu3 %v5123_v32  ;;  %v3638_v12 = vpop.permute.xlu2 %3637 }
 0x616   : > { %v5524_v4 = vpop.permute.xlu2 %5523 }
 0x617   : > { %v5526_v58 = vunpack.i.h.bf16 %v5524_v4  ;;  %v5525_v59 = vunpack.i.l.bf16 %v5524_v4 }
 0x619   : > { %v3399_v32 = vsel %vm9430_vm15, %v8101_v36, %v5526_v58  ;;  %v3398_v52 = vsel %vm9431_vm0, %v3014_v34, %v5525_v59  ;;  %vm9447_vm15 = vmmov %vm9433_vm5  ;;  %v9451_v34 = vld [vmem:[#allocation45_spill] sm:$0xff] }
 0x626   : > { %v3673_v18 = vpop.permute.xlu0 %3672 }
 0x627   : > { %4941 = vmatmul.msk.bf16.vlgmr.msrb.gmra.mxu0 %vm9414_vm12, %v3673_v18  ;;  %vm9432_vm12 = vmmov %vm9431_vm0 }
 0x62e   : > { %v5519_v55 = vpop.permute.xlu0 %5518 }
 0x62f   : > { %v5521_v39 = vunpack.i.h.bf16 %v5519_v55  ;;  %v5520_v49 = vunpack.i.l.bf16 %v5519_v55 }
 0x631   : > { %v3429_v54 = vsel %vm9419_vm1, %v3397_v51, %v5521_v39  ;;  %v3428_v3 = vsel %vm9420_vm8, %v3396_v40, %v5520_v49  ;;  %vm9436_vm1 = vmmov %vm9435_vm4  ;;  %v5053_v39 = vld [vmem:[%s5798_s21 + $0x10] sm:$0xff] }
 0x632   : > { %v3461_v63 = vpack.c.bf16 %v3429_v54, %v3429_v54  ;;  %v3460_v20 = vpack.c.bf16 %v3428_v3, %v3428_v3  ;;  %vm9437_vm8 = vmmov %vm9424_vm3  ;;  %v3016_v54 = vsel %vm9442_vm11, %v8127_v25, 0.0  ;;  %v5054_v25 = vld [vmem:[%s5798_s21 + $0x18] sm:$0xff] }
 0x633   : > { %v3710_v9 = vsel %vm9437_vm8, %v8322_v2, %v3638_v12  ;;  %vm9459_vm11 = vmmov %vm9434_vm6 }
 0x634   : > { %3493 = vst.msk [vmem:[#allocation2 + $0x34] sm:$0xf] %vm9421_vm14, %v3461_v63  ;;  %vm9438_vm14 = vmmov %vm9433_vm5 }
 0x635   : > { %3492 = vst.msk [vmem:[#allocation2 + $0x30] sm:$0xf] %vm9422_vm7, %v3460_v20  ;;  %vm9439_vm7 = vmmov %vm9431_vm0 }
 0x636   : > { %5031 = vmatmul.msk.bf16.gmra.mxu1 %vm9439_vm7, %v5053_v39  ;;  %vm9458_vm7 = vmmov %vm9434_vm6  ;;  %v9464_v39 = vld [vmem:[#allocation48_spill] sm:$0xff] }
 0x63a   : > { %v3677_v17 = vpop.permute.xlu2 %3676 }
 0x63c   : > { %v8463_v43 = vld [vmem:[#allocation2 + $0x30] sm:$0xff] }
 0x63d   : > { %3680 = vrot.lane.b32.xlu0 %v8463_v43, %s5697_s10 }
 0x641   : > { %v3636_v45 = vpop.permute.xlu1 %3635 }
 0x642   : > { %v3706_v41 = vsel %vm9424_vm3, %v5105_v23, %v3636_v45  ;;  %v3769_v8 = vsel %vm9425_vm13, %v3636_v45, %v3673_v18  ;;  %v8486_v55 = vpop.permute.xlu2 %3641  ;;  %vm9443_vm3 = vmmov %vm9431_vm0 }
 0x643   : > { %4000 = vmatmul.bf16.vlgmr.msrb.gmra.mxu3 %v3706_v41  ;;  %4089 = vmatmul.bf16.vlgmr.msrb.gmra.mxu2 %v3769_v8  ;;  %vm9444_vm13 = vmmov %vm9431_vm0 }
 0x644   : > { %vm9448_vm0 = vmmov %vm9436_vm1 }
 0x645   : > { %3645 = vrot.lane.b32.xlu0 %v8463_v43, %s9427_s20 }
 0x649   : > { %v5529_v26 = vpop.permute.xlu1 %5528 }
 0x64a   : > { %v5531_v19 = vunpack.i.h.bf16 %v5529_v26  ;;  %v5530_v22 = vunpack.i.l.bf16 %v5529_v26  ;;  %v3675_v56 = vpop.permute.xlu0 %3674 }
 0x64b   : > { %4942 = vmatmul.msk.bf16.gmra.mxu0 %vm9432_vm12, %v3675_v56  ;;  %v3772_v11 = vsel %vm9438_vm14, %v3638_v12, %v3675_v56  ;;  %vm9449_vm12 = vmmov %vm9448_vm0  ;;  %v9454_v56 = vld [vmem:[#allocation30_spill] sm:$0xff] }
 0x64c   : > { %v3431_v18 = vsel %vm9433_vm5, %v3399_v32, %v5531_v19  ;;  %v3430_v0 = vsel %vm9434_vm6, %v3398_v52, %v5530_v22  ;;  %vm9450_vm5 = vmmov %vm9437_vm8  ;;  %v9452_v19 = vld [vmem:[#allocation42_spill] sm:$0xff] }
 0x64d   : > { %v3463_v30 = vpack.c.bf16 %v3431_v18, %v3431_v18  ;;  %v3462_v35 = vpack.c.bf16 %v3430_v0, %v3430_v0  ;;  %5568 = vrot.lane.b32.xlu0 %v8130_v44, %s5697_s10  ;;  %v9440_v44 = vpack.i.bf16 %v8056_v33, %v7919_v15  ;;  %v5549_v15 = vpop.permute.xlu2 %5548 }
 0x64e   : > { %v5551_v26 = vunpack.i.h.bf16 %v5549_v15  ;;  %v5550_v5 = vunpack.i.l.bf16 %v5549_v15 }
 0x64f   : > { %3495 = vst.msk [vmem:[#allocation2 + $0x3c] sm:$0xf] %vm9435_vm4, %v3463_v30  ;;  %vm9453_vm4 = vnez %v9452_v19 }
 0x650   : > { %3494 = vst.msk [vmem:[#allocation2 + $0x38] sm:$0xf] %vm9436_vm1, %v3462_v35  ;;  %v3018_v22 = vsel %vm9453_vm4, %v9451_v34, 0.0  ;;  %vm9455_vm1 = vmmov %vm9443_vm3 }
 0x651   : > { %v5534_v24 = vpop.permute.xlu1 %5533  ;;  %vm9456_vm8 = vmmov %vm9455_vm1 }
 0x652   : > { %v3640_v36 = vpop.permute.xlu0 %3639  ;;  %v5536_v51 = vunpack.i.h.bf16 %v5534_v24  ;;  %v5535_v40 = vunpack.i.l.bf16 %v5534_v24  ;;  %vm9457_vm14 = vmmov %vm9455_vm1 }
 0x653   : > { %4005 = vmatmul.bf16.gmra.mxu3 %v3710_v9  ;;  %4094 = vmatmul.bf16.gmra.mxu2 %v3772_v11  ;;  %v3775_v41 = vsel %vm9434_vm6, %v3640_v36, %v3677_v17  ;;  %v9461_v9 = vld [vmem:[#allocation46_spill] sm:$0xff] }
 0x654   : > { %v3401_v33 = vsel %vm9444_vm13, %v8123_v38, %v5536_v51  ;;  %v3400_v20 = vsel %vm9445_vm9, %v3016_v54, %v5535_v40  ;;  %v3714_v38 = vsel %vm9450_vm5, %v8292_v37, %v3640_v36  ;;  %5032 = vmatmul.msk.bf16.gmra.mxu1 %vm9457_vm14, %v5054_v25  ;;  %vm9462_vm13 = vmmov %vm9448_vm0  ;;  %v3020_v51 = vsel %vm7175_vm2, %v9464_v39, 0.0  ;;  %v5057_v39 = vld [vmem:[%s5798_s21 + $0x30] sm:$0xff] }
 0x655   : > { %5573 = vrot.lane.b32.xlu0 %v9440_v44, %s5696_s26  ;;  %v5554_v37 = vpop.permute.xlu2 %5553  ;;  %vm9463_vm9 = vmmov %vm9455_vm1 }
 0x656   : > { %v5556_v24 = vunpack.i.h.bf16 %v5554_v37  ;;  %v5555_v36 = vunpack.i.l.bf16 %v5554_v37  ;;  %vm9481_vm14 = vmmov %vm9456_vm8 }
 0x657   : > { %v8497_v49 = vld [vmem:[#allocation2 + $0x38] sm:$0xff] }
 0x658   : > { %3682 = vrot.lane.b32.xlu2 %v8497_v49, %s5697_s10 }
 0x65a   : > { %v5539_v2 = vpop.permute.xlu0 %5538 }
 0x65b   : > { %v5541_v3 = vunpack.i.h.bf16 %v5539_v2  ;;  %v5540_v1 = vunpack.i.l.bf16 %v5539_v2  ;;  %v3679_v63 = vpop.permute.xlu1 %3678  ;;  %4943 = vmatmul.msk.bf16.gmra.mxu0 %vm9443_vm3, %v3677_v17  ;;  %vm9460_vm3 = vmmov %vm9448_vm0 }
 0x65c   : > { %vm9471_vm5 = vmmov %vm9460_vm3 }
 0x65d   : > { %v3432_v12 = vsel %vm9446_vm10, %v3400_v20, %v5540_v1  ;;  %v3433_v23 = vsel %vm9447_vm15, %v3401_v33, %v5541_v3  ;;  %vm9467_vm10 = vmmov %vm9455_vm1 }
 0x65e   : > { %v3464_v4 = vpack.c.bf16 %v3432_v12, %v3432_v12  ;;  %v3465_v45 = vpack.c.bf16 %v3433_v23, %v3433_v23  ;;  %v3405_v54 = vsel %vm9467_vm10, %v9466_v62, %v5556_v24  ;;  %vm9468_vm15 = vmmov %vm9455_vm1  ;;  %v9472_v12 = vpack.i.bf16 %v8117_v47, %v7930_v16 }
 0x65f   : > { %v3404_v3 = vsel %vm9468_vm15, %v3020_v51, %v5555_v36  ;;  %vm9473_vm2 = vmmov %vm9460_vm3 }
 0x660   : > { %3496 = vst.msk [vmem:[#allocation2 + $0x40] sm:$0xf] %vm9448_vm0, %v3464_v4  ;;  %3647 = vrot.lane.b32.xlu2 %v8497_v49, %s9427_s20  ;;  %vm9469_vm0 = vmmov %vm9434_vm6  ;;  %vm9474_vm6 = vcmask 785408  }
 0x661   : > { %3497 = vst.msk [vmem:[#allocation2 + $0x44] sm:$0xf] %vm9449_vm12, %v3465_v45  ;;  %vm9470_vm12 = vmmov %vm9469_vm0  ;;  %v3718_v4 = vsel %vm9474_vm6, %v8337_v60, %v8486_v55  ;;  %v9476_v60 = vpack.i.bf16 %v8135_v6, %v7933_v27  ;;  %v9480_v27 = vpack.i.bf16 %v7922_v53, %v7957_v42  ;;  %v5055_v6 = vld [vmem:[%s5798_s21 + $0x20] sm:$0xff]  ;;  %v5056_v45 = vld [vmem:[%s5798_s21 + $0x28] sm:$0xff] }
 0x662   : > { %v5544_v57 = vpop.permute.xlu0 %5543  ;;  %vm9475_vm4 = vmmov %vm9469_vm0 }
 0x663   : > { %v5546_v8 = vunpack.i.h.bf16 %v5544_v57  ;;  %v5545_v58 = vunpack.i.l.bf16 %v5544_v57  ;;  %v3644_v59 = vpop.permute.xlu1 %3643  ;;  %4010 = vmatmul.bf16.gmra.mxu3 %v3714_v38  ;;  %4099 = vmatmul.bf16.gmra.mxu2 %v3775_v41  ;;  %v3778_v16 = vsel %vm9475_vm4, %v8486_v55, %v3679_v63  ;;  %v9478_v55 = vld [vmem:[#allocation31_spill] sm:$0xff]  ;;  %vm9489_vm10 = vmmov %vm9469_vm0 }
 0x664   : > { %5033 = vmatmul.msk.bf16.gmra.mxu1 %vm9456_vm8, %v5055_v6  ;;  %vm9491_vm15 = vmmov %vm9456_vm8 }
 0x665   : > { %v3403_v32 = vsel %vm9455_vm1, %v9454_v56, %v5546_v8  ;;  %v3402_v52 = vsel %vm9456_vm8, %v3018_v22, %v5545_v58  ;;  %vm9477_vm1 = vmmov %vm9474_vm6 }
 0x666   : > { %v3435_v17 = vsel %vm9458_vm7, %v3403_v32, %v5551_v26  ;;  %v3434_v18 = vsel %vm9459_vm11, %v3402_v52, %v5550_v5  ;;  %vm9482_vm7 = vmmov %vm9469_vm0  ;;  %v9485_v26 = vld [vmem:[#allocation6_spill] sm:$0xff]  ;;  %v9486_v5 = vld [vmem:[#allocation27_spill] sm:$0xff] }
 0x667   : > { %v3467_v0 = vpack.c.bf16 %v3435_v17, %v3435_v17  ;;  %v3466_v30 = vpack.c.bf16 %v3434_v18, %v3434_v18  ;;  %vm9483_vm11 = vmmov %vm9456_vm8 }
 0x668   : > { %v8527_v35 = vld [vmem:[#allocation2 + $0x40] sm:$0xff]  ;;  %5578 = vrot.lane.b32.xlu2 %v9461_v9, %s5697_s10  ;;  %vm9495_vm6 = vmmov %vm9473_vm2 }
 0x669   : > { %3499 = vst.msk [vmem:[#allocation2 + $0x4c] sm:$0xf] %vm9460_vm3, %v3467_v0  ;;  %3684 = vrot.lane.b32.xlu1 %v8527_v35, %s5697_s10  ;;  %vm9484_vm3 = vmmov %vm9477_vm1 }
 0x66a   : > { %3498 = vst.msk [vmem:[#allocation2 + $0x48] sm:$0xf] %vm9462_vm13, %v3466_v30  ;;  %vm9487_vm13 = vnez %v9486_v5 }
 0x66b   : > { %v5559_v11 = vpop.permute.xlu1 %5558  ;;  %4944 = vmatmul.msk.bf16.gmra.mxu0 %vm9463_vm9, %v3679_v63  ;;  %v9479_v63 = vpack.i.bf16 %v7954_v31, %v9478_v55  ;;  %vm9488_vm9 = vmmov %vm9456_vm8 }
 0x66c   : > { %v5561_v40 = vunpack.i.h.bf16 %v5559_v11  ;;  %v5560_v2 = vunpack.i.l.bf16 %v5559_v11 }
 0x66e   : > { %v3437_v1 = vsel %vm9469_vm0, %v3405_v54, %v5561_v40  ;;  %v3436_v15 = vsel %vm9470_vm12, %v3404_v3, %v5560_v2  ;;  %vm9492_vm0 = vmmov %vm9456_vm8  ;;  %v9497_v54 = vld [vmem:[#allocation44_spill] sm:$0xff] }
 0x66f   : > { %v3469_v33 = vpack.c.bf16 %v3437_v1, %v3437_v1  ;;  %v3468_v20 = vpack.c.bf16 %v3436_v15, %v3436_v15  ;;  %vm9493_vm12 = vmmov %vm9475_vm4 }
 0x670   : > { %5583 = vrot.lane.b32.xlu2 %v9472_v12, %s5696_s26  ;;  %vm9499_vm8 = vmmov %vm9492_vm0 }
 0x671   : > { %3501 = vst.msk [vmem:[#allocation2 + $0x54] sm:$0xf] %vm9471_vm5, %v3469_v33  ;;  %v8549_v23 = vld [vmem:[#allocation2 + $0x48] sm:$0xff]  ;;  %3649 = vrot.lane.b32.xlu1 %v8527_v35, %s9427_s20  ;;  %vm9494_vm5 = vmmov %vm9475_vm4 }
 0x672   : > { %3500 = vst.msk [vmem:[#allocation2 + $0x50] sm:$0xf] %vm9473_vm2, %v3468_v20  ;;  %3686 = vrot.lane.b32.xlu0 %v8549_v23, %s5697_s10  ;;  %vm9496_vm4 = vmmov %vm9477_vm1 }
 0x673   : > { %4015 = vmatmul.bf16.gmra.mxu3 %v3718_v4  ;;  %4104 = vmatmul.bf16.gmra.mxu2 %v3778_v16  ;;  %v5564_v53 = vpop.permute.xlu1 %5563 }
 0x674   : > { %5034 = vmatmul.msk.bf16.gmra.mxu1 %vm9483_vm11, %v5056_v45  ;;  %v5566_v41 = vunpack.i.h.bf16 %v5564_v53  ;;  %v5565_v8 = vunpack.i.l.bf16 %v5564_v53  ;;  %vm9502_vm11 = vmmov %vm9494_vm5 }
 0x676   : > { %v4408_v57 = vpop.f32.mrf.mxu1 }
 0x679   : > { %v8561_v47 = vld [vmem:[#allocation2 + $0x50] sm:$0xff]  ;;  %5588 = vrot.lane.b32.xlu1 %v8199_v7, %s5697_s10  ;;  %v3722_v7 = vsel %vm9477_vm1, %v8353_v48, %v3644_v59  ;;  %vm9498_vm1 = vnez %v9497_v54 }
 0x67a   : > { %3688 = vrot.lane.b32.xlu2 %v8561_v47, %s5697_s10  ;;  %3651 = vrot.lane.b32.xlu0 %v8549_v23, %s9427_s20  ;;  %v3024_v3 = vsel %vm9498_vm1, %v8227_v46, 0.0  ;;  %vm9514_vm1 = vmmov %vm9492_vm0 }
 0x67e   : > { %v4410_v17 = vpop.f32.mrf.mxu1 }
 0x681   : > { %5593 = vrot.lane.b32.xlu1 %v9476_v60, %s5696_s26 }
 0x682   : > { %3653 = vrot.lane.b32.xlu2 %v8561_v47, %s9427_s20  ;;  %5598 = vrot.lane.b32.xlu0 %v8213_v14, %s5697_s10 }
 0x683   : > { %4020 = vmatmul.bf16.gmra.mxu3 %v3722_v7 }
 0x684   : > { %5035 = vmatmul.msk.bf16.gmra.mxu1 %vm9499_vm8, %v5057_v39  ;;  %vm9515_vm8 = vmmov %vm9492_vm0 }
 0x686   : > { %v4413_v16 = vpop.f32.mrf.mxu1 }
 0x68a   : > { %5608 = vrot.lane.b32.xlu2 %v8219_v61, %s5697_s10  ;;  %5603 = vrot.lane.b32.xlu0 %v9479_v63, %s5696_s26 }
 0x692   : > { %5613 = vrot.lane.b32.xlu2 %v9480_v27, %s5696_s26  ;;  %s296_s26 = sand.u32 1, %s5684_s28  }
 0x693   : > { %s4634_s22 = sshll.u32 %s296_s26, 7 }
 0x694   : > { %s8633_s23 = scalar_lea.vmem [#allocation3], %s4634_s22 }
 0x695   : > { %s4565_s12 = sshll.u32 %s8633_s23, 4  ;;  %s4566_s12 = int_to_ptr.vmem [resolvable:$true] %s4565_s12 }
 0x6a4   : > { %v4179_v42 = vpop.f32.mrf.mxu0 }
 0x6ac   : > { %v4181_v36 = vpop.f32.mrf.mxu0 }
 0x6af   : > { %v3681_v14 = vpop.permute.xlu0 %3680 }
 0x6b0   : > { %4945 = vmatmul.msk.bf16.gmra.mxu0 %vm9481_vm14, %v3681_v14  ;;  %v3781_v48 = vsel %vm9482_vm7, %v3644_v59, %v3681_v14  ;;  %v3022_v59 = vsel %vm9487_vm13, %v9485_v26, 0.0  ;;  %vm9500_vm14 = vmmov %vm9492_vm0 }
 0x6b1   : > { %4109 = vmatmul.bf16.gmra.mxu2 %v3781_v48  ;;  %v3406_v32 = vsel %vm9492_vm0, %v3022_v59, %v5565_v8  ;;  %vm9501_vm7 = vmmov %vm9492_vm0 }
 0x6b2   : > { %v3683_v61 = vpop.permute.xlu2 %3682  ;;  %vm9504_vm13 = vmmov %vm9473_vm2 }
 0x6b7   : > { %v3646_v31 = vpop.permute.xlu0 %3645 }
 0x6b8   : > { %v3726_v25 = vsel %vm9484_vm3, %v8367_v28, %v3646_v31  ;;  %v3784_v22 = vsel %vm9489_vm10, %v3646_v31, %v3683_v61  ;;  %v9490_v28 = vld [vmem:[#allocation24_spill] sm:$0xff]  ;;  %vm9503_vm3 = vmmov %vm9494_vm5 }
 0x6b9   : > { %4025 = vmatmul.bf16.gmra.mxu3 %v3726_v25  ;;  %v3407_v56 = vsel %vm9491_vm15, %v9490_v28, %v5566_v41  ;;  %v4415_v25 = vpop.f32.mrf.mxu1  ;;  %v5058_v41 = vld [vmem:[%s5798_s21 + $0x38] sm:$0xff]  ;;  %vm9506_vm10 = vmmov %vm9492_vm0 }
 0x6ba   : > { %v8597_v38 = vpop.permute.xlu2 %3647  ;;  %vm9507_vm15 = vmmov %vm9503_vm3  ;;  %5036 = vmatmul.msk.bf16.gmra.mxu1 %vm9492_vm0, %v5058_v41 }
 0x6bb   : > { %v3730_v40 = vsel %vm9496_vm4, %v8463_v43, %v8597_v38 }
 0x6bf   : > { %v5569_v58 = vpop.permute.xlu0 %5568 }
 0x6c0   : > { %v5571_v34 = vunpack.i.h.bf16 %v5569_v58  ;;  %v5570_v19 = vunpack.i.l.bf16 %v5569_v58  ;;  %4946 = vmatmul.msk.bf16.gmra.mxu0 %vm9488_vm9, %v3683_v61  ;;  %vm9505_vm9 = vmmov %vm9473_vm2 }
 0x6c1   : > { %4114 = vmatmul.bf16.gmra.mxu2 %v3784_v22  ;;  %v4418_v22 = vpop.f32.mrf.mxu1 }
 0x6c2   : > { %v3438_v52 = vsel %vm9493_vm12, %v3406_v32, %v5570_v19  ;;  %v3439_v37 = vsel %vm9494_vm5, %v3407_v56, %v5571_v34  ;;  %v5579_v9 = vpop.permute.xlu2 %5578  ;;  %vm9508_vm12 = vmmov %vm9496_vm4 }
 0x6c3   : > { %v3470_v18 = vpack.c.bf16 %v3438_v52, %v3438_v52  ;;  %v3471_v0 = vpack.c.bf16 %v3439_v37, %v3439_v37  ;;  %v5581_v2 = vunpack.i.h.bf16 %v5579_v9  ;;  %v5580_v62 = vunpack.i.l.bf16 %v5579_v9  ;;  %vm9513_vm4 = vmmov %vm9492_vm0 }
 0x6c5   : > { %3502 = vst.msk [vmem:[#allocation2 + $0x58] sm:$0xf] %vm9473_vm2, %v3470_v18  ;;  %vm9511_vm2 = vmmov %vm9492_vm0 }
 0x6c6   : > { %v4001_v30 = vpop.f32.mrf.mxu3  ;;  %v4090_v24 = vpop.f32.mrf.mxu2  ;;  %3503 = vst.msk [vmem:[#allocation2 + $0x5c] sm:$0xf] %vm9495_vm6, %v3471_v0  ;;  %vm9512_vm6 = vmmov %vm9503_vm3 }
 0x6c7   : > { %v5574_v11 = vpop.permute.xlu0 %5573  ;;  %v4091_v1 = vadd.f32 %v4090_v24, %v4001_v30 }
 0x6c8   : > { %v5576_v44 = vunpack.i.h.bf16 %v5574_v11  ;;  %v5575_v51 = vunpack.i.l.bf16 %v5574_v11  ;;  %v4184_v55 = vpop.f32.mrf.mxu0 }
 0x6c9   : > { %4030 = vmatmul.bf16.gmra.mxu3 %v3730_v40  ;;  %v4180_v63 = vadd.f32 %v4179_v42, %v4091_v1  ;;  %v4420_v39 = vpop.f32.mrf.mxu1 }
 0x6ca   : > { %v3409_v15 = vsel %vm9500_vm14, %v8223_v21, %v5576_v44  ;;  %v3408_v33 = vsel %vm9501_vm7, %v3024_v3, %v5575_v51  ;;  %v5584_v8 = vpop.permute.xlu2 %5583  ;;  %v9509_v44 = vld [vmem:[#allocation37_spill] sm:$0xff]  ;;  %vm9516_vm14 = vmmov %vm9503_vm3 }
 0x6cb   : > { %v3440_v20 = vsel %vm9502_vm11, %v3408_v33, %v5580_v62  ;;  %v3441_v43 = vsel %vm9503_vm3, %v3409_v15, %v5581_v2  ;;  %v4409_v6 = vadd.f32 %v4408_v57, %v4180_v63  ;;  %v5586_v30 = vunpack.i.h.bf16 %v5584_v8  ;;  %vm9517_vm7 = vmmov %vm9503_vm3 }
 0x6cc   : > { %v3472_v12 = vpack.c.bf16 %v3440_v20, %v3440_v20  ;;  %v3473_v4 = vpack.c.bf16 %v3441_v43, %v3441_v43  ;;  %v5585_v24 = vunpack.i.l.bf16 %v5584_v8  ;;  %vm9510_vm5 = vnez %v9509_v44  ;;  %vm9518_vm11 = vmmov %vm9505_vm9 }
 0x6cd   : > { %v8625_v46 = vld [vmem:[#allocation2 + $0x58] sm:$0xff]  ;;  %v3026_v51 = vsel %vm9510_vm5, %v8233_v29, 0.0  ;;  %v3411_v3 = vsel %vm9513_vm4, %v8239_v10, %v5586_v30  ;;  %vm9519_vm3 = vmmov %vm9505_vm9 }
 0x6ce   : > { %v4003_v60 = vpop.f32.mrf.mxu3  ;;  %v4092_v7 = vpop.f32.mrf.mxu2  ;;  %3504 = vst.msk [vmem:[#allocation2 + $0x60] sm:$0xf] %vm9504_vm13, %v3472_v12  ;;  %3690 = vrot.lane.b32.xlu1 %v8625_v46, %s5697_s10  ;;  %v3410_v1 = vsel %vm9514_vm1, %v3026_v51, %v5585_v24  ;;  %vm9520_vm13 = vmmov %vm9508_vm12  ;;  %v9533_v24 = vld [vmem:[#allocation40_spill] sm:$0xff] }
 0x6cf   : > { %v4093_v21 = vadd.f32 %v4092_v7, %v4003_v60  ;;  %3505 = vst.msk [vmem:[#allocation2 + $0x64] sm:$0xf] %vm9505_vm9, %v3473_v4  ;;  %vm9529_vm5 = vmmov %vm9519_vm3 }
 0x6d0   : > { %v4186_v53 = vpop.f32.mrf.mxu0 }
 0x6d1   : > { %v4182_v27 = vadd.f32 %v4181_v36, %v4093_v21  ;;  %v5059_v36 = vld [vmem:[%s5798_s21 + $0x40] sm:$0xff]  ;;  %v4423_v41 = vpop.f32.mrf.mxu1 }
 0x6d2   : > { %5037 = vmatmul.msk.bf16.gmra.mxu1 %vm9515_vm8, %v5059_v36 }
 0x6d3   : > { %v4411_v14 = vadd.f32 %v4410_v17, %v4182_v27 }
 0x6d5   : > { %v5145_v45 = vpack.c.bf16 %v4411_v14, %v4409_v6 }
 0x6d6   : > { %v4006_v48 = vpop.f32.mrf.mxu3  ;;  %v4095_v61 = vpop.f32.mrf.mxu2  ;;  %v8636_v31 = vld [vmem:[#allocation2 + $0x60] sm:$0xff]  ;;  %3655 = vrot.lane.b32.xlu1 %v8625_v46, %s9427_s20 }
 0x6d7   : > { %5146 = vst [vmem:[%s8633_s23] sm:$0xff] %v5145_v45   ;;  %3692 = vrot.lane.b32.xlu0 %v8636_v31, %s5697_s10  ;;  %v4096_v42 = vadd.f32 %v4095_v61, %v4006_v48  ;;  %v9521_v48 = vld [vmem:[#allocation7_spill] sm:$0xff] }
 0x6d8   : > { %v4189_v28 = vpop.f32.mrf.mxu0  ;;  %v9522_v61 = vld [vmem:[#allocation39_spill] sm:$0xff] }
 0x6d9   : > { %v4185_v59 = vadd.f32 %v4184_v55, %v4096_v42  ;;  %vm9523_vm9 = vnez %v9522_v61 }
 0x6db   : > { %v3685_v57 = vpop.permute.xlu1 %3684  ;;  %v4414_v56 = vadd.f32 %v4413_v16, %v4185_v59 }
 0x6dc   : > { %4947 = vmatmul.msk.bf16.gmra.mxu0 %vm9506_vm10, %v3685_v57  ;;  %v3787_v58 = vsel %vm9507_vm15, %v8597_v38, %v3685_v57  ;;  %vm9525_vm10 = vmmov %vm9492_vm0 }
 0x6dd   : > { %4119 = vmatmul.bf16.gmra.mxu2 %v3787_v58  ;;  %v9524_v58 = vld [vmem:[#allocation12_spill] sm:$0xff]  ;;  %vm9526_vm15 = vmmov %vm9492_vm0 }
 0x6de   : > { %v4008_v26 = vpop.f32.mrf.mxu3  ;;  %v4097_v5 = vpop.f32.mrf.mxu2  ;;  %5618 = vrot.lane.b32.xlu1 %v8270_v50, %s5697_s10  ;;  %vm9527_vm0 = vmmov %vm9512_vm6 }
 0x6df   : > { %v4098_v34 = vadd.f32 %v4097_v5, %v4008_v26  ;;  %3657 = vrot.lane.b32.xlu0 %v8636_v31, %s9427_s20  ;;  %v8654_v50 = vpop.permute.xlu2 %3688  ;;  %vm9532_vm4 = vmmov %vm9527_vm0 }
 0x6e0   : > { %v4191_v40 = vpop.f32.mrf.mxu0 }
 0x6e1   : > { %v4187_v19 = vadd.f32 %v4186_v53, %v4098_v34 }
 0x6e3   : > { %v4416_v38 = vadd.f32 %v4415_v25, %v4187_v19  ;;  %v3650_v32 = vpop.permute.xlu1 %3649  ;;  %v3028_v25 = vsel %vm9523_vm9, %v9521_v48, 0.0  ;;  %vm9542_vm9 = vcmask 785408  }
 0x6e4   : > { %v3687_v37 = vpop.permute.xlu0 %3686  ;;  %v3734_v17 = vsel %vm9508_vm12, %v8497_v49, %v3650_v32  ;;  %vm9528_vm12 = vmmov %vm9527_vm0 }
 0x6e5   : > { %v5150_v52 = vpack.c.bf16 %v4416_v38, %v4414_v56  ;;  %4035 = vmatmul.bf16.gmra.mxu3 %v3734_v17  ;;  %v3790_v54 = vsel %vm9512_vm6, %v3650_v32, %v3687_v37  ;;  %vm9531_vm6 = vmmov %vm9514_vm1  ;;  %vm9534_vm1 = vnez %v9533_v24 }
 0x6e6   : > { %v4011_v18 = vpop.f32.mrf.mxu3  ;;  %v4100_v0 = vpop.f32.mrf.mxu2  ;;  %v3030_v36 = vsel %vm9534_vm1, %v8280_v13, 0.0  ;;  %vm9536_vm8 = vmmov %vm9531_vm6 }
 0x6e7   : > { %5222 = vst [vmem:[%s8633_s23 + $0x8] sm:$0xff] %v5150_v52   ;;  %v4101_v9 = vadd.f32 %v4100_v0, %v4011_v18  ;;  %v8668_v7 = vpop.permute.xlu2 %3653  ;;  %vm9552_vm1 = vmmov %vm9531_vm6 }
 0x6e8   : > { %v4194_v8 = vpop.f32.mrf.mxu0 }
 0x6e9   : > { %v4190_v20 = vadd.f32 %v4189_v28, %v4101_v9 }
 0x6eb   : > { %v5589_v11 = vpop.permute.xlu1 %5588  ;;  %v4419_v10 = vadd.f32 %v4418_v22, %v4190_v20  ;;  %v3742_v20 = vsel %vm9542_vm9, %v8549_v23, %v8668_v7 }
 0x6ec   : > { %v5591_v2 = vunpack.i.h.bf16 %v5589_v11  ;;  %v5590_v62 = vunpack.i.l.bf16 %v5589_v11  ;;  %v3652_v49 = vpop.permute.xlu0 %3651  ;;  %4948 = vmatmul.msk.bf16.gmra.mxu0 %vm9511_vm2, %v3687_v37  ;;  %vm9530_vm2 = vmmov %vm9519_vm3 }
 0x6ed   : > { %4124 = vmatmul.bf16.gmra.mxu2 %v3790_v54  ;;  %v3738_v45 = vsel %vm9520_vm13, %v8527_v35, %v3652_v49  ;;  %v3793_v52 = vsel %vm9532_vm4, %v3652_v49, %v8654_v50  ;;  %v4425_v49 = vpop.f32.mrf.mxu1  ;;  %vm9541_vm13 = vmmov %vm9530_vm2 }
 0x6ee   : > { %v4013_v15 = vpop.f32.mrf.mxu3  ;;  %v4102_v33 = vpop.f32.mrf.mxu2  ;;  %v3442_v29 = vsel %vm9516_vm14, %v3410_v1, %v5590_v62  ;;  %v3443_v43 = vsel %vm9517_vm7, %v3411_v3, %v5591_v2  ;;  %vm9537_vm14 = vmmov %vm9531_vm6 }
 0x6ef   : > { %v4103_v12 = vadd.f32 %v4102_v33, %v4013_v15  ;;  %v3474_v4 = vpack.c.bf16 %v3442_v29, %v3442_v29  ;;  %v3475_v16 = vpack.c.bf16 %v3443_v43, %v3443_v43  ;;  %v5609_v56 = vpop.permute.xlu2 %5608  ;;  %vm9538_vm7 = vmmov %vm9527_vm0 }
 0x6f0   : > { %v5611_v0 = vunpack.i.h.bf16 %v5609_v56  ;;  %v5610_v30 = vunpack.i.l.bf16 %v5609_v56  ;;  %v4196_v2 = vpop.f32.mrf.mxu0  ;;  %vm9550_vm4 = vmmov %vm9527_vm0 }
 0x6f1   : > { %v4192_v60 = vadd.f32 %v4191_v40, %v4103_v12  ;;  %3506 = vst.msk [vmem:[#allocation2 + $0x68] sm:$0xf] %vm9518_vm11, %v3474_v4  ;;  %vm9539_vm11 = vmmov %vm9527_vm0  ;;  %v5060_v12 = vld [vmem:[%s5798_s21 + $0x48] sm:$0xff] }
 0x6f2   : > { %3507 = vst.msk [vmem:[#allocation2 + $0x6c] sm:$0xf] %vm9519_vm3, %v3475_v16  ;;  %vm9540_vm3 = vmmov %vm9530_vm2 }
 0x6f3   : > { %v4421_v55 = vadd.f32 %v4420_v39, %v4192_v60  ;;  %v5594_v63 = vpop.permute.xlu1 %5593  ;;  %v9535_v39 = vld [vmem:[#allocation10_spill] sm:$0xff] }
 0x6f4   : > { %v5596_v27 = vunpack.i.h.bf16 %v5594_v63  ;;  %v5595_v6 = vunpack.i.l.bf16 %v5594_v63  ;;  %v5599_v14 = vpop.permute.xlu0 %5598  ;;  %v5122_v63 = vld [vmem:[#allocation2 + $0x88] sm:$0xff] }
 0x6f5   : > { %v5155_v21 = vpack.c.bf16 %v4421_v55, %v4419_v10  ;;  %v5601_v53 = vunpack.i.h.bf16 %v5599_v14  ;;  %v5600_v42 = vunpack.i.l.bf16 %v5599_v14  ;;  %4040 = vmatmul.bf16.gmra.mxu3 %v3738_v45  ;;  %v4428_v4 = vpop.f32.mrf.mxu1 }
 0x6f6   : > { %v4016_v57 = vpop.f32.mrf.mxu3  ;;  %v3413_v26 = vsel %vm9525_vm10, %v9524_v58, %v5596_v27  ;;  %v3412_v5 = vsel %vm9526_vm15, %v3028_v25, %v5595_v6  ;;  %v4105_v59 = vpop.f32.mrf.mxu2  ;;  %vm9543_vm10 = vmmov %vm9531_vm6 }
 0x6f7   : > { %5223 = vst [vmem:[%s8633_s23 + $0x10] sm:$0xff] %v5155_v21   ;;  %v3444_v34 = vsel %vm9527_vm0, %v3412_v5, %v5600_v42  ;;  %v3445_v35 = vsel %vm9528_vm12, %v3413_v26, %v5601_v53  ;;  %v4106_v38 = vadd.f32 %v4105_v59, %v4016_v57  ;;  %5038 = vmatmul.msk.bf16.gmra.mxu1 %vm9543_vm10, %v5060_v12  ;;  %v5061_v42 = vld [vmem:[%s5798_s21 + $0x50] sm:$0xff]  ;;  %vm9544_vm15 = vmmov %vm9531_vm6 }
 0x6f8   : > { %v3476_v19 = vpack.c.bf16 %v3444_v34, %v3444_v34  ;;  %v3477_v22 = vpack.c.bf16 %v3445_v35, %v3445_v35  ;;  %vm9545_vm12 = vmmov %vm9531_vm6 }
 0x6f9   : > { %v8683_v28 = vld [vmem:[#allocation2 + $0x68] sm:$0xff]  ;;  %v4195_v11 = vadd.f32 %v4194_v8, %v4106_v38  ;;  %vm9559_vm10 = vmmov %vm9552_vm1 }
 0x6fa   : > { %3508 = vst.msk [vmem:[#allocation2 + $0x70] sm:$0xf] %vm9529_vm5, %v3476_v19  ;;  %3659 = vrot.lane.b32.xlu1 %v8683_v28, %s9427_s20  ;;  %3694 = vrot.lane.b32.xlu2 %v8683_v28, %s5697_s10  ;;  %vm9546_vm5 = vmmov %vm9542_vm9  ;;  %v5614_v19 = vpop.permute.xlu2 %5613 }
 0x6fb   : > { %3509 = vst.msk [vmem:[#allocation2 + $0x74] sm:$0xf] %vm9530_vm2, %v3477_v22  ;;  %v4424_v15 = vadd.f32 %v4423_v41, %v4195_v11  ;;  %v9547_v11 = vld [vmem:[#allocation29_spill] sm:$0xff]  ;;  %vm9558_vm9 = vmmov %vm9546_vm5 }
 0x6fc   : > { %v5604_v32 = vpop.permute.xlu0 %5603  ;;  %4949 = vmatmul.msk.bf16.gmra.mxu0 %vm9531_vm6, %v8654_v50 }
 0x6fd   : > { %v5606_v37 = vunpack.i.h.bf16 %v5604_v32  ;;  %v5605_v17 = vunpack.i.l.bf16 %v5604_v32  ;;  %4129 = vmatmul.bf16.gmra.mxu2 %v3793_v52  ;;  %v4430_v55 = vpop.f32.mrf.mxu1 }
 0x6fe   : > { %v4018_v18 = vpop.f32.mrf.mxu3  ;;  %v4107_v9 = vpop.f32.mrf.mxu2 }
 0x6ff   : > { %v3415_v44 = vsel %vm9536_vm8, %v9535_v39, %v5606_v37  ;;  %v3414_v51 = vsel %vm9537_vm14, %v3030_v36, %v5605_v17  ;;  %v4108_v40 = vadd.f32 %v4107_v9, %v4018_v18  ;;  %v5616_v17 = vunpack.i.h.bf16 %v5614_v19  ;;  %v5062_v9 = vld [vmem:[%s5798_s21 + $0x58] sm:$0xff]  ;;  %vm9553_vm8 = vmmov %vm9552_vm1 }
 0x700   : > { %v3446_v50 = vsel %vm9538_vm7, %v3414_v51, %v5610_v30  ;;  %v3447_v62 = vsel %vm9539_vm11, %v3415_v44, %v5611_v0  ;;  %v5615_v18 = vunpack.i.l.bf16 %v5614_v19  ;;  %vm9554_vm14 = vmmov %vm9552_vm1 }
 0x701   : > { %v3478_v54 = vpack.c.bf16 %v3446_v50, %v3446_v50  ;;  %v3479_v3 = vpack.c.bf16 %v3447_v62, %v3447_v62  ;;  %v4197_v1 = vadd.f32 %v4196_v2, %v4108_v40  ;;  %v9551_v2 = vld [vmem:[#allocation47_spill] sm:$0xff]  ;;  %vm9555_vm7 = vmmov %vm9527_vm0 }
 0x702   : > { %v8703_v13 = vld [vmem:[#allocation2 + $0x70] sm:$0xff]  ;;  %v3417_v50 = vsel %vm9552_vm1, %v9551_v2, %v5616_v17  ;;  %vm9556_vm11 = vmmov %vm9527_vm0 }
 0x703   : > { %3510 = vst.msk [vmem:[#allocation2 + $0x78] sm:$0xf] %vm9540_vm3, %v3478_v54  ;;  %v4426_v33 = vadd.f32 %v4425_v49, %v4197_v1  ;;  %3661 = vrot.lane.b32.xlu2 %v8703_v13, %s9427_s20  ;;  %3696 = vrot.lane.b32.xlu0 %v8703_v13, %s5697_s10 }
 0x704   : > { %3511 = vst.msk [vmem:[#allocation2 + $0x7c] sm:$0xf] %vm9541_vm13, %v3479_v3  ;;  %vm9557_vm13 = vmmov %vm9540_vm3 }
 0x705   : > { %v5160_v29 = vpack.c.bf16 %v4426_v33, %v4424_v15  ;;  %4045 = vmatmul.bf16.gmra.mxu3 %v3742_v20  ;;  %v4433_v58 = vpop.f32.mrf.mxu1 }
 0x706   : > { %v4021_v16 = vpop.f32.mrf.mxu3 }
 0x707   : > { %5224 = vst [vmem:[%s8633_s23 + $0x18] sm:$0xff] %v5160_v29   ;;  %5039 = vmatmul.msk.bf16.gmra.mxu1 %vm9545_vm12, %v5061_v42  ;;  %vm9562_vm12 = vmmov %vm9546_vm5 }
 0x70b   : > { %v8715_v43 = vld [vmem:[#allocation2 + $0x78] sm:$0xff] }
 0x70c   : > { %3698 = vrot.lane.b32.xlu1 %v8715_v43, %s5697_s10  ;;  %3663 = vrot.lane.b32.xlu0 %v8715_v43, %s9427_s20 }
 0x70d   : > { %v4435_v37 = vpop.f32.mrf.mxu1 }
 0x70e   : > { %v4023_v21 = vpop.f32.mrf.mxu3 }
 0x714   : > { %3702 = vrot.lane.b32.xlu0 %v5122_v63, %s5697_s10 }
 0x715   : > { %v4438_v20 = vpop.f32.mrf.mxu1 }
 0x717   : > { %5040 = vmatmul.msk.bf16.gmra.mxu1 %vm9554_vm14, %v5062_v9 }
 0x72d   : > { %v4199_v60 = vpop.f32.mrf.mxu0 }
 0x734   : > { %v4110_v10 = vpop.f32.mrf.mxu2 }
 0x735   : > { %v4111_v23 = vadd.f32 %v4110_v10, %v4021_v16  ;;  %v4201_v27 = vpop.f32.mrf.mxu0 }
 0x737   : > { %v4200_v14 = vadd.f32 %v4199_v60, %v4111_v23  ;;  %v4440_v23 = vpop.f32.mrf.mxu1 }
 0x739   : > { %v4429_v61 = vadd.f32 %v4428_v4, %v4200_v14 }
 0x73c   : > { %v4112_v6 = vpop.f32.mrf.mxu2  ;;  %v4026_v57 = vpop.f32.mrf.mxu3 }
 0x73d   : > { %v4113_v45 = vadd.f32 %v4112_v6, %v4023_v21  ;;  %v4204_v26 = vpop.f32.mrf.mxu0 }
 0x73f   : > { %v4202_v48 = vadd.f32 %v4201_v27, %v4113_v45 }
 0x740   : > { %v3691_v53 = vpop.permute.xlu1 %3690 }
 0x741   : > { %v4431_v25 = vadd.f32 %v4430_v55, %v4202_v48  ;;  %4950 = vmatmul.msk.bf16.gmra.mxu0 %vm9544_vm15, %v3691_v53  ;;  %v3796_v41 = vsel %vm9527_vm0, %v8668_v7, %v3691_v53  ;;  %v5063_v55 = vld [vmem:[%s5798_s21 + $0x60] sm:$0xff]  ;;  %vm9560_vm15 = vmmov %vm9527_vm0 }
 0x742   : > { %4134 = vmatmul.bf16.gmra.mxu2 %v3796_v41  ;;  %vm9561_vm0 = vmmov %vm9552_vm1 }
 0x743   : > { %v5165_v8 = vpack.c.bf16 %v4431_v25, %v4429_v61  ;;  %5041 = vmatmul.msk.bf16.gmra.mxu1 %vm9561_vm0, %v5063_v55  ;;  %v4443_v25 = vpop.f32.mrf.mxu1  ;;  %vm9567_vm1 = vmmov %vm9561_vm0 }
 0x744   : > { %v4115_v5 = vpop.f32.mrf.mxu2  ;;  %v4028_v22 = vpop.f32.mrf.mxu3 }
 0x745   : > { %5225 = vst [vmem:[%s8633_s23 + $0x20] sm:$0xff] %v5165_v8   ;;  %v4116_v59 = vadd.f32 %v4115_v5, %v4026_v57  ;;  %v4206_v52 = vpop.f32.mrf.mxu0  ;;  %v5064_v5 = vld [vmem:[%s5798_s21 + $0x68] sm:$0xff] }
 0x747   : > { %v4205_v38 = vadd.f32 %v4204_v26, %v4116_v59 }
 0x748   : > { %v3656_v34 = vpop.permute.xlu1 %3655 }
 0x749   : > { %v3746_v35 = vsel %vm9546_vm5, %v8561_v47, %v3656_v34  ;;  %v3693_v7 = vpop.permute.xlu0 %3692  ;;  %v4434_v30 = vadd.f32 %v4433_v58, %v4205_v38  ;;  %v9548_v47 = vld [vmem:[#allocation26_spill] sm:$0xff]  ;;  %vm9563_vm5 = vmmov %vm9561_vm0 }
 0x74a   : > { %4050 = vmatmul.bf16.gmra.mxu3 %v3746_v35  ;;  %vm9549_vm2 = vnez %v9548_v47  ;;  %v3799_v40 = vsel %vm9550_vm4, %v3656_v34, %v3693_v7 }
 0x74b   : > { %v3032_v39 = vsel %vm9549_vm2, %v9547_v11, 0.0  ;;  %v4445_v35 = vpop.f32.mrf.mxu1  ;;  %vm9564_vm2 = vmmov %vm9561_vm0 }
 0x74c   : > { %v4117_v56 = vpop.f32.mrf.mxu2  ;;  %v3416_v62 = vsel %vm9553_vm8, %v3032_v39, %v5615_v18  ;;  %v4031_v29 = vpop.f32.mrf.mxu3 }
 0x74d   : > { %v4118_v32 = vadd.f32 %v4117_v56, %v4028_v22 }
 0x74f   : > { %v4207_v0 = vadd.f32 %v4206_v52, %v4118_v32 }
 0x750   : > { %v5619_v36 = vpop.permute.xlu1 %5618 }
 0x751   : > { %v4436_v24 = vadd.f32 %v4435_v37, %v4207_v0  ;;  %v5621_v44 = vunpack.i.h.bf16 %v5619_v36  ;;  %v5620_v51 = vunpack.i.l.bf16 %v5619_v36  ;;  %4951 = vmatmul.msk.bf16.gmra.mxu0 %vm9531_vm6, %v3693_v7  ;;  %v3658_v33 = vpop.permute.xlu0 %3657  ;;  %vm9565_vm6 = vmmov %vm9550_vm4 }
 0x752   : > { %4139 = vmatmul.bf16.gmra.mxu2 %v3799_v40  ;;  %v3750_v4 = vsel %vm9558_vm9, %v8625_v46, %v3658_v33  ;;  %vm9566_vm4 = vmmov %vm9558_vm9 }
 0x753   : > { %v5170_v49 = vpack.c.bf16 %v4436_v24, %v4434_v30  ;;  %v3448_v54 = vsel %vm9555_vm7, %v3416_v62, %v5620_v51  ;;  %v3449_v3 = vsel %vm9556_vm11, %v3417_v50, %v5621_v44  ;;  %5042 = vmatmul.msk.bf16.gmra.mxu1 %vm9563_vm5, %v5064_v5  ;;  %v4448_v24 = vpop.f32.mrf.mxu1  ;;  %vm9568_vm8 = vmmov %vm9565_vm6 }
 0x754   : > { %v3480_v1 = vpack.c.bf16 %v3448_v54, %v3448_v54  ;;  %v3481_v15 = vpack.c.bf16 %v3449_v3, %v3449_v3  ;;  %v3695_v16 = vpop.permute.xlu2 %3694  ;;  %v4033_v63 = vpop.f32.mrf.mxu3  ;;  %vm9569_vm14 = vmmov %vm9566_vm4 }
 0x755   : > { %5226 = vst [vmem:[%s8633_s23 + $0x28] sm:$0xff] %v5170_v49   ;;  %v3802_v27 = vsel %vm9560_vm15, %v3658_v33, %v3695_v16  ;;  %v5065_v33 = vld [vmem:[%s5798_s21 + $0x70] sm:$0xff]  ;;  %vm9570_vm7 = vmmov %vm9561_vm0 }
 0x756   : > { %3512 = vst.msk [vmem:[#allocation2 + $0x80] sm:$0xf] %vm9540_vm3, %v3480_v1  ;;  %vm9571_vm11 = vmmov %vm9561_vm0 }
 0x757   : > { %3513 = vst.msk [vmem:[#allocation2 + $0x84] sm:$0xf] %vm9557_vm13, %v3481_v15  ;;  %vm9572_vm3 = vmmov %vm9561_vm0 }
 0x758   : > { %vm9573_vm13 = vmmov %vm9565_vm6 }
 0x759   : > { %v4209_v12 = vpop.f32.mrf.mxu0  ;;  %vm9574_vm9 = vmmov %vm9561_vm0 }
 0x75a   : > { %4055 = vmatmul.bf16.gmra.mxu3 %v3750_v4  ;;  %vm9576_vm15 = vmmov %vm9565_vm6 }
 0x75b   : > { %v4450_v50 = vpop.f32.mrf.mxu1 }
 0x75d   : > { %v3662_v32 = vpop.permute.xlu2 %3661 }
 0x75e   : > { %v5121_v60 = vld [vmem:[#allocation2 + $0x80] sm:$0xff]  ;;  %v3758_v0 = vsel %vm9566_vm4, %v8683_v28, %v3662_v32 }
 0x75f   : > { %3665 = vrot.lane.b32.xlu1 %v5121_v60, %s9427_s20  ;;  %3700 = vrot.lane.b32.xlu2 %v5121_v60, %s5697_s10 }
 0x760   : > { %v4120_v10 = vpop.f32.mrf.mxu2 }
 0x761   : > { %v4211_v21 = vpop.f32.mrf.mxu0  ;;  %4952 = vmatmul.msk.bf16.gmra.mxu0 %vm9559_vm10, %v3695_v16  ;;  %v4121_v46 = vadd.f32 %v4120_v10, %v4031_v29  ;;  %vm9575_vm10 = vmmov %vm9566_vm4 }
 0x762   : > { %4144 = vmatmul.bf16.gmra.mxu2 %v3802_v27 }
 0x763   : > { %v4210_v14 = vadd.f32 %v4209_v12, %v4121_v46  ;;  %5043 = vmatmul.msk.bf16.gmra.mxu1 %vm9570_vm7, %v5065_v33 }
 0x765   : > { %v4439_v42 = vadd.f32 %v4438_v20, %v4210_v14  ;;  %v5066_v20 = vld [vmem:[%s5798_s21 + $0x78] sm:$0xff]  ;;  %s5141_s21 = sshll.u32 %s5766_s9, 7  ;;  %s4553_s9 = scalar_lea.sflag [#allocation4], %s296_s26 }
 0x766   : > { %s4564_s13 = scalar_lea.hbm %s8831_s8, %s5141_s21  ;;  %s5650_s21 = scalar_lea.hbm %s8831_s8, 256 }
 0x767   : > { %s4567_s17 = sshll.u32 %s4564_s13, 4  ;;  %s4568_s17 = int_to_ptr.hbm [resolvable:$true] %s4567_s17 }
 0x768   : > { %v4122_v6 = vpop.f32.mrf.mxu2  ;;  %v4036_v48 = vpop.f32.mrf.mxu3  ;;  %s5644_s18 = sshra.s32 %s4568_s17, 4  ;;  %s5645_s18 = int_to_ptr.hbm [resolvable:$true] %s5644_s18 }
 0x769   : > { %v4123_v45 = vadd.f32 %v4122_v6, %v4033_v63  ;;  %v4214_v53 = vpop.f32.mrf.mxu0  ;;  %s5646_s19 = scalar_lea.hbm %s5645_s18, 128  ;;  %p5651_p0 = scmp.lt.s32.totalorder %s5645_s18, %s8831_s8 }
 0x76a   : > { %p5647_p11 = scmp.ne.s32.totalorder %s5645_s18, %s5646_s19  ;;  %p5652_p1 = scmp.lt.s32.totalorder %s5650_s21, %s5646_s19 }
 0x76b   : > { %v4212_v61 = vadd.f32 %v4211_v21, %v4123_v45 }
 0x76c   : > { %v3660_v41 = vpop.permute.xlu1 %3659  ;;  %p5648_p12 = pnand %p5647_p11, %p5783_p5  ;;  %p5653_p2 = por %p5652_p1, %p5651_p0 }
 0x76d   : > { %v4441_v57 = vadd.f32 %v4440_v23, %v4212_v61  ;;  %v3754_v8 = vsel %vm9562_vm12, %v8636_v31, %v3660_v41 }
 0x76e   : > { %4060 = vmatmul.bf16.gmra.mxu3 %v3754_v8  ;;  %p5649_p13 = pneg %p5648_p12 }
 0x76f   : > { %v5175_v58 = vpack.c.bf16 %v4441_v57, %v4439_v42 }
 0x770   : > { %v4125_v26 = vpop.f32.mrf.mxu2  ;;  %v4038_v59 = vpop.f32.mrf.mxu3  ;;  %p5654_p3 = pnand %p5653_p2, %p5649_p13 }
 0x771   : > { %5227 = vst [vmem:[%s8633_s23 + $0x30] sm:$0xff] %v5175_v58   ;;  %v4126_v34 = vadd.f32 %v4125_v26, %v4036_v48  ;;  %v4216_v19 = vpop.f32.mrf.mxu0 }
 0x773   : > { %v4215_v31 = vadd.f32 %v4214_v53, %v4126_v34  ;;  %5044 = vmatmul.msk.bf16.gmra.mxu1 %vm9571_vm11, %v5066_v20 }
 0x774   : > { %v4453_v16 = vpop.f32.mrf.mxu1 }
 0x775   : > { %v3697_v22 = vpop.permute.xlu0 %3696  ;;  %v4444_v37 = vadd.f32 %v4443_v25, %v4215_v31 }
 0x776   : > { %4953 = vmatmul.msk.bf16.gmra.mxu0 %vm9564_vm2, %v3697_v22  ;;  %v3805_v56 = vsel %vm9565_vm6, %v3660_v41, %v3697_v22 }
 0x777   : > { %4149 = vmatmul.bf16.gmra.mxu2 %v3805_v56 }
 0x778   : > { %v4127_v38 = vpop.f32.mrf.mxu2  ;;  %v4041_v18 = vpop.f32.mrf.mxu3 }
 0x779   : > { %v4128_v7 = vadd.f32 %v4127_v38, %v4038_v59  ;;  %v4219_v36 = vpop.f32.mrf.mxu0 }
 0x77b   : > { %v4217_v52 = vadd.f32 %v4216_v19, %v4128_v7 }
 0x77c   : > { %v4455_v23 = vpop.f32.mrf.mxu1 }
 0x77d   : > { %v4446_v17 = vadd.f32 %v4445_v35, %v4217_v52 }
 0x77e   : > { %4065 = vmatmul.bf16.gmra.mxu3 %v3758_v0  ;;  %v3699_v11 = vpop.permute.xlu1 %3698  ;;  %v3664_v62 = vpop.permute.xlu0 %3663 }
 0x77f   : > { %v5180_v30 = vpack.c.bf16 %v4446_v17, %v4444_v37  ;;  %v3808_v39 = vsel %vm9568_vm8, %v3662_v32, %v3699_v11  ;;  %v3762_v1 = vsel %vm9569_vm14, %v8703_v13, %v3664_v62 }
 0x780   : > { %v4130_v9 = vpop.f32.mrf.mxu2  ;;  %v4043_v44 = vpop.f32.mrf.mxu3 }
 0x781   : > { %5228 = vst [vmem:[%s8633_s23 + $0x38] sm:$0xff] %v5180_v30   ;;  %v4131_v47 = vadd.f32 %v4130_v9, %v4041_v18  ;;  %v4221_v2 = vpop.f32.mrf.mxu0 }
 0x783   : > { %v4220_v40 = vadd.f32 %v4219_v36, %v4131_v47 }
 0x784   : > { %v4458_v45 = vpop.f32.mrf.mxu1 }
 0x785   : > { %v4449_v54 = vadd.f32 %v4448_v24, %v4220_v40 }
 0x786   : > { %4954 = vmatmul.msk.bf16.gmra.mxu0 %vm9567_vm1, %v3699_v11  ;;  %v3703_v63 = vpop.permute.xlu0 %3702 }
 0x787   : > { %4154 = vmatmul.bf16.gmra.mxu2 %v3808_v39 }
 0x788   : > { %v4132_v51 = vpop.f32.mrf.mxu2  ;;  %v4046_v29 = vpop.f32.mrf.mxu3 }
 0x789   : > { %v4133_v28 = vadd.f32 %v4132_v51, %v4043_v44 }
 0x78b   : > { %v4222_v49 = vadd.f32 %v4221_v2, %v4133_v28 }
 0x78c   : > { %v4460_v5 = vpop.f32.mrf.mxu1 }
 0x78d   : > { %v4451_v3 = vadd.f32 %v4450_v50, %v4222_v49 }
 0x78e   : > { %4070 = vmatmul.bf16.gmra.mxu3 %v3762_v1 }
 0x78f   : > { %v5185_v15 = vpack.c.bf16 %v4451_v3, %v4449_v54 }
 0x790   : > { %v4048_v10 = vpop.f32.mrf.mxu3 }
 0x791   : > { %5229 = vst [vmem:[%s8633_s23 + $0x40] sm:$0xff] %v5185_v15  }
 0x7b9   : > { %v3701_v12 = vpop.permute.xlu2 %3700 }
 0x7ba   : > { %4955 = vmatmul.msk.bf16.gmra.mxu0 %vm9572_vm3, %v3701_v12  ;;  %v3811_v4 = vsel %vm9573_vm13, %v3664_v62, %v3701_v12 }
 0x7bb   : > { %4159 = vmatmul.bf16.gmra.mxu2 %v3811_v4 }
 0x7be   : > { %v4224_v60 = vpop.f32.mrf.mxu0 }
 0x7c5   : > { %v4135_v13 = vpop.f32.mrf.mxu2 }
 0x7c6   : > { %v4226_v55 = vpop.f32.mrf.mxu0  ;;  %v4136_v21 = vadd.f32 %v4135_v13, %v4046_v29 }
 0x7c8   : > { %v4225_v6 = vadd.f32 %v4224_v60, %v4136_v21 }
 0x7ca   : > { %4956 = vmatmul.msk.bf16.gmra.mxu0 %vm9574_vm9, %v3703_v63  ;;  %v4454_v25 = vadd.f32 %v4453_v16, %v4225_v6 }
 0x7cd   : > { %v4051_v27 = vpop.f32.mrf.mxu3  ;;  %v4137_v46 = vpop.f32.mrf.mxu2 }
 0x7ce   : > { %v4138_v14 = vadd.f32 %v4137_v46, %v4048_v10  ;;  %v4229_v48 = vpop.f32.mrf.mxu0 }
 0x7d0   : > { %v4227_v61 = vadd.f32 %v4226_v55, %v4138_v14 }
 0x7d1   : > { %v3666_v42 = vpop.permute.xlu1 %3665 }
 0x7d2   : > { %v4456_v53 = vadd.f32 %v4455_v23, %v4227_v61  ;;  %v3766_v57 = vsel %vm9575_vm10, %v8715_v43, %v3666_v42  ;;  %v3814_v41 = vsel %vm9576_vm15, %v3666_v42, %v3703_v63  ;;  %v4463_v43 = vpop.f32.mrf.mxu1 }
 0x7d3   : > { %4075 = vmatmul.bf16.gmra.mxu3 %v3766_v57  ;;  %4164 = vmatmul.bf16.gmra.mxu2 %v3814_v41 }
 0x7d4   : > { %v5190_v8 = vpack.c.bf16 %v4456_v53, %v4454_v25 }
 0x7d5   : > { %v4140_v58 = vpop.f32.mrf.mxu2  ;;  %v4053_v26 = vpop.f32.mrf.mxu3 }
 0x7d6   : > { %5230 = vst [vmem:[%s8633_s23 + $0x48] sm:$0xff] %v5190_v8   ;;  %v4141_v59 = vadd.f32 %v4140_v58, %v4051_v27  ;;  %v4231_v34 = vpop.f32.mrf.mxu0 }
 0x7d8   : > { %v4230_v19 = vadd.f32 %v4229_v48, %v4141_v59 }
 0x7da   : > { %v4459_v31 = vadd.f32 %v4458_v45, %v4230_v19  ;;  %v4465_v30 = vpop.f32.mrf.mxu1 }
 0x7dd   : > { %v4142_v35 = vpop.f32.mrf.mxu2  ;;  %v4056_v56 = vpop.f32.mrf.mxu3 }
 0x7de   : > { %v4143_v22 = vadd.f32 %v4142_v35, %v4053_v26  ;;  %v4234_v32 = vpop.f32.mrf.mxu0 }
 0x7e0   : > { %v4232_v38 = vadd.f32 %v4231_v34, %v4143_v22 }
 0x7e2   : > { %v4461_v7 = vadd.f32 %v4460_v5, %v4232_v38  ;;  %v4468_v40 = vpop.f32.mrf.mxu1 }
 0x7e4   : > { %v5195_v52 = vpack.c.bf16 %v4461_v7, %v4459_v31 }
 0x7e5   : > { %v4145_v37 = vpop.f32.mrf.mxu2  ;;  %v4058_v17 = vpop.f32.mrf.mxu3 }
 0x7e6   : > { %5231 = vst [vmem:[%s8633_s23 + $0x50] sm:$0xff] %v5195_v52   ;;  %v4146_v18 = vadd.f32 %v4145_v37, %v4056_v56  ;;  %v4236_v24 = vpop.f32.mrf.mxu0 }
 0x7e8   : > { %v4235_v36 = vadd.f32 %v4234_v32, %v4146_v18 }
 0x7ea   : > { %v4464_v47 = vadd.f32 %v4463_v43, %v4235_v36  ;;  %v4470_v49 = vpop.f32.mrf.mxu1 }
 0x7ed   : > { %v4147_v0 = vpop.f32.mrf.mxu2 }
 0x7ee   : > { %v4148_v9 = vadd.f32 %v4147_v0, %v4058_v17 }
 0x7f0   : > { %v4237_v11 = vadd.f32 %v4236_v24, %v4148_v9 }
 0x7f1   : > { %v4061_v44 = vpop.f32.mrf.mxu3 }
 0x7f2   : > { %v4466_v39 = vadd.f32 %v4465_v30, %v4237_v11  ;;  %v4473_v16 = vpop.f32.mrf.mxu1 }
 0x7f3   : > { %v4239_v28 = vpop.f32.mrf.mxu0 }
 0x7f4   : > { %v5200_v51 = vpack.c.bf16 %v4466_v39, %v4464_v47 }
 0x7f6   : > { %5232 = vst [vmem:[%s8633_s23 + $0x58] sm:$0xff] %v5200_v51  }
 0x7f9   : > { %v4063_v50 = vpop.f32.mrf.mxu3 }
 0x7fa   : > { %v4150_v2 = vpop.f32.mrf.mxu2  ;;  %v4475_v46 = vpop.f32.mrf.mxu1 }
 0x7fb   : > { %v4151_v62 = vadd.f32 %v4150_v2, %v4061_v44  ;;  %v4241_v54 = vpop.f32.mrf.mxu0 }
 0x7fd   : > { %v4240_v1 = vadd.f32 %v4239_v28, %v4151_v62 }
 0x7ff   : > { %v4469_v20 = vadd.f32 %v4468_v40, %v4240_v1 }
 0x801   : > { %v4066_v12 = vpop.f32.mrf.mxu3 }
 0x802   : > { %v4152_v3 = vpop.f32.mrf.mxu2  ;;  %v4478_v25 = vpop.f32.mrf.mxu1 }
 0x803   : > { %v4153_v15 = vadd.f32 %v4152_v3, %v4063_v50  ;;  %v4244_v60 = vpop.f32.mrf.mxu0 }
 0x805   : > { %v4242_v33 = vadd.f32 %v4241_v54, %v4153_v15 }
 0x807   : > { %v4471_v29 = vadd.f32 %v4470_v49, %v4242_v33 }
 0x809   : > { %v5205_v4 = vpack.c.bf16 %v4471_v29, %v4469_v20  ;;  %v4068_v23 = vpop.f32.mrf.mxu3 }
 0x80a   : > { %v4155_v10 = vpop.f32.mrf.mxu2  ;;  %v4480_v59 = vpop.f32.mrf.mxu1 }
 0x80b   : > { %5233 = vst [vmem:[%s8633_s23 + $0x60] sm:$0xff] %v5205_v4   ;;  %v4156_v13 = vadd.f32 %v4155_v10, %v4066_v12  ;;  %v4246_v27 = vpop.f32.mrf.mxu0 }
 0x80d   : > { %v4245_v63 = vadd.f32 %v4244_v60, %v4156_v13 }
 0x80f   : > { %v4474_v14 = vadd.f32 %v4473_v16, %v4245_v63 }
 0x811   : > { %v4071_v61 = vpop.f32.mrf.mxu3 }
 0x812   : > { %v4157_v55 = vpop.f32.mrf.mxu2  ;;  %v4483_v7 = vpop.f32.mrf.mxu1 }
 0x813   : > { %v4158_v21 = vadd.f32 %v4157_v55, %v4068_v23 }
 0x815   : > { %v4247_v6 = vadd.f32 %v4246_v27, %v4158_v21 }
 0x817   : > { %v4476_v45 = vadd.f32 %v4475_v46, %v4247_v6 }
 0x819   : > { %v5210_v48 = vpack.c.bf16 %v4476_v45, %v4474_v14  ;;  %v4073_v41 = vpop.f32.mrf.mxu3 }
 0x81a   : > { %v4485_v30 = vpop.f32.mrf.mxu1 }
 0x81b   : > { %5234 = vst [vmem:[%s8633_s23 + $0x68] sm:$0xff] %v5210_v48  }
 0x837   : > { %v4249_v53 = vpop.f32.mrf.mxu0 }
 0x83e   : > { %v4160_v42 = vpop.f32.mrf.mxu2 }
 0x83f   : > { %v4161_v57 = vadd.f32 %v4160_v42, %v4071_v61  ;;  %v4251_v5 = vpop.f32.mrf.mxu0 }
 0x841   : > { %v4250_v58 = vadd.f32 %v4249_v53, %v4161_v57 }
 0x843   : > { %v4479_v35 = vadd.f32 %v4478_v25, %v4250_v58 }
 0x846   : > { %v4162_v8 = vpop.f32.mrf.mxu2 }
 0x847   : > { %v4163_v26 = vadd.f32 %v4162_v8, %v4073_v41  ;;  %v4254_v56 = vpop.f32.mrf.mxu0 }
 0x849   : > { %v4252_v34 = vadd.f32 %v4251_v5, %v4163_v26 }
 0x84b   : > { %v4481_v19 = vadd.f32 %v4480_v59, %v4252_v34 }
 0x84d   : > { %v5215_v22 = vpack.c.bf16 %v4481_v19, %v4479_v35 }
 0x84f   : > { %5235 = vst [vmem:[%s8633_s23 + $0x70] sm:$0xff] %v5215_v22   ;;  %v4256_v18 = vpop.f32.mrf.mxu0 }
 0x856   : > { %v4076_v38 = vpop.f32.mrf.mxu3  ;;  %v4165_v31 = vpop.f32.mrf.mxu2 }
 0x857   : > { %v4166_v43 = vadd.f32 %v4165_v31, %v4076_v38 }
 0x859   : > { %v4255_v37 = vadd.f32 %v4254_v56, %v4166_v43 }
 0x85b   : > { %v4484_v24 = vadd.f32 %v4483_v7, %v4255_v37 }
 0x85e   : > { %v4078_v32 = vpop.f32.mrf.mxu3  ;;  %v4167_v52 = vpop.f32.mrf.mxu2 }
 0x85f   : > { %v4168_v17 = vadd.f32 %v4167_v52, %v4078_v32 }
 0x861   : > { %v4257_v0 = vadd.f32 %v4256_v18, %v4168_v17 }
 0x863   : > { %v4486_v36 = vadd.f32 %v4485_v30, %v4257_v0 }
 0x865   : > { %v5220_v9 = vpack.c.bf16 %v4486_v36, %v4484_v24 }
 0x867   : > { %5236 = vst [vmem:[%s8633_s23 + $0x78] sm:$0xff] %v5220_v9  }
 0x868   : > { %5657 = shalt.err (!%p5654_p3)
}
 0x869   : > { %s5699_s26 = smov 4  }
 0x86a   : > { %5255 = dma.vmem_to_hbm [thread:$0]  (%p5783_p5), %s4566_s12, 2048, %s4568_s17, %s4553_s9, %s5697_s10, %s5697_s10, %s5699_s26  }
 0x86b PF: > { %p5261_p4 = scmp.ge.s32.totalorder %s5692_s30, 2  ;;  %s4582_s23 = sand.u32 1, %s5680_s27  }
 0x86c   : > { %s4583_s13 = scalar_lea.sflag [#allocation4], %s4582_s23 }
 0x86d   : > { %p5258_p7 = pnand %p5261_p4, %p5787_p6 }
 0x86f   : > { %p5259_p8 = pneg %p5258_p7 }
 0x871   : > { %5675 = dma.done.wait (%p5259_p8), %s4583_s13, 2048  }
 0x872   : > { %5677 = vsyncadd (%p5259_p8), %s4583_s13, 4294965248  ;;  %p18_p9 = scmp.ge.s32.totalorder %s5770_s11, 4   ;;  %s9577_s27 = smov %s5684_s28 }
 0x873   : > { %s9578_s28 = smov %s5688_s29  ;;  %s9579_s29 = smov %s5781_s14 }
 0x874   : > { %s9580_s30 = smov %s5770_s11  ;;  %20 = sbr.rel (!%p18_p9) target bundleno = 3 (0x3), region = 87 }
 0x879   :  { %4589 = vsyncpa [#allocation4], 1 }
 0x87a   :  { %4591 = vsyncpa [#allocation4 + $0x1], 1 }

</bundles_post_ra>
